<compile_context>
chip_gen: v7x
topology: tpu7x:2x2x1
jax: 0.10.0
libtpu: 0.0.40
codegen_flags: <defaults>
</compile_context>

<pallas_src>
import numpy as np
import jax
import jax.numpy as jnp
from jax import lax
from jax.experimental import pallas as pl
from jax.experimental.pallas import tpu as pltpu

SELU_ALPHA = 1.6732632423543772848170429916717
SELU_SCALE = 1.0507009873554804934193349852946

_ROWS_PER_IMG = 16    # 9 conv2-output positions, padded to 16 (pad rows = copy of row 8)
_PATCH_LANES = 128    # 10x10 input patch (100 px) padded to 128 lanes
_K1_GROUP = 384       # (9 conv2 taps x 32 conv1 channels = 288) padded to 384 lanes


def _selu(v):
    # clamp the exp argument so the dead branch never produces inf
    return SELU_SCALE * jnp.where(
        v > 0.0, v, SELU_ALPHA * (jnp.exp(jnp.minimum(v, 0.0)) - 1.0))


# ----------------------- static index tables (numpy, module level) -----------------------

def _build_patch_indices():
    """Image (h, w) coords of the 10x10 patch feeding each of the 16 rows per image."""
    h = np.zeros((_ROWS_PER_IMG, 100), np.int32)
    w = np.zeros((_ROWS_PER_IMG, 100), np.int32)
    for rr in range(_ROWS_PER_IMG):
        r = min(rr, 8)                      # rows 9..15 duplicate conv2-output position 8
        ci, cj = r // 3, r % 3
        for u in range(10):
            for v in range(10):
                h[rr, u * 10 + v] = 2 * ci + u
                w[rr, u * 10 + v] = 2 * cj + v
    return h, w


_H_IDX, _W_IDX = _build_patch_indices()


def _build_w1c_indices():
    """Gather indices building the conv1 matmul rhs W1c (4 pool candidates, 128, 384)."""
    tap = np.full((4, _PATCH_LANES, _K1_GROUP), 25, np.int32)   # 25 -> zero row
    ch = np.zeros((4, _PATCH_LANES, _K1_GROUP), np.int32)
    for ii in range(2):
        for ij in range(2):
            pc = ii * 2 + ij
            for di in range(3):
                for dj in range(3):
                    t2 = di * 3 + dj
                    for a in range(5):
                        for b in range(5):
                            u = 2 * di + ii + a
                            v = 2 * dj + ij + b
                            p = u * 10 + v
                            q0 = t2 * 32
                            tap[pc, p, q0:q0 + 32] = a * 5 + b
                            ch[pc, p, q0:q0 + 32] = np.arange(32)
    return tap, ch


_W1C_TAP, _W1C_CH = _build_w1c_indices()


# ----------------------- one-time weight repack (call OUTSIDE jit) -----------------------

def pack_params(params, *, use_bf16=False):
    """PyTorch-shaped (w1, b1, w2, b2) -> MXU-friendly packed operands."""
    w1, b1, w2, b2 = params
    mxu_dt = jnp.bfloat16 if use_bf16 else jnp.float32
    w1 = w1.astype(jnp.float32)
    b1 = b1.astype(jnp.float32)
    w2 = w2.astype(jnp.float32)
    b2 = b2.astype(jnp.float32)

    # conv1 weights as (25, 32): row a*5+b, col c; extra zero row for padding lanes.
    w1_t = jnp.transpose(w1[:, 0], (1, 2, 0)).reshape(25, 32)
    w1_t = jnp.concatenate([w1_t, jnp.zeros((1, 32), jnp.float32)], axis=0)
    w1c = w1_t[_W1C_TAP, _W1C_CH]                                    # (4, 128, 384)

    b1t = jnp.zeros((1, _K1_GROUP), jnp.float32).at[0, :288].set(jnp.tile(b1, 9))

    # conv2 weights as (288, 64): row (di*3+dj)*32 + cin, col cout; K/out padded.
    w2_r = jnp.transpose(w2, (2, 3, 1, 0)).reshape(288, 64)
    w2c = jnp.zeros((_K1_GROUP, 128), jnp.float32).at[:288, :64].set(w2_r)

    b2p = jnp.zeros((1, 128), jnp.float32).at[0, :64].set(b2)

    return (w1c.astype(mxu_dt), b1t, w2c.astype(mxu_dt), b2p)


# ----------------------------------- fused kernel -----------------------------------

def _fused_conv_module_kernel(x1_ref, w1c_ref, b1t_ref, w2c_ref, b2_ref, o_ref):
    """One batch block.

    x1_ref : (NB*16, 128)    per-(image, conv2 position) 10x10 input patch, lane-dense
    w1c_ref: (4, 128, 384)   conv1 rhs, one (128,384) matrix per 2x2 pool candidate
    b1t_ref: (1, 384)        conv1 bias tiled over the 9 conv2 taps
    w2c_ref: (384, 128)      conv2 rhs, taps concatenated along K (288 real)
    b2_ref : (1, 128)        conv2 bias, lane-padded
    o_ref  : (NB, 128)       final SELU output, sublane- and lane-dense
    """
    nb = o_ref.shape[0]
    x1 = x1_ref[...]                                               # (NB*16, 128)

    # ---- conv1 + 2x2 maxpool: 4 MXU matmuls + running elementwise max ----
    m1 = jnp.dot(x1, w1c_ref[0], preferred_element_type=jnp.float32)
    for pc in range(1, 4):
        y = jnp.dot(x1, w1c_ref[pc], preferred_element_type=jnp.float32)
        m1 = jnp.maximum(m1, y)                                    # (NB*16, 384)

    # bias folded after the pool (exact), then SELU; padded lanes stay 0.
    a1 = _selu(m1 + b1t_ref[...])                                  # (NB*16, 384)

    # ---- conv2: single K=384 matmul (288 real K) ----
    y2 = jnp.dot(a1.astype(w2c_ref.dtype), w2c_ref[...],
                 preferred_element_type=jnp.float32)               # (NB*16, 128)

    # ---- 3x3 maxpool over the 9 conv2 positions (rows 9..15 duplicate row 8) ----
    m2 = jnp.max(y2.reshape(nb, _ROWS_PER_IMG, 128), axis=1)       # (NB, 128)

    o_ref[...] = _selu(m2 + b2_ref[...])                           # full-tile store


# ----------------------------------- wrapper -----------------------------------

def conv_module_forward(x_nchw, packed, *, batch_block=64):
    """PyTorch-equivalent forward: x (N,1,14,14) float32 -> (N,64,1,1) float32."""
    w1c, b1t, w2c, b2p = packed
    cdt = w1c.dtype

    N = x_nchw.shape[0]
    NB = max(8, (int(batch_block) // 8) * 8)      # keep output blocks sublane-dense
    n_blocks = -(-N // NB)
    Npad = n_blocks * NB

    # Lane-dense im2col: one 128-lane row per (image, conv2-output position).
    img = x_nchw.astype(jnp.float32).reshape(N, 14, 14)
    cols = img[:, _H_IDX, _W_IDX]                                  # (N, 16, 100)
    cols = jnp.pad(cols, ((0, Npad - N), (0, 0), (0, _PATCH_LANES - 100)))
    x1 = cols.reshape(Npad * _ROWS_PER_IMG, _PATCH_LANES).astype(cdt)

    out = pl.pallas_call(
        _fused_conv_module_kernel,
        out_shape=jax.ShapeDtypeStruct((Npad, 128), jnp.float32),
        grid_spec=pltpu.PrefetchScalarGridSpec(
            num_scalar_prefetch=0,
            grid=(n_blocks,),
            in_specs=[
                pl.BlockSpec((NB * _ROWS_PER_IMG, _PATCH_LANES), lambda b: (b, 0)),
                pl.BlockSpec((4, _PATCH_LANES, _K1_GROUP), lambda b: (0, 0, 0)),
                pl.BlockSpec((1, _K1_GROUP), lambda b: (0, 0)),
                pl.BlockSpec((_K1_GROUP, 128), lambda b: (0, 0)),
                pl.BlockSpec((1, 128), lambda b: (0, 0)),
            ],
            out_specs=pl.BlockSpec((NB, 128), lambda b: (b, 0)),
        ),
        compiler_params=pltpu.CompilerParams(
            dimension_semantics=("parallel",),
            vmem_limit_bytes=64 * 1024 * 1024),
    )(x1, w1c, b1t, w2c, b2p)

    return out[:N, :64].reshape(N, 64, 1, 1)


# ----------------------- pure-JAX reference (verification) -----------------------

def reference_forward(x_nchw, params):
    w1, b1, w2, b2 = params

    def conv(x, w, b):
        y = lax.conv_general_dilated(
            x, w, window_strides=(1, 1), padding="VALID",
            dimension_numbers=("NCHW", "OIHW", "NCHW"))
        return y + b.reshape(1, -1, 1, 1)

    def maxpool(x, k):
        return lax.reduce_window(
            x, -jnp.inf, lax.max,
            window_dimensions=(1, 1, k, k), window_strides=(1, 1, k, k),
            padding="VALID")

    x = _selu(maxpool(conv(x_nchw, w1, b1), 2))
    x = _selu(maxpool(conv(x, w2, b2), 3))
    return x


# ----------------------------------- main -----------------------------------

if __name__ == "__main__":
    key = jax.random.PRNGKey(0)
    k_x, k_w1, k_b1, k_w2, k_b2 = jax.random.split(key, 5)

    # PyTorch-shaped parameters (conv weight OIHW).
    w1 = jax.random.normal(k_w1, (32, 1, 5, 5), jnp.float32) * 0.2
    b1 = jax.random.normal(k_b1, (32,), jnp.float32) * 0.1
    w2 = jax.random.normal(k_w2, (64, 32, 3, 3), jnp.float32) * 0.1
    b2 = jax.random.normal(k_b2, (64,), jnp.float32) * 0.1
    params = (w1, b1, w2, b2)

    # Batch of 1x14x14 images (NCHW).  N=20 with batch_block=8 exercises both the
    # multi-block batch grid and the batch-padding path.
    N = 20
    x = jax.random.normal(k_x, (N, 1, 14, 14), jnp.float32)

    ref = jax.block_until_ready(reference_forward(x, params))

    # f32 MXU path (tight tolerance).  Weight repack hoisted out of jit.
    packed_f32 = pack_params(params, use_bf16=False)
    fwd_f32 = jax.jit(lambda xx: conv_module_forward(xx, packed_f32, batch_block=8))
    out_f32 = jax.block_until_ready(fwd_f32(x))
    assert out_f32.shape == (N, 64, 1, 1), out_f32.shape
    assert jnp.allclose(out_f32, ref, atol=5e-3, rtol=5e-3), (
        "f32 mismatch vs reference, max abs err = "
        + str(float(jnp.max(jnp.abs(out_f32 - ref)))))

    # bf16 MXU-operand path (fast path on v6e/v7x), f32 accumulation, looser tolerance.
    packed_bf16 = pack_params(params, use_bf16=True)
    fwd_bf16 = jax.jit(lambda xx: conv_module_forward(xx, packed_bf16, batch_block=16))
    out_bf16 = jax.block_until_ready(fwd_bf16(x))
    assert out_bf16.shape == (N, 64, 1, 1), out_bf16.shape
    assert jnp.allclose(out_bf16, ref, atol=1e-1, rtol=5e-2), (
        "bf16 mismatch vs reference, max abs err = "
        + str(float(jnp.max(jnp.abs(out_bf16 - ref)))))

    print("KERNEL_OK")
</pallas_src>

<mosaic_0001>
module attributes {stable_mosaic.version = 11 : i64} {
  func.func @_fused_conv_module_kernel(%arg0: i32, %arg1: memref<128x128xf32, #tpu.memory_space<vmem>>, %arg2: memref<4x128x384xf32, #tpu.memory_space<vmem>>, %arg3: memref<1x384xf32, #tpu.memory_space<vmem>>, %arg4: memref<384x128xf32, #tpu.memory_space<vmem>>, %arg5: memref<1x128xf32, #tpu.memory_space<vmem>>, %arg6: memref<8x128xf32, #tpu.memory_space<vmem>>) attributes {dimension_semantics = [#tpu.dimension_semantics<parallel>], iteration_bounds = array<i64: 3>, scalar_prefetch = 0 : i64, scratch_operands = 0 : i64, tpu.core_type = #tpu.core_type<tc>, window_params = [{transform_indices = @transform_0, window_bounds = array<i64: 128, 128>}, {pipeline_mode = #tpu.pipeline_mode<synchronous>, transform_indices = @transform_1, window_bounds = array<i64: 4, 128, 384>}, {pipeline_mode = #tpu.pipeline_mode<synchronous>, transform_indices = @transform_2, window_bounds = array<i64: 1, 384>}, {pipeline_mode = #tpu.pipeline_mode<synchronous>, transform_indices = @transform_3, window_bounds = array<i64: 384, 128>}, {pipeline_mode = #tpu.pipeline_mode<synchronous>, transform_indices = @transform_4, window_bounds = array<i64: 1, 128>}, {transform_indices = @transform_5, window_bounds = array<i64: 8, 128>}]} {
    %c0 = arith.constant 0 : index
    %c0_0 = arith.constant 0 : index
    %0 = vector.load %arg1[%c0, %c0_0] : memref<128x128xf32, #tpu.memory_space<vmem>>, vector<128x128xf32>
    %c0_1 = arith.constant 0 : index
    %c0_2 = arith.constant 0 : index
    %c0_3 = arith.constant 0 : index
    %1 = vector.load %arg2[%c0_1, %c0_2, %c0_3] : memref<4x128x384xf32, #tpu.memory_space<vmem>>, vector<1x128x384xf32>
    %2 = vector.shape_cast %1 : vector<1x128x384xf32> to vector<128x384xf32>
    %cst = arith.constant dense<0.000000e+00> : vector<128x384xf32>
    %3 = tpu.matmul %0, %2, %cst {dimension_numbers = #tpu.dot_dimension_numbers<[1], [0], [0], [1], [0, 0, 1, 1], [], []>} : vector<128x128xf32>, vector<128x384xf32>, vector<128x384xf32> -> vector<128x384xf32>
    %c1 = arith.constant 1 : index
    %c0_4 = arith.constant 0 : index
    %c0_5 = arith.constant 0 : index
    %4 = vector.load %arg2[%c1, %c0_4, %c0_5] : memref<4x128x384xf32, #tpu.memory_space<vmem>>, vector<1x128x384xf32>
    %5 = vector.shape_cast %4 : vector<1x128x384xf32> to vector<128x384xf32>
    %cst_6 = arith.constant dense<0.000000e+00> : vector<128x384xf32>
    %6 = tpu.matmul %0, %5, %cst_6 {dimension_numbers = #tpu.dot_dimension_numbers<[1], [0], [0], [1], [0, 0, 1, 1], [], []>} : vector<128x128xf32>, vector<128x384xf32>, vector<128x384xf32> -> vector<128x384xf32>
    %7 = arith.maximumf %3, %6 : vector<128x384xf32>
    %c2 = arith.constant 2 : index
    %c0_7 = arith.constant 0 : index
    %c0_8 = arith.constant 0 : index
    %8 = vector.load %arg2[%c2, %c0_7, %c0_8] : memref<4x128x384xf32, #tpu.memory_space<vmem>>, vector<1x128x384xf32>
    %9 = vector.shape_cast %8 : vector<1x128x384xf32> to vector<128x384xf32>
    %cst_9 = arith.constant dense<0.000000e+00> : vector<128x384xf32>
    %10 = tpu.matmul %0, %9, %cst_9 {dimension_numbers = #tpu.dot_dimension_numbers<[1], [0], [0], [1], [0, 0, 1, 1], [], []>} : vector<128x128xf32>, vector<128x384xf32>, vector<128x384xf32> -> vector<128x384xf32>
    %11 = arith.maximumf %7, %10 : vector<128x384xf32>
    %c3 = arith.constant 3 : index
    %c0_10 = arith.constant 0 : index
    %c0_11 = arith.constant 0 : index
    %12 = vector.load %arg2[%c3, %c0_10, %c0_11] : memref<4x128x384xf32, #tpu.memory_space<vmem>>, vector<1x128x384xf32>
    %13 = vector.shape_cast %12 : vector<1x128x384xf32> to vector<128x384xf32>
    %cst_12 = arith.constant dense<0.000000e+00> : vector<128x384xf32>
    %14 = tpu.matmul %0, %13, %cst_12 {dimension_numbers = #tpu.dot_dimension_numbers<[1], [0], [0], [1], [0, 0, 1, 1], [], []>} : vector<128x128xf32>, vector<128x384xf32>, vector<128x384xf32> -> vector<128x384xf32>
    %15 = arith.maximumf %11, %14 : vector<128x384xf32>
    %c0_13 = arith.constant 0 : index
    %c0_14 = arith.constant 0 : index
    %16 = vector.load %arg3[%c0_13, %c0_14] : memref<1x384xf32, #tpu.memory_space<vmem>>, vector<1x384xf32>
    %17 = vector.broadcast %16 : vector<1x384xf32> to vector<128x384xf32>
    %18 = arith.addf %15, %17 : vector<128x384xf32>
    %cst_15 = arith.constant 0.000000e+00 : f32
    %19 = vector.broadcast %cst_15 : f32 to vector<128x384xf32>
    %20 = arith.cmpf ogt, %18, %19 : vector<128x384xf32>
    %cst_16 = arith.constant 0.000000e+00 : f32
    %21 = vector.broadcast %cst_16 : f32 to vector<128x384xf32>
    %22 = arith.minimumf %18, %21 : vector<128x384xf32>
    %23 = math.exp %22 : vector<128x384xf32>
    %cst_17 = arith.constant 1.000000e+00 : f32
    %24 = vector.broadcast %cst_17 : f32 to vector<128x384xf32>
    %25 = arith.subf %23, %24 : vector<128x384xf32>
    %cst_18 = arith.constant 1.67326319 : f32
    %26 = vector.broadcast %cst_18 : f32 to vector<128x384xf32>
    %27 = arith.mulf %26, %25 : vector<128x384xf32>
    %28 = arith.select %20, %18, %27 : vector<128x384xi1>, vector<128x384xf32>
    %cst_19 = arith.constant 1.05070102 : f32
    %29 = vector.broadcast %cst_19 : f32 to vector<128x384xf32>
    %30 = arith.mulf %29, %28 : vector<128x384xf32>
    %c0_20 = arith.constant 0 : index
    %c0_21 = arith.constant 0 : index
    %31 = vector.load %arg4[%c0_20, %c0_21] : memref<384x128xf32, #tpu.memory_space<vmem>>, vector<384x128xf32>
    %cst_22 = arith.constant dense<0.000000e+00> : vector<128x128xf32>
    %32 = tpu.matmul %30, %31, %cst_22 {dimension_numbers = #tpu.dot_dimension_numbers<[1], [0], [0], [1], [0, 0, 1, 1], [], []>} : vector<128x384xf32>, vector<384x128xf32>, vector<128x128xf32> -> vector<128x128xf32>
    %33 = vector.shape_cast %32 : vector<128x128xf32> to vector<8x16x128xf32>
    %cst_23 = arith.constant dense<0xFF800000> : vector<8x128xf32>
    %34 = vector.multi_reduction <maximumf>, %33, %cst_23 [1] : vector<8x16x128xf32> to vector<8x128xf32>
    %c0_24 = arith.constant 0 : index
    %c0_25 = arith.constant 0 : index
    %35 = vector.load %arg5[%c0_24, %c0_25] : memref<1x128xf32, #tpu.memory_space<vmem>>, vector<1x128xf32>
    %36 = vector.broadcast %35 : vector<1x128xf32> to vector<8x128xf32>
    %37 = arith.addf %34, %36 : vector<8x128xf32>
    %cst_26 = arith.constant 0.000000e+00 : f32
    %38 = vector.broadcast %cst_26 : f32 to vector<8x128xf32>
    %39 = arith.cmpf ogt, %37, %38 : vector<8x128xf32>
    %cst_27 = arith.constant 0.000000e+00 : f32
    %40 = vector.broadcast %cst_27 : f32 to vector<8x128xf32>
    %41 = arith.minimumf %37, %40 : vector<8x128xf32>
    %42 = math.exp %41 : vector<8x128xf32>
    %cst_28 = arith.constant 1.000000e+00 : f32
    %43 = vector.broadcast %cst_28 : f32 to vector<8x128xf32>
    %44 = arith.subf %42, %43 : vector<8x128xf32>
    %cst_29 = arith.constant 1.67326319 : f32
    %45 = vector.broadcast %cst_29 : f32 to vector<8x128xf32>
    %46 = arith.mulf %45, %44 : vector<8x128xf32>
    %47 = arith.select %39, %37, %46 : vector<8x128xi1>, vector<8x128xf32>
    %cst_30 = arith.constant 1.05070102 : f32
    %48 = vector.broadcast %cst_30 : f32 to vector<8x128xf32>
    %49 = arith.mulf %48, %47 : vector<8x128xf32>
    %c0_31 = arith.constant 0 : index
    %c0_32 = arith.constant 0 : index
    %50 = vector.load %arg6[%c0_31, %c0_32] : memref<8x128xf32, #tpu.memory_space<vmem>>, vector<8x128xf32>
    tpu.vector_store %arg6[%c0_31, %c0_32], %49 {strides = array<i32>} : memref<8x128xf32, #tpu.memory_space<vmem>>, vector<8x128xf32>,
    return
  }
  func.func @transform_0(%arg0: i32) -> (i32, i32) {
    %c0_i32 = arith.constant 0 : i32
    %c0_i32_0 = arith.constant 0 : i32
    return %arg0, %c0_i32 : i32, i32
  }
  func.func @transform_1(%arg0: i32) -> (i32, i32, i32) {
    %c0_i32 = arith.constant 0 : i32
    %c0_i32_0 = arith.constant 0 : i32
    %c0_i32_1 = arith.constant 0 : i32
    %c0_i32_2 = arith.constant 0 : i32
    return %c0_i32, %c0_i32_0, %c0_i32_1 : i32, i32, i32
  }
  func.func @transform_2(%arg0: i32) -> (i32, i32) {
    %c0_i32 = arith.constant 0 : i32
    %c0_i32_0 = arith.constant 0 : i32
    %c0_i32_1 = arith.constant 0 : i32
    return %c0_i32, %c0_i32_0 : i32, i32
  }
  func.func @transform_3(%arg0: i32) -> (i32, i32) {
    %c0_i32 = arith.constant 0 : i32
    %c0_i32_0 = arith.constant 0 : i32
    %c0_i32_1 = arith.constant 0 : i32
    return %c0_i32, %c0_i32_0 : i32, i32
  }
  func.func @transform_4(%arg0: i32) -> (i32, i32) {
    %c0_i32 = arith.constant 0 : i32
    %c0_i32_0 = arith.constant 0 : i32
    %c0_i32_1 = arith.constant 0 : i32
    return %c0_i32, %c0_i32_0 : i32, i32
  }
  func.func @transform_5(%arg0: i32) -> (i32, i32) {
    %c0_i32 = arith.constant 0 : i32
    %c0_i32_0 = arith.constant 0 : i32
    return %arg0, %c0_i32 : i32, i32
  }
}

</mosaic_0001>

<bundles_post_ra>
// kernel: _lambda_.1
= control target key start
LH: loop header
LB: loop body
LE: loop exit
PB: predicated region body
PF: predicated region fallthrough
CT: control target
= control target key end

     0   :  { %10 = vsyncpa [#allocation3], 0  ;;  %s5983_s0 = inlined_call_operand.hbm [shape: f32[384,128], index: 0, kind: input, shape index: {}]   ;;  %s5984_s1 = inlined_call_operand.hbm [shape: f32[4,128,384], index: 1, kind: input, shape index: {}]   ;;  %s5985_s2 = inlined_call_operand.hbm [shape: f32[1,384], index: 2, kind: input, shape index: {}]   ;;  %s5986_s3 = inlined_call_operand.hbm [shape: f32[384,128], index: 3, kind: input, shape index: {}]   ;;  %s5987_s4 = inlined_call_operand.hbm [shape: f32[1,128], index: 4, kind: input, shape index: {}]   ;;  %s5988_s5 = inlined_call_operand.hbm [shape: f32[24,128], index: 5, kind: output, shape index: {}]  }
   0x1   :  { %12 = vsyncpa [#allocation3 + $0x1], 0 }
   0x2   :  { %13 = vsyncpa [#allocation6], 0 }
   0x3   :  { %14 = vsyncpa [#allocation9], 0 }
   0x4   :  { %15 = vsyncpa [#allocation4], 0 }
   0x5   :  { %17 = vsyncpa [#allocation4 + $0x1], 0  ;;  %s4335_s18 = smov 0   ;;  %s4337_s19 = smov 0  }
   0x6   :  { %s4339_s20 = smov 0   ;;  %s4341_s21 = smov 0  }
   0x7 LB: > { %s4356_s22 = sadd.s32 4294967295, %s4292_s21   ;;  %s2952_s23 = sadd.s32 4294967294, %s4292_s21   ;;  %s4292_s21 = sphi %s4341_s21, %s6254_s21   ;;  %s4288_s20 = sphi %s4339_s20, %s6253_s20   ;;  %s4284_s19 = sphi %s4337_s19, %s6252_s19   ;;  %s4280_s18 = sphi %s4335_s18, %s6251_s18  }
   0x8   : > { %p43_p0 = scmp.ne.s32.totalorder %s4284_s19, %s4280_s18  ;;  %p5989_p1 = scmp.eq.s32.totalorder %s4356_s22, 0 }
   0x9   : > { %p157_p3 = scmp.eq.s32.totalorder %s2952_s23, 2  ;;  %p2953_p5 = scmp.ge.s32.totalorder %s4292_s21, 1 }
   0xa   : > { %p4365_p4 = por %p5989_p1, %p43_p0  ;;  %p164_p7 = scmp.lt.s32.totalorder %s4292_s21, 4 }
   0xb   : > { %p4370_p6 = por %p157_p3, %p43_p0  ;;  %s4294_s27 = smov [#allocation5]  }
   0xc   : > { %s6058_s24 = scalar_select %p4365_p4, 1, 0 }
   0xd   : > { %s6059_s25 = scalar_select %p4370_p6, 1, 0 }
   0xe   : > { %p4375_p8 = pnand %p2953_p5, %p164_p7  ;;  %s176_s28 = sshll.u32 %s4294_s27, 4  ;;  %s177_s28 = int_to_ptr.vmem [resolvable:$true] %s176_s28 }
   0xf   : > { %s4295_s30 = smov [#allocation8]   ;;  %s4076_s9 = scalar_lea.hbm %s5984_s1, 24576 }
  0x10   : > { %s6060_s26 = scalar_select %p4375_p8, 1, 0 }
  0x11   : > { %p3891_p9 = pneg %p4375_p8  ;;  %s200_s6 = sshll.u32 %s4295_s30, 4  ;;  %s4387_s6 = int_to_ptr.vmem [resolvable:$true] %s200_s6 }
  0x12   : > { %p4077_p11 = scmp.ne.s32.totalorder %s5984_s1, %s4076_s9  ;;  %p4083_p3 = scmp.lt.u32.totalorder %s4076_s9, %s5984_s1 }
  0x13   : > { %p4383_p10 = pnand %p3891_p9, %p5989_p1 }
  0x15   : > { %p4397_p12 = pneg %p4383_p10 }
  0x17   : > { %p4079_p13 = pnand %p4397_p12, %p4077_p11 }
  0x19   : > { %p4080_p0 = pneg %p4079_p13 }
  0x1b   : > { %p4085_p5 = pnand %p4083_p3, %p4080_p0 }
  0x1d   : > { %4088 = shalt.err (!%p4085_p5)
}
  0x1e   : > { %s4089_s15 = scalar_lea.vmem %s177_s28, 24576  ;;  %p4097_p2 = scmp.lt.s32.totalorder %s177_s28, %s177_s28 }
  0x1f   : > { %p4090_p7 = scmp.ne.s32.totalorder %s177_s28, %s4089_s15  ;;  %p4098_p6 = scmp.lt.s32.totalorder %s4089_s15, %s4089_s15 }
  0x21   : > { %p4092_p9 = pnand %p4090_p7, %p4397_p12  ;;  %p4099_p4 = por %p4098_p6, %p4097_p2 }
  0x23   : > { %p4093_p1 = pneg %p4092_p9 }
  0x25   : > { %p4100_p8 = pnand %p4099_p4, %p4093_p1 }
  0x27   : > { %4103 = shalt.err (!%p4100_p8)
}
  0x28   : > { %s4296_s16 = smov 384   ;;  %s4297_s17 = smov 24  }
  0x29   : > { %3894 = dma.hbm_to_vmem [thread:$0]  (!%p4383_p10), %s5984_s1, 24576, %s177_s28, [#allocation6], %s4296_s16, %s4296_s16, %s4297_s17  }
  0x2a   : > { %s4104_s8 = scalar_lea.hbm %s5986_s3, 6144 }
  0x2b   : > { %p4105_p11 = scmp.ne.s32.totalorder %s5986_s3, %s4104_s8  ;;  %p4111_p4 = scmp.lt.u32.totalorder %s4104_s8, %s5986_s3 }
  0x2d   : > { %p4107_p1 = pnand %p4105_p11, %p4397_p12 }
  0x2f   : > { %p4108_p2 = pneg %p4107_p1 }
  0x31   : > { %p4113_p6 = pnand %p4111_p4, %p4108_p2 }
  0x33   : > { %4116 = shalt.err (!%p4113_p6)
}
  0x34   : > { %s4117_s28 = scalar_lea.vmem %s4387_s6, 6144  ;;  %p4125_p3 = scmp.lt.s32.totalorder %s4387_s6, %s4387_s6 }
  0x35   : > { %p4118_p8 = scmp.ne.s32.totalorder %s4387_s6, %s4117_s28  ;;  %p4126_p5 = scmp.lt.s32.totalorder %s4117_s28, %s4117_s28 }
  0x37   : > { %p4120_p13 = pnand %p4118_p8, %p4397_p12  ;;  %p4127_p7 = por %p4126_p5, %p4125_p3 }
  0x39   : > { %p4121_p0 = pneg %p4120_p13 }
  0x3b   : > { %p4128_p9 = pnand %p4127_p7, %p4121_p0 }
  0x3d   : > { %4131 = shalt.err (!%p4128_p9)
}
  0x3e   : > { %s4298_s14 = smov 128   ;;  %s4299_s15 = smov 8  }
  0x3f   : > { %3900 = dma.hbm_to_vmem [thread:$0]  (!%p4383_p10), %s5986_s3, 6144, %s4387_s6, [#allocation9], %s4298_s14, %s4298_s14, %s4299_s15  }
  0x40   : > { %s4300_s23 = smov [#allocation7]   ;;  %s4301_s30 = smov [#allocation10]  }
  0x41   : > { %s190_s27 = sshll.u32 %s4300_s23, 4  ;;  %s214_s7 = sshll.u32 %s4301_s30, 4  ;;  %s191_s27 = int_to_ptr.vmem [resolvable:$true] %s190_s27  ;;  %s4439_s7 = int_to_ptr.vmem [resolvable:$true] %s214_s7 }
  0x42   : > { %s4132_s10 = scalar_lea.hbm %s5985_s2, 48 }
  0x43   : > { %p4133_p11 = scmp.ne.s32.totalorder %s5985_s2, %s4132_s10  ;;  %p4139_p4 = scmp.lt.u32.totalorder %s4132_s10, %s5985_s2 }
  0x45   : > { %p4135_p1 = pnand %p4133_p11, %p4397_p12 }
  0x47   : > { %p4136_p2 = pneg %p4135_p1 }
  0x49   : > { %p4141_p6 = pnand %p4139_p4, %p4136_p2 }
  0x4b   : > { %4144 = shalt.err (!%p4141_p6)
}
  0x4c   : > { %s4145_s16 = scalar_lea.vmem %s191_s27, 48  ;;  %s4152_s17 = scalar_lea.vmem %s191_s27, 64 }
  0x4d   : > { %p4146_p8 = scmp.ne.s32.totalorder %s191_s27, %s4145_s16  ;;  %p4153_p3 = scmp.lt.s32.totalorder %s191_s27, %s191_s27 }
  0x4e   : > { %p4154_p5 = scmp.lt.s32.totalorder %s4152_s17, %s4145_s16 }
  0x4f   : > { %p4148_p13 = pnand %p4146_p8, %p4397_p12 }
  0x50   : > { %p4155_p7 = por %p4154_p5, %p4153_p3 }
  0x51   : > { %p4149_p0 = pneg %p4148_p13 }
  0x53   : > { %p4156_p9 = pnand %p4155_p7, %p4149_p0 }
  0x55   : > { %4159 = shalt.err (!%p4156_p9)
}
  0x56   : > { %3897 = dma.hbm_to_vmem [thread:$0]  (!%p4383_p10), %s5985_s2, 48, %s191_s27, [#allocation6]  }
  0x57   : > { %s4160_s10 = scalar_lea.hbm %s5987_s4, 16 }
  0x58   : > { %p4161_p11 = scmp.ne.s32.totalorder %s5987_s4, %s4160_s10  ;;  %p4167_p4 = scmp.lt.u32.totalorder %s4160_s10, %s5987_s4 }
  0x5a   : > { %p4163_p1 = pnand %p4161_p11, %p4397_p12 }
  0x5c   : > { %p4164_p2 = pneg %p4163_p1 }
  0x5e   : > { %p4169_p6 = pnand %p4167_p4, %p4164_p2 }
  0x60   : > { %4172 = shalt.err (!%p4169_p6)
}
  0x61   : > { %s4173_s27 = scalar_lea.vmem %s4439_s7, 16  ;;  %s4180_s16 = scalar_lea.vmem %s4439_s7, 32 }
  0x62   : > { %p4174_p8 = scmp.ne.s32.totalorder %s4439_s7, %s4173_s27  ;;  %p4181_p3 = scmp.lt.s32.totalorder %s4439_s7, %s4439_s7 }
  0x63   : > { %p4182_p5 = scmp.lt.s32.totalorder %s4180_s16, %s4173_s27 }
  0x64   : > { %p4176_p13 = pnand %p4174_p8, %p4397_p12 }
  0x65   : > { %p4183_p7 = por %p4182_p5, %p4181_p3 }
  0x66   : > { %p4177_p0 = pneg %p4176_p13 }
  0x68   : > { %p4184_p9 = pnand %p4183_p7, %p4177_p0 }
  0x6a   : > { %4187 = shalt.err (!%p4184_p9)
}
  0x6b   : > { %3903 = dma.hbm_to_vmem [thread:$0]  (!%p4383_p10), %s5987_s4, 16, %s4439_s7, [#allocation9]  }
  0x6c   : > { %s4484_s12 = sadd.s32 1, %s4292_s21   ;;  %s30_s30 = sadd.s32 1, %s4288_s20 }
  0x6d   : > { %s27_s29 = ssub.s32 %s4292_s21, %s4484_s12  ;;  %p37_p11 = scmp.ne.s32.totalorder %s4288_s20, %s4284_s19 }
  0x6e   : > { %p28_p12 = scmp.eq.s32.totalorder %s27_s29, 0  ;;  %p38_p1 = scmp.eq.s32.totalorder %s4292_s21, 0 }
  0x6f   : > { %p6063_p4 = scmp.eq.s32.totalorder %s4356_s22, 2  ;;  %p3916_p8 = scmp.lt.s32.totalorder %s4292_s21, 3 }
  0x70   : > { %s4493_s8 = scalar_select %p28_p12, %s4288_s20, %s30_s30  }
  0x71   : > { %p39_p2 = por %p38_p1, %p37_p11  ;;  %p4497_p6 = por %p6063_p4, %p37_p11 }
  0x72   : > { %s225_s10 = sand.u32 1, %s4288_s20   ;;  %s3030_s7 = sshll.u32 %s4292_s21, 11 }
  0x73   : > { %s2959_s11 = sshll.u32 %s225_s10, 7  ;;  %s4507_s6 = scalar_lea.hbm %s5983_s0, %s3030_s7 }
  0x74   : > { %s229_s27 = scalar_lea.vmem [#allocation2], %s2959_s11  ;;  %p4511_p10 = pnand %p3916_p8, %p39_p2 }
  0x75   : > { %s236_s16 = sshll.u32 %s229_s27, 4  ;;  %s4515_s23 = scalar_lea.sflag [#allocation3], %s225_s10  ;;  %s4509_s16 = int_to_ptr.vmem [resolvable:$true] %s236_s16 }
  0x76   : > { %s4188_s29 = scalar_lea.hbm %s4507_s6, 2048  ;;  %p4190_p0 = pneg %p4511_p10 }
  0x77   : > { %p4189_p13 = scmp.ne.s32.totalorder %s4507_s6, %s4188_s29  ;;  %s4193_s7 = scalar_lea.hbm %s5983_s0, 6144 }
  0x78   : > { %p4194_p7 = scmp.lt.u32.totalorder %s4507_s6, %s5983_s0  ;;  %p4195_p9 = scmp.lt.u32.totalorder %s4193_s7, %s4188_s29 }
  0x79   : > { %p4191_p3 = pnand %p4190_p0, %p4189_p13  ;;  %p4197_p11 = scmp.lt.u32.totalorder %s4188_s29, %s4507_s6 }
  0x7a   : > { %p4196_p12 = por %p4195_p9, %p4194_p7 }
  0x7b   : > { %p4192_p5 = pneg %p4191_p3 }
  0x7c   : > { %p4198_p1 = por %p4197_p11, %p4196_p12 }
  0x7e   : > { %p4199_p2 = pnand %p4198_p1, %p4192_p5 }
  0x80   : > { %4202 = shalt.err (!%p4199_p2)
}
  0x81   : > { %s4203_s10 = scalar_lea.vmem %s4509_s16, 2048  ;;  %s4302_s27 = smov [#allocation2]  }
  0x82   : > { %p4204_p4 = scmp.ne.s32.totalorder %s4509_s16, %s4203_s10  ;;  %s4208_s30 = sshll.u32 %s4302_s27, 4  ;;  %s4209_s30 = int_to_ptr.vmem [resolvable:$false] %s4208_s30 }
  0x83   : > { %s4210_s11 = scalar_lea.vmem %s4209_s30, 4096  ;;  %p4211_p3 = scmp.lt.s32.totalorder %s4509_s16, %s4209_s30 }
  0x84   : > { %p4206_p8 = pnand %p4204_p4, %p4190_p0  ;;  %p4212_p7 = scmp.lt.s32.totalorder %s4210_s11, %s4203_s10 }
  0x86   : > { %p4207_p13 = pneg %p4206_p8  ;;  %p4213_p9 = por %p4212_p7, %p4211_p3 }
  0x88   : > { %p4214_p12 = pnand %p4213_p9, %p4207_p13 }
  0x8a   : > { %4217 = shalt.err (!%p4214_p12)
}
  0x8b   : > { %3907 = dma.hbm_to_vmem [thread:$0]  (!%p4511_p10), %s4507_s6, 2048, %s4509_s16, %s4515_s23, %s4298_s14, %s4298_s14, %s4299_s15  }
  0x8c   : > { %p6066_p0 = scmp.ne.s32.totalorder %s6060_s26, 0 }
  0x8e   : > { %248 = sbr.rel (%p6066_p0) target bundleno = 940 (0x3ac), region = 40 }
  0x95   : > { %s4549_s29 = sand.u32 1, %s4284_s19   ;;  %p6067_p5 = scmp.ne.s32.totalorder %s6058_s24, 0 }
  0x96   : > { %s2963_s7 = sshll.u32 %s4549_s29, 7  ;;  %s251_s13 = scalar_lea.sflag [#allocation3], %s4549_s29 }
  0x97   : > { %s4553_s28 = scalar_lea.vmem [#allocation2], %s2963_s7 }
  0x98   : > { %4263 = dma.done.wait (%p6067_p5), %s251_s13, 2048  }
  0x99   : > { %4265 = vsyncadd (%p6067_p5), %s251_s13, 4294965248  ;;  %p6068_p10 = scmp.eq.s32.totalorder %s4356_s22, 0 }
  0x9b   : > { %4267 = dma.done.wait (%p6068_p10), [#allocation6], 24624   ;;  %p6069_p11 = pmov %p6068_p10 }
  0x9c   : > { %p6070_p1 = pmov %p6068_p10 }
  0x9d   : > { %4269 = vsyncadd (%p6069_p11), [#allocation6], 4294942672 }
  0x9e   : > { %4271 = dma.done.wait (%p6070_p1), [#allocation9], 6160   ;;  %p6071_p2 = pmov %p6070_p1 }
  0x9f   : > { %v4303_v0 = vmov 0.0   ;;  %v315_v1 = vld [vmem:[#allocation5 + $0x8] sm:$0xff]  ;;  %v318_v2 = vld [vmem:[#allocation5 + $0x20] sm:$0xff]  ;;  %v316_v3 = vld [vmem:[#allocation5 + $0x10] sm:$0xff]  ;;  %s2968_s24 = sshll.u32 %s4549_s29, 3  ;;  %s3027_s26 = sshll.u32 %s4356_s22, 7 }
  0xa0   : > { %4273 = vsyncadd (%p6071_p2), [#allocation9], 4294961136  ;;  %426 = vmatprep.mubr.f32.mxu0 %v4303_v0  ;;  %v3551_v4 = vpack.c.bf16 %v318_v2, %v315_v1  ;;  %v319_v5 = vld [vmem:[#allocation5 + $0x28] sm:$0xff]  ;;  %v314_v6 = vld [vmem:[#allocation5] sm:$0xff]  ;;  %s296_s14 = scalar_lea.vmem [#allocation11], %s2968_s24  ;;  %s5940_s17 = scalar_lea.hbm %s5988_s5, %s3027_s26 }
  0xa1   : > { %v317_v7 = vld [vmem:[#allocation5 + $0x18] sm:$0xff]  ;;  %v3583_v8 = vpack.c.bf16 %v319_v5, %v316_v3  ;;  %v324_v11 = vld [vmem:[#allocation5 + $0x50] sm:$0xff]  ;;  %v322_v12 = vld [vmem:[#allocation5 + $0x40] sm:$0xff]  ;;  %s2844_s15 = sshll.u32 %s296_s14, 4  ;;  %s2831_s23 = scalar_lea.sflag [#allocation4], %s4549_s29  ;;  %s5942_s15 = int_to_ptr.vmem [resolvable:$true] %s2844_s15 }
  0xa2   : > { %v3553_v9 = vpack.c.bf16 %v317_v7, %v314_v6  ;;  %v321_v10 = vld [vmem:[#allocation5 + $0x38] sm:$0xff]  ;;  %3552 = vmatprep.subr.bf16.mxu0 %v3551_v4  ;;  %v320_v15 = vld [vmem:[#allocation5 + $0x30] sm:$0xff]  ;;  %v323_v16 = vld [vmem:[#allocation5 + $0x48] sm:$0xff]  ;;  %s4218_s10 = scalar_lea.vmem %s5942_s15, 128  ;;  %s4304_s22 = smov [#allocation11]  }
  0xa3   : > { %v3555_v13 = vpack.c.bf16 %v324_v11, %v321_v10  ;;  %v325_v14 = vld [vmem:[#allocation5 + $0x58] sm:$0xff]  ;;  %3584 = vmatprep.subr.bf16.mxu1 %v3583_v8  ;;  %v3557_v18 = vpack.c.bf16 %v323_v16, %v320_v15  ;;  %v327_v19 = vld [vmem:[#allocation5 + $0x68] sm:$0xff]  ;;  %v330_v20 = vld [vmem:[#allocation5 + $0x80] sm:$0xff]  ;;  %p4219_p4 = scmp.ne.s32.totalorder %s5942_s15, %s4218_s10  ;;  %s4222_s27 = sshll.u32 %s4304_s22, 4  ;;  %s4223_s27 = int_to_ptr.vmem [resolvable:$false] %s4222_s27 }
  0xa4   : > { %3554 = vmatpush1.bf16.msra.mxu0 %v3553_v9  ;;  %v3587_v17 = vpack.c.bf16 %v325_v14, %v322_v12  ;;  %v328_v21 = vld [vmem:[#allocation5 + $0x70] sm:$0xff]  ;;  %3586 = vmatpush3.bf16.msra.mxu1 %v3583_v8  ;;  %v3559_v22 = vpack.c.bf16 %v330_v20, %v327_v19  ;;  %v331_v23 = vld [vmem:[#allocation5 + $0x88] sm:$0xff]  ;;  %v326_v24 = vld [vmem:[#allocation5 + $0x60] sm:$0xff]  ;;  %s4224_s30 = scalar_lea.vmem %s4223_s27, 256  ;;  %p4225_p3 = scmp.lt.s32.totalorder %s5942_s15, %s4223_s27 }
  0xa5   : > { %3556 = vmatprep.subr.bf16.mxu0 %v3555_v13  ;;  %v329_v25 = vld [vmem:[#allocation5 + $0x78] sm:$0xff]  ;;  %v3591_v26 = vpack.c.bf16 %v331_v23, %v328_v21  ;;  %v336_v28 = vld [vmem:[#allocation5 + $0xb0] sm:$0xff]  ;;  %v334_v29 = vld [vmem:[#allocation5 + $0xa0] sm:$0xff]  ;;  %p4220_p8 = pnand %p4219_p4, %p4497_p6  ;;  %p4226_p7 = scmp.lt.s32.totalorder %s4224_s30, %s4218_s10 }
  0xa6   : > { %3588 = vmatprep.subr.bf16.mxu1 %v3587_v17  ;;  %v333_v27 = vld [vmem:[#allocation5 + $0x98] sm:$0xff]  ;;  %v3561_v31 = vpack.c.bf16 %v329_v25, %v326_v24  ;;  %v332_v33 = vld [vmem:[#allocation5 + $0x90] sm:$0xff]  ;;  %v335_v34 = vld [vmem:[#allocation5 + $0xa8] sm:$0xff] }
  0xa7   : > { %v337_v30 = vld [vmem:[#allocation5 + $0xb8] sm:$0xff]  ;;  %v3563_v32 = vpack.c.bf16 %v336_v28, %v333_v27  ;;  %v339_v36 = vld [vmem:[#allocation5 + $0xc8] sm:$0xff]  ;;  %v342_v37 = vld [vmem:[#allocation5 + $0xe0] sm:$0xff]  ;;  %v3565_v40 = vpack.c.bf16 %v335_v34, %v332_v33  ;;  %p4221_p13 = pneg %p4220_p8  ;;  %p4227_p9 = por %p4226_p7, %p4225_p3 }
  0xa8   : > { %3558 = vmatpush1.bf16.msra.mxu0 %v3557_v18  ;;  %3590 = vmatpush3.bf16.msra.mxu1 %v3587_v17  ;;  %v3595_v35 = vpack.c.bf16 %v337_v30, %v334_v29  ;;  %v340_v38 = vld [vmem:[#allocation5 + $0xd0] sm:$0xff]  ;;  %v343_v39 = vld [vmem:[#allocation5 + $0xe8] sm:$0xff]  ;;  %v3567_v41 = vpack.c.bf16 %v342_v37, %v339_v36  ;;  %v338_v42 = vld [vmem:[#allocation5 + $0xc0] sm:$0xff] }
  0xa9   : > { %3560 = vmatprep.subr.bf16.mxu0 %v3559_v22  ;;  %3592 = vmatprep.subr.bf16.mxu1 %v3591_v26  ;;  %v341_v43 = vld [vmem:[#allocation5 + $0xd8] sm:$0xff]  ;;  %v3599_v44 = vpack.c.bf16 %v343_v39, %v340_v38  ;;  %v348_v46 = vld [vmem:[#allocation5 + $0x110] sm:$0xff]  ;;  %v346_v47 = vld [vmem:[#allocation5 + $0x100] sm:$0xff]  ;;  %p4228_p12 = pnand %p4227_p9, %p4221_p13 }
  0xaa   : > { %v345_v45 = vld [vmem:[#allocation5 + $0xf8] sm:$0xff]  ;;  %v3569_v49 = vpack.c.bf16 %v341_v43, %v338_v42  ;;  %v4569_v50 = vld [vmem:[%s4553_s28] sm:$0xff]  ;;  %v344_v52 = vld [vmem:[#allocation5 + $0xf0] sm:$0xff] }
  0xab   : > { %v349_v48 = vld [vmem:[#allocation5 + $0x118] sm:$0xff]  ;;  %v3571_v51 = vpack.c.bf16 %v348_v46, %v345_v45  ;;  %v347_v53 = vld [vmem:[#allocation5 + $0x108] sm:$0xff]  ;;  %v354_v56 = vld [vmem:[#allocation5 + $0x140] sm:$0xff]  ;;  %3303 = vmatprep.mubr.f32.mxu1 %v4569_v50 }
  0xac   : > { %3562 = vmatpush1.bf16.msra.mxu0 %v3561_v31  ;;  %3594 = vmatpush3.bf16.msra.mxu1 %v3591_v26  ;;  %v3603_v54 = vpack.c.bf16 %v349_v48, %v346_v47  ;;  %v351_v55 = vld [vmem:[#allocation5 + $0x128] sm:$0xff]  ;;  %v352_v57 = vld [vmem:[#allocation5 + $0x130] sm:$0xff]  ;;  %v3573_v59 = vpack.c.bf16 %v347_v53, %v344_v52  ;;  %v350_v61 = vld [vmem:[#allocation5 + $0x120] sm:$0xff] }
  0xad   : > { %3564 = vmatprep.subr.bf16.mxu0 %v3563_v32  ;;  %3596 = vmatprep.subr.bf16.mxu1 %v3595_v35  ;;  %v355_v58 = vld [vmem:[#allocation5 + $0x148] sm:$0xff]  ;;  %v3575_v60 = vpack.c.bf16 %v354_v56, %v351_v55  ;;  %v353_v62 = vld [vmem:[#allocation5 + $0x138] sm:$0xff]  ;;  %v360_v2 = vld [vmem:[#allocation5 + $0x170] sm:$0xff] }
  0xae   : > { %v3607_v63 = vpack.c.bf16 %v355_v58, %v352_v57  ;;  %v357_v1 = vld [vmem:[#allocation5 + $0x158] sm:$0xff]  ;;  %v358_v3 = vld [vmem:[#allocation5 + $0x160] sm:$0xff]  ;;  %v3577_v5 = vpack.c.bf16 %v353_v62, %v350_v61  ;;  %v356_v7 = vld [vmem:[#allocation5 + $0x150] sm:$0xff] }
  0xaf   : > { %v361_v4 = vld [vmem:[#allocation5 + $0x178] sm:$0xff]  ;;  %v3579_v6 = vpack.c.bf16 %v360_v2, %v357_v1  ;;  %v359_v8 = vld [vmem:[#allocation5 + $0x168] sm:$0xff]  ;;  %v671_v10 = vld [vmem:[#allocation5 + $0x190] sm:$0xff] }
  0xb0   : > { %3566 = vmatpush1.bf16.msra.mxu0 %v3565_v40  ;;  %3598 = vmatpush3.bf16.msra.mxu1 %v3595_v35  ;;  %v3611_v9 = vpack.c.bf16 %v361_v4, %v358_v3  ;;  %v674_v11 = vld [vmem:[#allocation5 + $0x1a8] sm:$0xff]  ;;  %v673_v13 = vld [vmem:[#allocation5 + $0x1a0] sm:$0xff]  ;;  %v3581_v14 = vpack.c.bf16 %v359_v8, %v356_v7  ;;  %v672_v18 = vld [vmem:[#allocation5 + $0x198] sm:$0xff] }
  0xb1   : > { %3568 = vmatprep.subr.bf16.mxu0 %v3567_v41  ;;  %3600 = vmatprep.subr.bf16.mxu1 %v3599_v44  ;;  %v670_v12 = vld [vmem:[#allocation5 + $0x188] sm:$0xff]  ;;  %v3647_v15 = vpack.c.bf16 %v674_v11, %v671_v10  ;;  %v669_v17 = vld [vmem:[#allocation5 + $0x180] sm:$0xff]  ;;  %v676_v19 = vld [vmem:[#allocation5 + $0x1b8] sm:$0xff] }
  0xb2   : > { %v3615_v16 = vpack.c.bf16 %v673_v13, %v670_v12  ;;  %v679_v20 = vld [vmem:[#allocation5 + $0x1d0] sm:$0xff]  ;;  %v677_v21 = vld [vmem:[#allocation5 + $0x1c0] sm:$0xff]  ;;  %v680_v22 = vld [vmem:[#allocation5 + $0x1d8] sm:$0xff]  ;;  %v3617_v24 = vpack.c.bf16 %v672_v18, %v669_v17 }
  0xb3   : > { %v4573_v23 = vld [vmem:[%s4553_s28 + $0x8] sm:$0xff]  ;;  %v4576_v25 = vld [vmem:[%s4553_s28 + $0x10] sm:$0xff]  ;;  %v3619_v26 = vpack.c.bf16 %v679_v20, %v676_v19  ;;  %v685_v30 = vld [vmem:[#allocation5 + $0x200] sm:$0xff]  ;;  %v3651_v31 = vpack.c.bf16 %v680_v22, %v677_v21 }
  0xb4   : > { %3570 = vmatpush1.bf16.msra.mxu0 %v3569_v49  ;;  %3602 = vmatpush3.bf16.msra.mxu1 %v3599_v44  ;;  %v675_v27 = vld [vmem:[#allocation5 + $0x1b0] sm:$0xff]  ;;  %v678_v28 = vld [vmem:[#allocation5 + $0x1c8] sm:$0xff]  ;;  %v4583_v34 = vld [vmem:[%s4553_s28 + $0x18] sm:$0xff] }
  0xb5   : > { %3572 = vmatprep.subr.bf16.mxu0 %v3571_v51  ;;  %3604 = vmatprep.subr.bf16.mxu1 %v3603_v54  ;;  %v682_v29 = vld [vmem:[#allocation5 + $0x1e8] sm:$0xff]  ;;  %v683_v32 = vld [vmem:[#allocation5 + $0x1f0] sm:$0xff]  ;;  %v3621_v35 = vpack.c.bf16 %v678_v28, %v675_v27  ;;  %v4586_v36 = vld [vmem:[%s4553_s28 + $0x20] sm:$0xff] }
  0xb6   : > { %v686_v33 = vld [vmem:[#allocation5 + $0x208] sm:$0xff]  ;;  %v3623_v37 = vpack.c.bf16 %v685_v30, %v682_v29  ;;  %v681_v38 = vld [vmem:[#allocation5 + $0x1e0] sm:$0xff]  ;;  %v684_v39 = vld [vmem:[#allocation5 + $0x1f8] sm:$0xff] }
  0xb7   : > { %v688_v40 = vld [vmem:[#allocation5 + $0x218] sm:$0xff]  ;;  %v691_v41 = vld [vmem:[#allocation5 + $0x230] sm:$0xff]  ;;  %v3655_v42 = vpack.c.bf16 %v686_v33, %v683_v32  ;;  %v689_v43 = vld [vmem:[#allocation5 + $0x220] sm:$0xff]  ;;  %v3625_v46 = vpack.c.bf16 %v684_v39, %v681_v38 }
  0xb8   : > { %3574 = vmatpush1.bf16.msra.mxu0 %v3573_v59  ;;  %3606 = vmatpush3.bf16.msra.mxu1 %v3603_v54  ;;  %v692_v44 = vld [vmem:[#allocation5 + $0x238] sm:$0xff]  ;;  %v4593_v45 = vld [vmem:[%s4553_s28 + $0x28] sm:$0xff]  ;;  %v4596_v47 = vld [vmem:[%s4553_s28 + $0x30] sm:$0xff]  ;;  %v3627_v48 = vpack.c.bf16 %v691_v41, %v688_v40 }
  0xb9   : > { %3576 = vmatprep.subr.bf16.mxu0 %v3575_v60  ;;  %3608 = vmatprep.subr.bf16.mxu1 %v3607_v63  ;;  %v687_v49 = vld [vmem:[#allocation5 + $0x210] sm:$0xff]  ;;  %v690_v51 = vld [vmem:[#allocation5 + $0x228] sm:$0xff]  ;;  %v697_v53 = vld [vmem:[#allocation5 + $0x260] sm:$0xff]  ;;  %v3659_v54 = vpack.c.bf16 %v692_v44, %v689_v43 }
  0xba   : > { %v694_v52 = vld [vmem:[#allocation5 + $0x248] sm:$0xff]  ;;  %v695_v55 = vld [vmem:[#allocation5 + $0x250] sm:$0xff]  ;;  %v4603_v57 = vld [vmem:[%s4553_s28 + $0x38] sm:$0xff]  ;;  %v3629_v58 = vpack.c.bf16 %v690_v51, %v687_v49 }
  0xbb   : > { %v698_v56 = vld [vmem:[#allocation5 + $0x268] sm:$0xff]  ;;  %v4606_v59 = vld [vmem:[%s4553_s28 + $0x40] sm:$0xff]  ;;  %v3631_v60 = vpack.c.bf16 %v697_v53, %v694_v52  ;;  %v696_v62 = vld [vmem:[#allocation5 + $0x258] sm:$0xff] }
  0xbc   : > { %3578 = vmatpush1.bf16.msra.mxu0 %v3577_v5  ;;  %3610 = vmatpush3.bf16.msra.mxu1 %v3607_v63  ;;  %v693_v61 = vld [vmem:[#allocation5 + $0x240] sm:$0xff]  ;;  %v700_v63 = vld [vmem:[#allocation5 + $0x278] sm:$0xff]  ;;  %v703_v1 = vld [vmem:[#allocation5 + $0x290] sm:$0xff]  ;;  %v3663_v2 = vpack.c.bf16 %v698_v56, %v695_v55 }
  0xbd   : > { %3580 = vmatprep.subr.bf16.mxu0 %v3579_v6  ;;  %3612 = vmatprep.subr.bf16.mxu1 %v3611_v9  ;;  %v701_v3 = vld [vmem:[#allocation5 + $0x280] sm:$0xff]  ;;  %v704_v4 = vld [vmem:[#allocation5 + $0x298] sm:$0xff]  ;;  %v4613_v5 = vld [vmem:[%s4553_s28 + $0x48] sm:$0xff]  ;;  %v3633_v6 = vpack.c.bf16 %v696_v62, %v693_v61  ;;  %v3635_v8 = vpack.c.bf16 %v703_v1, %v700_v63 }
  0xbe   : > { %v4616_v7 = vld [vmem:[%s4553_s28 + $0x50] sm:$0xff]  ;;  %v702_v10 = vld [vmem:[#allocation5 + $0x288] sm:$0xff]  ;;  %v709_v12 = vld [vmem:[#allocation5 + $0x2c0] sm:$0xff]  ;;  %v3667_v13 = vpack.c.bf16 %v704_v4, %v701_v3 }
  0xbf   : > { %v706_v11 = vld [vmem:[#allocation5 + $0x2a8] sm:$0xff]  ;;  %v4626_v18 = vld [vmem:[%s4553_s28 + $0x60] sm:$0xff]  ;;  %v708_v21 = vld [vmem:[#allocation5 + $0x2b8] sm:$0xff] }
  0xc0   : > { %3582 = vmatpush1.bf16.msra.mxu0 %v3581_v14  ;;  %3614 = vmatpush3.bf16.msra.mxu1 %v3611_v9  ;;  %v699_v9 = vld [vmem:[#allocation5 + $0x270] sm:$0xff]  ;;  %v3639_v19 = vpack.c.bf16 %v709_v12, %v706_v11  ;;  %v705_v20 = vld [vmem:[#allocation5 + $0x2a0] sm:$0xff]  ;;  %v712_v22 = vld [vmem:[#allocation5 + $0x2d8] sm:$0xff] }
  0xc1   : > { %3648 = vmatprep.subr.bf16.mxu0 %v3647_v15  ;;  %3616 = vmatprep.subr.bf16.mxu1 %v3615_v16  ;;  %v707_v14 = vld [vmem:[#allocation5 + $0x2b0] sm:$0xff]  ;;  %v4623_v16 = vld [vmem:[%s4553_s28 + $0x58] sm:$0xff]  ;;  %v3637_v17 = vpack.c.bf16 %v702_v10, %v699_v9  ;;  %v713_v27 = vld [vmem:[#allocation5 + $0x2e0] sm:$0xff]  ;;  %v3641_v30 = vpack.c.bf16 %v708_v21, %v705_v20 }
  0xc2   : > { %v716_v28 = vld [vmem:[#allocation5 + $0x2f8] sm:$0xff]  ;;  %v4633_v29 = vld [vmem:[%s4553_s28 + $0x68] sm:$0xff]  ;;  %v711_v33 = vld [vmem:[#allocation5 + $0x2d0] sm:$0xff] }
  0xc3   : > { %427 = vmatmul.mubr.f32.vlgmr.msra.gmra.mrb[0].mxu0 %v4569_v50  ;;  %3304 = vmatmul.mubr.f32.vlgmr.msra.gmra.mrb[0].mxu1 %v4573_v23  ;;  %v1077_v38 = vld [vmem:[#allocation5 + $0x328] sm:$0xff]  ;;  %v3675_v39 = vpack.c.bf16 %v716_v28, %v713_v27  ;;  %v1076_v41 = vld [vmem:[#allocation5 + $0x320] sm:$0xff]  ;;  %v1086_v52 = vld [vmem:[#allocation5 + $0x370] sm:$0xff] }
  0xc4   : > { %432 = vmatprep.mubr.f32.mxu0 %v4303_v0  ;;  %3618 = vmatpush1.bf16.msra.mxu1 %v3617_v24  ;;  %v715_v24 = vld [vmem:[#allocation5 + $0x2f0] sm:$0xff]  ;;  %v1073_v40 = vld [vmem:[#allocation5 + $0x308] sm:$0xff]  ;;  %v1092_v55 = vld [vmem:[#allocation5 + $0x3a0] sm:$0xff] }
  0xc5   : > { %3306 = vmatprep.mubr.f32.mxu1 %v4576_v25  ;;  %3650 = vmatpush3.bf16.msra.mxu0 %v3647_v15  ;;  %v710_v15 = vld [vmem:[#allocation5 + $0x2c8] sm:$0xff]  ;;  %v3643_v32 = vpack.c.bf16 %v715_v24, %v712_v22  ;;  %v3679_v49 = vpack.c.bf16 %v1076_v41, %v1073_v40  ;;  %v1095_v56 = vld [vmem:[#allocation5 + $0x3b8] sm:$0xff]  ;;  %v1104_v63 = vld [vmem:[#allocation5 + $0x400] sm:$0xff] }
  0xc6   : > { %3620 = vmatprep.subr.bf16.mxu1 %v3619_v26  ;;  %3652 = vmatprep.subr.bf16.mxu0 %v3651_v31  ;;  %v3671_v26 = vpack.c.bf16 %v710_v15, %v707_v14  ;;  %v1089_v53 = vld [vmem:[#allocation5 + $0x388] sm:$0xff]  ;;  %v1107_v1 = vld [vmem:[#allocation5 + $0x418] sm:$0xff]  ;;  %v1110_v3 = vld [vmem:[#allocation5 + $0x430] sm:$0xff] }
  0xc7   : > { %433 = vmatmul.mubr.f32.gmra.mrb[2].mxu0 %v4573_v23  ;;  %3307 = vmatmul.mubr.f32.gmra.mrb[2].mxu1 %v4583_v34  ;;  %v1101_v61 = vld [vmem:[#allocation5 + $0x3e8] sm:$0xff]  ;;  %v1119_v9 = vld [vmem:[#allocation5 + $0x478] sm:$0xff]  ;;  %v1479_v12 = vld [vmem:[#allocation5 + $0x4a0] sm:$0xff] }
  0xc8   : > { %438 = vmatprep.mubr.f32.mxu0 %v4303_v0  ;;  %3622 = vmatpush1.bf16.msra.mxu1 %v3621_v35  ;;  %v714_v35 = vld [vmem:[#allocation5 + $0x2e8] sm:$0xff]  ;;  %v1075_v14 = vld [vmem:[#allocation5 + $0x318] sm:$0xff]  ;;  %v1078_v21 = vld [vmem:[#allocation5 + $0x330] sm:$0xff] }
  0xc9   : > { %3309 = vmatprep.mubr.f32.mxu1 %v4586_v36  ;;  %3624 = vmatprep.subr.bf16.mxu1 %v3623_v37  ;;  %v1074_v37 = vld [vmem:[#allocation5 + $0x310] sm:$0xff]  ;;  %v3645_v43 = vpack.c.bf16 %v714_v35, %v711_v33  ;;  %v1113_v4 = vld [vmem:[#allocation5 + $0x448] sm:$0xff]  ;;  %v1088_v27 = vld [vmem:[#allocation5 + $0x380] sm:$0xff] }
  0xca   : > { %3654 = vmatpush3.bf16.msra.mxu0 %v3651_v31  ;;  %v4636_v31 = vld [vmem:[%s4553_s28 + $0x70] sm:$0xff]  ;;  %v3711_v44 = vpack.c.bf16 %v1077_v38, %v1074_v37  ;;  %v1476_v11 = vld [vmem:[#allocation5 + $0x488] sm:$0xff]  ;;  %v1091_v35 = vld [vmem:[#allocation5 + $0x398] sm:$0xff] }
  0xcb   : > { %439 = vmatmul.mubr.f32.gmra.mrb[4].mxu0 %v4576_v25  ;;  %3656 = vmatprep.subr.bf16.mxu0 %v3655_v42  ;;  %v3743_v15 = vpack.c.bf16 %v1479_v12, %v1476_v11  ;;  %v1081_v22 = vld [vmem:[#allocation5 + $0x348] sm:$0xff]  ;;  %v1094_v37 = vld [vmem:[#allocation5 + $0x3b0] sm:$0xff] }
  0xcc   : > { %3310 = vmatmul.mubr.f32.gmra.mrb[4].mxu1 %v4593_v45  ;;  %444 = vmatprep.mubr.f32.mxu0 %v4303_v0  ;;  %v3685_v28 = vpack.c.bf16 %v1081_v22, %v1078_v21  ;;  %v1093_v40 = vld [vmem:[#allocation5 + $0x3a8] sm:$0xff]  ;;  %v3691_v41 = vpack.c.bf16 %v1094_v37, %v1091_v35  ;;  %v1477_v11 = vld [vmem:[#allocation5 + $0x490] sm:$0xff]  ;;  %v1483_v21 = vld [vmem:[#allocation5 + $0x4c0] sm:$0xff] }
  0xcd   : > { %3626 = vmatpush1.bf16.msra.mxu1 %v3625_v46  ;;  %3312 = vmatprep.mubr.f32.mxu1 %v4596_v47  ;;  %v1080_v46 = vld [vmem:[#allocation5 + $0x340] sm:$0xff]  ;;  %v1480_v12 = vld [vmem:[#allocation5 + $0x4a8] sm:$0xff]  ;;  %v1486_v22 = vld [vmem:[#allocation5 + $0x4d8] sm:$0xff] }
  0xce   : > { %3628 = vmatprep.subr.bf16.mxu1 %v3627_v48  ;;  %3658 = vmatpush3.bf16.msra.mxu0 %v3655_v42  ;;  %v4643_v42 = vld [vmem:[%s4553_s28 + $0x78] sm:$0xff]  ;;  %v1489_v35 = vld [vmem:[#allocation5 + $0x4f0] sm:$0xff]  ;;  %v1492_v37 = vld [vmem:[#allocation5 + $0x508] sm:$0xff] }
  0xcf   : > { %445 = vmatmul.mubr.f32.gmra.mrb[6].mxu0 %v4583_v34  ;;  %3660 = vmatprep.subr.bf16.mxu0 %v3659_v54  ;;  %v1083_v48 = vld [vmem:[#allocation5 + $0x358] sm:$0xff] }
  0xd0   : > { %3313 = vmatmul.mubr.f32.gmra.mrb[6].mxu1 %v4603_v57  ;;  %450 = vmatprep.mubr.f32.mxu0 %v4303_v0  ;;  %v3715_v51 = vpack.c.bf16 %v1083_v48, %v1080_v46  ;;  %v1096_v48 = vld [vmem:[#allocation5 + $0x3c0] sm:$0xff] }
  0xd1   : > { %3630 = vmatpush1.bf16.msra.mxu1 %v3629_v58  ;;  %3315 = vmatprep.mubr.f32.mxu1 %v4606_v59  ;;  %v3723_v58 = vpack.c.bf16 %v1095_v56, %v1092_v55  ;;  %v1102_v55 = vld [vmem:[#allocation5 + $0x3f0] sm:$0xff]  ;;  %v1105_v56 = vld [vmem:[#allocation5 + $0x408] sm:$0xff] }
  0xd2   : > { %3632 = vmatprep.subr.bf16.mxu1 %v3631_v60  ;;  %3662 = vmatpush3.bf16.msra.mxu0 %v3659_v54  ;;  %v3719_v54 = vpack.c.bf16 %v1089_v53, %v1086_v52  ;;  %v1098_v60 = vld [vmem:[#allocation5 + $0x3d0] sm:$0xff]  ;;  %v1103_v52 = vld [vmem:[#allocation5 + $0x3f8] sm:$0xff] }
  0xd3   : > { %451 = vmatmul.mubr.f32.gmra.mrb[8].mxu0 %v4586_v36  ;;  %3664 = vmatprep.subr.bf16.mxu0 %v3663_v2  ;;  %v3727_v62 = vpack.c.bf16 %v1101_v61, %v1098_v60  ;;  %v1106_v53 = vld [vmem:[#allocation5 + $0x410] sm:$0xff]  ;;  %v1109_v60 = vld [vmem:[#allocation5 + $0x428] sm:$0xff]  ;;  %v1112_v61 = vld [vmem:[#allocation5 + $0x440] sm:$0xff] }
  0xd4   : > { %3316 = vmatmul.mubr.f32.gmra.mrb[8].mxu1 %v4613_v5  ;;  %456 = vmatprep.mubr.f32.mxu0 %v4303_v0 }
  0xd5   : > { %3634 = vmatpush1.bf16.msra.mxu1 %v3633_v6  ;;  %3318 = vmatprep.mubr.f32.mxu1 %v4616_v7  ;;  %v3735_v6 = vpack.c.bf16 %v1113_v4, %v1110_v3  ;;  %v1115_v3 = vld [vmem:[#allocation5 + $0x458] sm:$0xff]  ;;  %v1118_v4 = vld [vmem:[#allocation5 + $0x470] sm:$0xff] }
  0xd6   : > { %3636 = vmatprep.subr.bf16.mxu1 %v3635_v8  ;;  %3666 = vmatpush3.bf16.msra.mxu0 %v3663_v2  ;;  %v3731_v2 = vpack.c.bf16 %v1107_v1, %v1104_v63  ;;  %v1116_v8 = vld [vmem:[#allocation5 + $0x460] sm:$0xff]  ;;  %v1111_v1 = vld [vmem:[#allocation5 + $0x438] sm:$0xff] }
  0xd7   : > { %457 = vmatmul.mubr.f32.gmra.mrb[10].mxu0 %v4593_v45  ;;  %3668 = vmatprep.subr.bf16.mxu0 %v3667_v13  ;;  %v3739_v10 = vpack.c.bf16 %v1119_v9, %v1116_v8  ;;  %v1108_v63 = vld [vmem:[#allocation5 + $0x420] sm:$0xff]  ;;  %v1114_v8 = vld [vmem:[#allocation5 + $0x450] sm:$0xff]  ;;  %v1117_v9 = vld [vmem:[#allocation5 + $0x468] sm:$0xff] }
  0xd8   : > { %3319 = vmatmul.mubr.f32.gmra.mrb[10].mxu1 %v4623_v16  ;;  %462 = vmatprep.mubr.f32.mxu0 %v4303_v0 }
  0xd9   : > { %3638 = vmatpush1.bf16.msra.mxu1 %v3637_v17  ;;  %3321 = vmatprep.mubr.f32.mxu1 %v4626_v18  ;;  %v1079_v17 = vld [vmem:[#allocation5 + $0x338] sm:$0xff] }
  0xda   : > { %3640 = vmatprep.subr.bf16.mxu1 %v3639_v19  ;;  %3670 = vmatpush3.bf16.msra.mxu0 %v3667_v13  ;;  %v1072_v13 = vld [vmem:[#allocation5 + $0x300] sm:$0xff]  ;;  %v1082_v19 = vld [vmem:[#allocation5 + $0x350] sm:$0xff] }
  0xdb   : > { %463 = vmatmul.mubr.f32.gmra.mrb[12].mxu0 %v4596_v47  ;;  %3672 = vmatprep.subr.bf16.mxu0 %v3671_v26  ;;  %v3681_v20 = vpack.c.bf16 %v1075_v14, %v1072_v13  ;;  %v3683_v24 = vpack.c.bf16 %v1082_v19, %v1079_v17  ;;  %v3709_v13 = vpack.c.bf16 %v1117_v9, %v1114_v8  ;;  %v1475_v14 = vld [vmem:[#allocation5 + $0x480] sm:$0xff]  ;;  %v1482_v19 = vld [vmem:[#allocation5 + $0x4b8] sm:$0xff] }
  0xdc   : > { %3322 = vmatmul.mubr.f32.gmra.mrb[12].mxu1 %v4633_v29  ;;  %468 = vmatprep.mubr.f32.mxu0 %v4303_v0  ;;  %v3775_v17 = vpack.c.bf16 %v1480_v12, %v1477_v11  ;;  %v1507_v8 = vld [vmem:[#allocation5 + $0x580] sm:$0xff]  ;;  %v1510_v9 = vld [vmem:[#allocation5 + $0x598] sm:$0xff]  ;;  %v1505_v12 = vld [vmem:[#allocation5 + $0x570] sm:$0xff] }
  0xdd   : > { %3642 = vmatpush1.bf16.msra.mxu1 %v3641_v30  ;;  %3324 = vmatprep.mubr.f32.mxu1 %v4636_v31  ;;  %v1084_v30 = vld [vmem:[#allocation5 + $0x360] sm:$0xff] }
  0xde   : > { %3644 = vmatprep.subr.bf16.mxu1 %v3643_v32  ;;  %3674 = vmatpush3.bf16.msra.mxu0 %v3671_v26  ;;  %v1085_v26 = vld [vmem:[#allocation5 + $0x368] sm:$0xff]  ;;  %v1087_v32 = vld [vmem:[#allocation5 + $0x378] sm:$0xff] }
  0xdf   : > { %469 = vmatmul.mubr.f32.gmra.mrb[14].mxu0 %v4603_v57  ;;  %3676 = vmatprep.subr.bf16.mxu0 %v3675_v39  ;;  %v3687_v33 = vpack.c.bf16 %v1088_v27, %v1085_v26  ;;  %v3689_v38 = vpack.c.bf16 %v1087_v32, %v1084_v30  ;;  %v1481_v27 = vld [vmem:[#allocation5 + $0x4b0] sm:$0xff]  ;;  %v1488_v30 = vld [vmem:[#allocation5 + $0x4e8] sm:$0xff]  ;;  %v1491_v32 = vld [vmem:[#allocation5 + $0x500] sm:$0xff] }
  0xe0   : > { %3325 = vmatmul.mubr.f32.gmra.mrb[14].mxu1 %v4643_v42  ;;  %474 = vmatprep.mubr.f32.mxu0 %v4303_v0 }
  0xe1   : > { %3646 = vmatpush1.bf16.msra.mxu1 %v3645_v43  ;;  %781 = vmatprep.mubr.f32.mxu1 %v4303_v0  ;;  %v1097_v43 = vld [vmem:[#allocation5 + $0x3c8] sm:$0xff] }
  0xe2   : > { %3712 = vmatprep.subr.bf16.mxu1 %v3711_v44  ;;  %3678 = vmatpush3.bf16.msra.mxu0 %v3675_v39  ;;  %v1090_v39 = vld [vmem:[#allocation5 + $0x390] sm:$0xff] }
  0xe3   : > { %475 = vmatmul.mubr.f32.gmra.mrb[16].mxu0 %v4606_v59  ;;  %3680 = vmatprep.subr.bf16.mxu0 %v3679_v49  ;;  %v3693_v46 = vpack.c.bf16 %v1093_v40, %v1090_v39  ;;  %v1099_v49 = vld [vmem:[#allocation5 + $0x3d8] sm:$0xff]  ;;  %v3751_v39 = vpack.c.bf16 %v1491_v32, %v1488_v30  ;;  %v1487_v40 = vld [vmem:[#allocation5 + $0x4e0] sm:$0xff] }
  0xe4   : > { %782 = vmatmul.mubr.f32.vlgmr.msra.gmra.mrb[16].mxu1 %v4569_v50  ;;  %480 = vmatprep.mubr.f32.mxu0 %v4303_v0  ;;  %v1519_v32 = vld [vmem:[#allocation5 + $0x5e0] sm:$0xff] }
  0xe5   : > { %3714 = vmatpush3.bf16.msra.mxu1 %v3711_v44  ;;  %787 = vmatprep.mubr.f32.mxu1 %v4303_v0  ;;  %v1100_v44 = vld [vmem:[#allocation5 + $0x3e0] sm:$0xff] }
  0xe6   : > { %3716 = vmatprep.subr.bf16.mxu1 %v3715_v51 }
  0xe7   : > { %481 = vmatmul.mubr.f32.gmra.mrb[18].mxu0 %v4613_v5 }
  0xe8   : > { %788 = vmatmul.mubr.f32.gmra.mrb[18].mxu1 %v4573_v23  ;;  %486 = vmatprep.mubr.f32.mxu0 %v4303_v0 }
  0xe9   : > { %793 = vmatprep.mubr.f32.mxu1 %v4303_v0  ;;  %3718 = vmatpush3.bf16.msra.mxu1 %v3715_v51  ;;  %v3695_v51 = vpack.c.bf16 %v1100_v44, %v1097_v43  ;;  %v1494_v43 = vld [vmem:[#allocation5 + $0x518] sm:$0xff]  ;;  %v1497_v44 = vld [vmem:[#allocation5 + $0x530] sm:$0xff] }
  0xea   : > { %3720 = vmatprep.subr.bf16.mxu1 %v3719_v54 }
  0xeb   : > { %487 = vmatmul.mubr.f32.gmra.mrb[20].mxu0 %v4616_v7 }
  0xec   : > { %794 = vmatmul.mubr.f32.gmra.mrb[20].mxu1 %v4576_v25  ;;  %492 = vmatprep.mubr.f32.mxu0 %v4303_v0 }
  0xed   : > { %799 = vmatprep.mubr.f32.mxu1 %v4303_v0  ;;  %3722 = vmatpush3.bf16.msra.mxu1 %v3719_v54  ;;  %v3697_v54 = vpack.c.bf16 %v1099_v49, %v1096_v48  ;;  %v1495_v48 = vld [vmem:[#allocation5 + $0x520] sm:$0xff]  ;;  %v1498_v49 = vld [vmem:[#allocation5 + $0x538] sm:$0xff] }
  0xee   : > { %3724 = vmatprep.subr.bf16.mxu1 %v3723_v58 }
  0xef   : > { %493 = vmatmul.mubr.f32.gmra.mrb[22].mxu0 %v4623_v16 }
  0xf0   : > { %800 = vmatmul.mubr.f32.gmra.mrb[22].mxu1 %v4583_v34  ;;  %498 = vmatprep.mubr.f32.mxu0 %v4303_v0 }
  0xf1   : > { %805 = vmatprep.mubr.f32.mxu1 %v4303_v0  ;;  %3726 = vmatpush3.bf16.msra.mxu1 %v3723_v58  ;;  %v3699_v58 = vpack.c.bf16 %v1106_v53, %v1103_v52  ;;  %v3755_v52 = vpack.c.bf16 %v1497_v44, %v1494_v43  ;;  %v1493_v53 = vld [vmem:[#allocation5 + $0x510] sm:$0xff] }
  0xf2   : > { %3728 = vmatprep.subr.bf16.mxu1 %v3727_v62 }
  0xf3   : > { %499 = vmatmul.mubr.f32.gmra.mrb[24].mxu0 %v4626_v18 }
  0xf4   : > { %806 = vmatmul.mubr.f32.gmra.mrb[24].mxu1 %v4586_v36  ;;  %504 = vmatprep.mubr.f32.mxu0 %v4303_v0 }
  0xf5   : > { %811 = vmatprep.mubr.f32.mxu1 %v4303_v0  ;;  %3730 = vmatpush3.bf16.msra.mxu1 %v3727_v62  ;;  %v3701_v62 = vpack.c.bf16 %v1105_v56, %v1102_v55  ;;  %v1500_v55 = vld [vmem:[#allocation5 + $0x548] sm:$0xff]  ;;  %v1503_v56 = vld [vmem:[#allocation5 + $0x560] sm:$0xff] }
  0xf6   : > { %3732 = vmatprep.subr.bf16.mxu1 %v3731_v2 }
  0xf7   : > { %505 = vmatmul.mubr.f32.gmra.mrb[26].mxu0 %v4633_v29 }
  0xf8   : > { %812 = vmatmul.mubr.f32.gmra.mrb[26].mxu1 %v4593_v45  ;;  %510 = vmatprep.mubr.f32.mxu0 %v4303_v0 }
  0xf9   : > { %817 = vmatprep.mubr.f32.mxu1 %v4303_v0  ;;  %3734 = vmatpush3.bf16.msra.mxu1 %v3731_v2  ;;  %v3703_v2 = vpack.c.bf16 %v1112_v61, %v1109_v60  ;;  %v1501_v60 = vld [vmem:[#allocation5 + $0x550] sm:$0xff]  ;;  %v1504_v61 = vld [vmem:[#allocation5 + $0x568] sm:$0xff] }
  0xfa   : > { %3736 = vmatprep.subr.bf16.mxu1 %v3735_v6 }
  0xfb   : > { %511 = vmatmul.mubr.f32.gmra.mrb[28].mxu0 %v4636_v31 }
  0xfc   : > { %818 = vmatmul.mubr.f32.gmra.mrb[28].mxu1 %v4596_v47  ;;  %516 = vmatprep.mubr.f32.mxu0 %v4303_v0 }
  0xfd   : > { %823 = vmatprep.mubr.f32.mxu1 %v4303_v0  ;;  %3738 = vmatpush3.bf16.msra.mxu1 %v3735_v6  ;;  %v3705_v6 = vpack.c.bf16 %v1111_v1, %v1108_v63  ;;  %v3759_v63 = vpack.c.bf16 %v1503_v56, %v1500_v55  ;;  %v1499_v1 = vld [vmem:[#allocation5 + $0x540] sm:$0xff] }
  0xfe   : > { %3740 = vmatprep.subr.bf16.mxu1 %v3739_v10 }
  0xff   : > { %517 = vmatmul.mubr.f32.gmra.mrb[30].mxu0 %v4643_v42 }
 0x100   : > { %824 = vmatmul.mubr.f32.gmra.mrb[30].mxu1 %v4603_v57  ;;  %3359 = vmatprep.mubr.f32.mxu0 %v4569_v50 }
 0x101   : > { %829 = vmatprep.mubr.f32.mxu1 %v4303_v0  ;;  %3742 = vmatpush3.bf16.msra.mxu1 %v3739_v10  ;;  %v3707_v10 = vpack.c.bf16 %v1118_v4, %v1115_v3  ;;  %v1506_v3 = vld [vmem:[#allocation5 + $0x578] sm:$0xff]  ;;  %v1509_v4 = vld [vmem:[#allocation5 + $0x590] sm:$0xff] }
 0x102   : > { %3744 = vmatprep.subr.bf16.mxu1 %v3743_v15  ;;  %v1478_v15 = vld [vmem:[#allocation5 + $0x498] sm:$0xff]  ;;  %v3763_v11 = vpack.c.bf16 %v1509_v4, %v1506_v3 }
 0x103   : > { %3360 = vmatmul.mubr.f32.vlgmr.msra.gmra.mrb[32].mxu0 %v4573_v23  ;;  %v2333_v3 = vld [vmem:[#allocation8 + $0x38] sm:$0xff] }
 0x104   : > { %830 = vmatmul.mubr.f32.gmra.mrb[32].mxu1 %v4606_v59  ;;  %3682 = vmatpush1.bf16.msra.mxu0 %v3681_v20  ;;  %v1485_v20 = vld [vmem:[#allocation5 + $0x4d0] sm:$0xff] }
 0x105   : > { %835 = vmatprep.mubr.f32.mxu1 %v4303_v0  ;;  %3362 = vmatprep.mubr.f32.mxu0 %v4576_v25  ;;  %v3747_v26 = vpack.c.bf16 %v1485_v20, %v1482_v19  ;;  %v1513_v19 = vld [vmem:[#allocation5 + $0x5b0] sm:$0xff]  ;;  %v1516_v20 = vld [vmem:[#allocation5 + $0x5c8] sm:$0xff] }
 0x106   : > { %3684 = vmatprep.subr.bf16.mxu0 %v3683_v24  ;;  %v3745_v24 = vpack.c.bf16 %v1478_v15, %v1475_v14  ;;  %v1512_v14 = vld [vmem:[#allocation5 + $0x5a8] sm:$0xff]  ;;  %v1515_v15 = vld [vmem:[#allocation5 + $0x5c0] sm:$0xff]  ;;  %v3799_v30 = vpack.c.bf16 %v1516_v20, %v1513_v19 }
 0x107   : > { %3363 = vmatmul.mubr.f32.gmra.mrb[34].mxu0 %v4583_v34 }
 0x108   : > { %836 = vmatmul.mubr.f32.gmra.mrb[34].mxu1 %v4613_v5  ;;  %3686 = vmatpush1.bf16.msra.mxu0 %v3685_v28  ;;  %v1484_v28 = vld [vmem:[#allocation5 + $0x4c8] sm:$0xff] }
 0x109   : > { %841 = vmatprep.mubr.f32.mxu1 %v4303_v0  ;;  %3365 = vmatprep.mubr.f32.mxu0 %v4586_v36 }
 0x10a   : > { %3688 = vmatprep.subr.bf16.mxu0 %v3687_v33  ;;  %v3779_v33 = vpack.c.bf16 %v1486_v22, %v1483_v21  ;;  %v3767_v22 = vpack.c.bf16 %v1515_v15, %v1512_v14  ;;  %v2334_v14 = vld [vmem:[#allocation8 + $0x40] sm:$0xff]  ;;  %v2335_v15 = vld [vmem:[#allocation8 + $0x48] sm:$0xff] }
 0x10b   : > { %3366 = vmatmul.mubr.f32.gmra.mrb[36].mxu0 %v4593_v45  ;;  %v3825_v20 = vpack.c.bf16 %v2335_v15, %v2334_v14 }
 0x10c   : > { %842 = vmatmul.mubr.f32.gmra.mrb[36].mxu1 %v4616_v7  ;;  %3690 = vmatpush1.bf16.msra.mxu0 %v3689_v38  ;;  %v3749_v38 = vpack.c.bf16 %v1484_v28, %v1481_v27  ;;  %v1518_v27 = vld [vmem:[#allocation5 + $0x5d8] sm:$0xff]  ;;  %v1521_v28 = vld [vmem:[#allocation5 + $0x5f0] sm:$0xff] }
 0x10d   : > { %847 = vmatprep.mubr.f32.mxu1 %v4303_v0  ;;  %3368 = vmatprep.mubr.f32.mxu0 %v4596_v47 }
 0x10e   : > { %3692 = vmatprep.subr.bf16.mxu0 %v3691_v41  ;;  %v1490_v41 = vld [vmem:[#allocation5 + $0x4f8] sm:$0xff] }
 0x10f   : > { %3369 = vmatmul.mubr.f32.gmra.mrb[38].mxu0 %v4603_v57 }
 0x110   : > { %848 = vmatmul.mubr.f32.gmra.mrb[38].mxu1 %v4623_v16  ;;  %3694 = vmatpush1.bf16.msra.mxu0 %v3693_v46  ;;  %v3783_v46 = vpack.c.bf16 %v1492_v37, %v1489_v35  ;;  %v3771_v37 = vpack.c.bf16 %v1521_v28, %v1518_v27  ;;  %v2336_v28 = vld [vmem:[#allocation8 + $0x50] sm:$0xff] }
 0x111   : > { %853 = vmatprep.mubr.f32.mxu1 %v4303_v0  ;;  %3371 = vmatprep.mubr.f32.mxu0 %v4606_v59 }
 0x112   : > { %3696 = vmatprep.subr.bf16.mxu0 %v3695_v51  ;;  %v3753_v51 = vpack.c.bf16 %v1490_v41, %v1487_v40 }
 0x113   : > { %3372 = vmatmul.mubr.f32.gmra.mrb[40].mxu0 %v4613_v5 }
 0x114   : > { %854 = vmatmul.mubr.f32.gmra.mrb[40].mxu1 %v4626_v18  ;;  %3698 = vmatpush1.bf16.msra.mxu0 %v3697_v54  ;;  %v1496_v54 = vld [vmem:[#allocation5 + $0x528] sm:$0xff] }
 0x115   : > { %859 = vmatprep.mubr.f32.mxu1 %v4303_v0  ;;  %3374 = vmatprep.mubr.f32.mxu0 %v4616_v7 }
 0x116   : > { %3700 = vmatprep.subr.bf16.mxu0 %v3699_v58  ;;  %v3787_v58 = vpack.c.bf16 %v1498_v49, %v1495_v48  ;;  %v2346_v48 = vld [vmem:[#allocation8 + $0xa0] sm:$0xff]  ;;  %v2347_v49 = vld [vmem:[#allocation8 + $0xa8] sm:$0xff] }
 0x117   : > { %3375 = vmatmul.mubr.f32.gmra.mrb[42].mxu0 %v4623_v16 }
 0x118   : > { %860 = vmatmul.mubr.f32.gmra.mrb[42].mxu1 %v4633_v29  ;;  %3702 = vmatpush1.bf16.msra.mxu0 %v3701_v62  ;;  %v3757_v62 = vpack.c.bf16 %v1496_v54, %v1493_v53  ;;  %v2330_v53 = vld [vmem:[#allocation8 + $0x20] sm:$0xff]  ;;  %v2331_v54 = vld [vmem:[#allocation8 + $0x28] sm:$0xff] }
 0x119   : > { %865 = vmatprep.mubr.f32.mxu1 %v4303_v0  ;;  %3377 = vmatprep.mubr.f32.mxu0 %v4626_v18 }
 0x11a   : > { %3704 = vmatprep.subr.bf16.mxu0 %v3703_v2  ;;  %v1502_v2 = vld [vmem:[#allocation5 + $0x558] sm:$0xff] }
 0x11b   : > { %3378 = vmatmul.mubr.f32.gmra.mrb[44].mxu0 %v4633_v29 }
 0x11c   : > { %866 = vmatmul.mubr.f32.gmra.mrb[44].mxu1 %v4636_v31  ;;  %3706 = vmatpush1.bf16.msra.mxu0 %v3705_v6  ;;  %v3791_v6 = vpack.c.bf16 %v1504_v61, %v1501_v60  ;;  %v2348_v61 = vld [vmem:[#allocation8 + $0xb0] sm:$0xff] }
 0x11d   : > { %871 = vmatprep.mubr.f32.mxu1 %v4303_v0  ;;  %3380 = vmatprep.mubr.f32.mxu0 %v4636_v31 }
 0x11e   : > { %3708 = vmatprep.subr.bf16.mxu0 %v3707_v10  ;;  %v3761_v10 = vpack.c.bf16 %v1502_v2, %v1499_v1  ;;  %v2332_v2 = vld [vmem:[#allocation8 + $0x30] sm:$0xff] }
 0x11f   : > { %3381 = vmatmul.mubr.f32.gmra.mrb[46].mxu0 %v4643_v42 }
 0x120   : > { %872 = vmatmul.mubr.f32.gmra.mrb[46].mxu1 %v4643_v42  ;;  %3710 = vmatpush1.bf16.msra.mxu0 %v3709_v13  ;;  %v1508_v13 = vld [vmem:[#allocation5 + $0x588] sm:$0xff] }
 0x121   : > { %1184 = vmatprep.mubr.f32.mxu0 %v4303_v0  ;;  %3415 = vmatprep.mubr.f32.mxu1 %v4569_v50  ;;  %v3765_v21 = vpack.c.bf16 %v1508_v13, %v1505_v12 }
 0x122   : > { %3776 = vmatprep.subr.bf16.mxu0 %v3775_v17 }
 0x123   : > { %1185 = vmatmul.mubr.f32.vlgmr.msra.gmra.mrb[48].mxu0 %v4569_v50 }
 0x124   : > { %3416 = vmatmul.mubr.f32.vlgmr.msra.gmra.mrb[48].mxu1 %v4573_v23  ;;  %1190 = vmatprep.mubr.f32.mxu0 %v4303_v0 }
 0x125   : > { %3746 = vmatpush1.bf16.msra.mxu1 %v3745_v24  ;;  %3418 = vmatprep.mubr.f32.mxu1 %v4576_v25  ;;  %v1511_v24 = vld [vmem:[#allocation5 + $0x5a0] sm:$0xff] }
 0x126   : > { %3778 = vmatpush3.bf16.msra.mxu0 %v3775_v17  ;;  %3748 = vmatprep.subr.bf16.mxu1 %v3747_v26  ;;  %v3795_v17 = vpack.c.bf16 %v1510_v9, %v1507_v8  ;;  %v1514_v26 = vld [vmem:[#allocation5 + $0x5b8] sm:$0xff]  ;;  %v3821_v8 = vpack.c.bf16 %v2333_v3, %v2332_v2 }
 0x127   : > { %1191 = vmatmul.mubr.f32.gmra.mrb[50].mxu0 %v4573_v23  ;;  %3780 = vmatprep.subr.bf16.mxu0 %v3779_v33  ;;  %v3769_v35 = vpack.c.bf16 %v1514_v26, %v1511_v24  ;;  %v2353_v24 = vld [vmem:[#allocation8 + $0xd8] sm:$0xff]  ;;  %v2364_v3 = vld [vmem:[#allocation8 + $0x130] sm:$0xff] }
 0x128   : > { %3419 = vmatmul.mubr.f32.gmra.mrb[50].mxu1 %v4583_v34  ;;  %1196 = vmatprep.mubr.f32.mxu0 %v4303_v0 }
 0x129   : > { %3750 = vmatpush1.bf16.msra.mxu1 %v3749_v38  ;;  %3421 = vmatprep.mubr.f32.mxu1 %v4586_v36  ;;  %v1517_v38 = vld [vmem:[#allocation5 + $0x5d0] sm:$0xff] }
 0x12a   : > { %3752 = vmatprep.subr.bf16.mxu1 %v3751_v39  ;;  %3782 = vmatpush3.bf16.msra.mxu0 %v3779_v33  ;;  %v1522_v33 = vld [vmem:[#allocation5 + $0x5f8] sm:$0xff]  ;;  %v1520_v39 = vld [vmem:[#allocation5 + $0x5e8] sm:$0xff] }
 0x12b   : > { %1197 = vmatmul.mubr.f32.gmra.mrb[52].mxu0 %v4576_v25  ;;  %3784 = vmatprep.subr.bf16.mxu0 %v3783_v46  ;;  %v3803_v40 = vpack.c.bf16 %v1522_v33, %v1519_v32  ;;  %v3773_v41 = vpack.c.bf16 %v1520_v39, %v1517_v38  ;;  %v2354_v38 = vld [vmem:[#allocation8 + $0xe0] sm:$0xff]  ;;  %v2355_v39 = vld [vmem:[#allocation8 + $0xe8] sm:$0xff] }
 0x12c   : > { %3422 = vmatmul.mubr.f32.gmra.mrb[52].mxu1 %v4593_v45  ;;  %1202 = vmatprep.mubr.f32.mxu0 %v4303_v0 }
 0x12d   : > { %3754 = vmatpush1.bf16.msra.mxu1 %v3753_v51  ;;  %3424 = vmatprep.mubr.f32.mxu1 %v4596_v47 }
 0x12e   : > { %3756 = vmatprep.subr.bf16.mxu1 %v3755_v52  ;;  %3786 = vmatpush3.bf16.msra.mxu0 %v3783_v46  ;;  %v3815_v52 = vpack.c.bf16 %v2347_v49, %v2346_v48  ;;  %v2360_v48 = vld [vmem:[#allocation8 + $0x110] sm:$0xff]  ;;  %v2361_v49 = vld [vmem:[#allocation8 + $0x118] sm:$0xff] }
 0x12f   : > { %1203 = vmatmul.mubr.f32.gmra.mrb[54].mxu0 %v4583_v34  ;;  %3788 = vmatprep.subr.bf16.mxu0 %v3787_v58 }
 0x130   : > { %3425 = vmatmul.mubr.f32.gmra.mrb[54].mxu1 %v4603_v57  ;;  %1208 = vmatprep.mubr.f32.mxu0 %v4303_v0 }
 0x131   : > { %3758 = vmatpush1.bf16.msra.mxu1 %v3757_v62  ;;  %3427 = vmatprep.mubr.f32.mxu1 %v4606_v59  ;;  %v2349_v62 = vld [vmem:[#allocation8 + $0xb8] sm:$0xff] }
 0x132   : > { %3760 = vmatprep.subr.bf16.mxu1 %v3759_v63  ;;  %3790 = vmatpush3.bf16.msra.mxu0 %v3787_v58  ;;  %v3817_v58 = vpack.c.bf16 %v2331_v54, %v2330_v53  ;;  %v3819_v1 = vpack.c.bf16 %v2349_v62, %v2348_v61  ;;  %v3843_v53 = vpack.c.bf16 %v2361_v49, %v2360_v48  ;;  %v2363_v54 = vld [vmem:[#allocation8 + $0x128] sm:$0xff] }
 0x133   : > { %1209 = vmatmul.mubr.f32.gmra.mrb[56].mxu0 %v4586_v36  ;;  %3792 = vmatprep.subr.bf16.mxu0 %v3791_v6 }
 0x134   : > { %3428 = vmatmul.mubr.f32.gmra.mrb[56].mxu1 %v4613_v5  ;;  %1214 = vmatprep.mubr.f32.mxu0 %v4303_v0 }
 0x135   : > { %3762 = vmatpush1.bf16.msra.mxu1 %v3761_v10  ;;  %3430 = vmatprep.mubr.f32.mxu1 %v4616_v7  ;;  %v2350_v10 = vld [vmem:[#allocation8 + $0xc0] sm:$0xff] }
 0x136   : > { %3764 = vmatprep.subr.bf16.mxu1 %v3763_v11  ;;  %3794 = vmatpush3.bf16.msra.mxu0 %v3791_v6  ;;  %v2351_v11 = vld [vmem:[#allocation8 + $0xc8] sm:$0xff] }
 0x137   : > { %1215 = vmatmul.mubr.f32.gmra.mrb[58].mxu0 %v4593_v45  ;;  %3796 = vmatprep.subr.bf16.mxu0 %v3795_v17  ;;  %v3823_v13 = vpack.c.bf16 %v2351_v11, %v2350_v10 }
 0x138   : > { %3431 = vmatmul.mubr.f32.gmra.mrb[58].mxu1 %v4623_v16  ;;  %1220 = vmatprep.mubr.f32.mxu0 %v4303_v0 }
 0x139   : > { %3766 = vmatpush1.bf16.msra.mxu1 %v3765_v21  ;;  %3433 = vmatprep.mubr.f32.mxu1 %v4626_v18 }
 0x13a   : > { %3768 = vmatprep.subr.bf16.mxu1 %v3767_v22  ;;  %3798 = vmatpush3.bf16.msra.mxu0 %v3795_v17  ;;  %v2352_v22 = vld [vmem:[#allocation8 + $0xd0] sm:$0xff] }
 0x13b   : > { %1221 = vmatmul.mubr.f32.gmra.mrb[60].mxu0 %v4596_v47  ;;  %3800 = vmatprep.subr.bf16.mxu0 %v3799_v30  ;;  %v3827_v27 = vpack.c.bf16 %v2353_v24, %v2352_v22  ;;  %v2369_v22 = vld [vmem:[#allocation8 + $0x158] sm:$0xff] }
 0x13c   : > { %3434 = vmatmul.mubr.f32.gmra.mrb[60].mxu1 %v4633_v29  ;;  %1226 = vmatprep.mubr.f32.mxu0 %v4303_v0 }
 0x13d   : > { %3770 = vmatpush1.bf16.msra.mxu1 %v3769_v35  ;;  %3436 = vmatprep.mubr.f32.mxu1 %v4636_v31 }
 0x13e   : > { %3772 = vmatprep.subr.bf16.mxu1 %v3771_v37  ;;  %3802 = vmatpush3.bf16.msra.mxu0 %v3799_v30  ;;  %v2337_v30 = vld [vmem:[#allocation8 + $0x58] sm:$0xff] }
 0x13f   : > { %1227 = vmatmul.mubr.f32.gmra.mrb[62].mxu0 %v4603_v57  ;;  %3804 = vmatprep.subr.bf16.mxu0 %v3803_v40  ;;  %v3829_v35 = vpack.c.bf16 %v2337_v30, %v2336_v28 }
 0x140   : > { %3437 = vmatmul.mubr.f32.gmra.mrb[62].mxu1 %v4643_v42  ;;  %1232 = vmatprep.mubr.f32.mxu0 %v4303_v0 }
 0x141   : > { %3774 = vmatpush1.bf16.msra.mxu1 %v3773_v41  ;;  %1587 = vmatprep.mubr.f32.mxu1 %v4303_v0  ;;  %v3831_v41 = vpack.c.bf16 %v2355_v39, %v2354_v38 }
 0x142   : > { %3806 = vmatpush3.bf16.msra.mxu0 %v3803_v40 }
 0x143   : > { %1233 = vmatmul.mubr.f32.gmra.mrb[64].mxu0 %v4606_v59 }
 0x144   : > { %1588 = vmatmul.mubr.f32.vlgmr.msra.gmra.mrb[64].mxu1 %v4569_v50  ;;  %1238 = vmatprep.mubr.f32.mxu0 %v4303_v0  ;;  %v4075_v50 = vld [vmem:[%s4553_s28] sm:$0xff] }
 0x145   : > { %1593 = vmatprep.mubr.f32.mxu1 %v4303_v0 }
 0x147   : > { %1239 = vmatmul.mubr.f32.gmra.mrb[66].mxu0 %v4613_v5 }
 0x148   : > { %1594 = vmatmul.mubr.f32.gmra.mrb[66].mxu1 %v4573_v23  ;;  %1244 = vmatprep.mubr.f32.mxu0 %v4303_v0 }
 0x149   : > { %1599 = vmatprep.mubr.f32.mxu1 %v4303_v0 }
 0x14b   : > { %1245 = vmatmul.mubr.f32.gmra.mrb[68].mxu0 %v4616_v7 }
 0x14c   : > { %1600 = vmatmul.mubr.f32.gmra.mrb[68].mxu1 %v4576_v25  ;;  %1250 = vmatprep.mubr.f32.mxu0 %v4303_v0 }
 0x14d   : > { %1605 = vmatprep.mubr.f32.mxu1 %v4303_v0 }
 0x14f   : > { %1251 = vmatmul.mubr.f32.gmra.mrb[70].mxu0 %v4623_v16 }
 0x150   : > { %1606 = vmatmul.mubr.f32.gmra.mrb[70].mxu1 %v4583_v34  ;;  %1256 = vmatprep.mubr.f32.mxu0 %v4303_v0 }
 0x151   : > { %1611 = vmatprep.mubr.f32.mxu1 %v4303_v0 }
 0x153   : > { %1257 = vmatmul.mubr.f32.gmra.mrb[72].mxu0 %v4626_v18 }
 0x154   : > { %1612 = vmatmul.mubr.f32.gmra.mrb[72].mxu1 %v4586_v36  ;;  %1262 = vmatprep.mubr.f32.mxu0 %v4303_v0 }
 0x155   : > { %1617 = vmatprep.mubr.f32.mxu1 %v4303_v0 }
 0x157   : > { %1263 = vmatmul.mubr.f32.gmra.mrb[74].mxu0 %v4633_v29 }
 0x158   : > { %1618 = vmatmul.mubr.f32.gmra.mrb[74].mxu1 %v4593_v45  ;;  %1268 = vmatprep.mubr.f32.mxu0 %v4303_v0 }
 0x159   : > { %1623 = vmatprep.mubr.f32.mxu1 %v4303_v0 }
 0x15b   : > { %1269 = vmatmul.mubr.f32.gmra.mrb[76].mxu0 %v4636_v31 }
 0x15c   : > { %1624 = vmatmul.mubr.f32.gmra.mrb[76].mxu1 %v4596_v47  ;;  %1274 = vmatprep.mubr.f32.mxu0 %v4303_v0 }
 0x15d   : > { %1629 = vmatprep.mubr.f32.mxu1 %v4303_v0 }
 0x15f   : > { %1275 = vmatmul.mubr.f32.gmra.mrb[78].mxu0 %v4643_v42 }
 0x160   : > { %1630 = vmatmul.mubr.f32.gmra.mrb[78].mxu1 %v4603_v57  ;;  %3471 = vmatprep.mubr.f32.mxu0 %v4075_v50  ;;  %v2338_v50 = vld [vmem:[#allocation8 + $0x60] sm:$0xff] }
 0x161   : > { %1635 = vmatprep.mubr.f32.mxu1 %v4303_v0 }
 0x163   : > { %3472 = vmatmul.mubr.f32.vlgmr.msra.gmra.mrb[80].mxu0 %v4573_v23  ;;  %v2342_v23 = vld [vmem:[#allocation8 + $0x80] sm:$0xff] }
 0x164   : > { %1636 = vmatmul.mubr.f32.gmra.mrb[80].mxu1 %v4606_v59  ;;  %3474 = vmatprep.mubr.f32.mxu0 %v4576_v25  ;;  %v2343_v25 = vld [vmem:[#allocation8 + $0x88] sm:$0xff] }
 0x165   : > { %1641 = vmatprep.mubr.f32.mxu1 %v4303_v0 }
 0x167   : > { %3475 = vmatmul.mubr.f32.gmra.mrb[82].mxu0 %v4583_v34  ;;  %v3807_v34 = vpack.c.bf16 %v2343_v25, %v2342_v23  ;;  %v2339_v23 = vld [vmem:[#allocation8 + $0x68] sm:$0xff] }
 0x168   : > { %1642 = vmatmul.mubr.f32.gmra.mrb[82].mxu1 %v4613_v5  ;;  %3477 = vmatprep.mubr.f32.mxu0 %v4586_v36  ;;  %v2326_v36 = vld [vmem:[#allocation8] sm:$0xff] }
 0x169   : > { %1647 = vmatprep.mubr.f32.mxu1 %v4303_v0  ;;  %3808 = vmatprep.subr.bf16.mxu0 %v3807_v34 }
 0x16b   : > { %3478 = vmatmul.mubr.f32.gmra.mrb[84].mxu0 %v4593_v45  ;;  %v2327_v45 = vld [vmem:[#allocation8 + $0x8] sm:$0xff] }
 0x16c   : > { %1648 = vmatmul.mubr.f32.gmra.mrb[84].mxu1 %v4616_v7  ;;  %3480 = vmatprep.mubr.f32.mxu0 %v4596_v47  ;;  %v3809_v47 = vpack.c.bf16 %v2327_v45, %v2326_v36  ;;  %v3833_v36 = vpack.c.bf16 %v2339_v23, %v2338_v50  ;;  %v2367_v50 = vld [vmem:[#allocation8 + $0x148] sm:$0xff] }
 0x16d   : > { %1653 = vmatprep.mubr.f32.mxu1 %v4303_v0 }
 0x16e   : > { %3810 = vmatpush3.bf16.msra.mxu0 %v3809_v47  ;;  %v2356_v47 = vld [vmem:[#allocation8 + $0xf0] sm:$0xff] }
 0x16f   : > { %3481 = vmatmul.mubr.f32.gmra.mrb[86].mxu0 %v4603_v57  ;;  %v2358_v57 = vld [vmem:[#allocation8 + $0x100] sm:$0xff] }
 0x170   : > { %1654 = vmatmul.mubr.f32.gmra.mrb[86].mxu1 %v4623_v16  ;;  %3483 = vmatprep.mubr.f32.mxu0 %v4606_v59  ;;  %v2359_v59 = vld [vmem:[#allocation8 + $0x108] sm:$0xff] }
 0x171   : > { %1659 = vmatprep.mubr.f32.mxu1 %v4303_v0 }
 0x173   : > { %3484 = vmatmul.mubr.f32.gmra.mrb[88].mxu0 %v4613_v5  ;;  %v2344_v5 = vld [vmem:[#allocation8 + $0x90] sm:$0xff] }
 0x174   : > { %1660 = vmatmul.mubr.f32.gmra.mrb[88].mxu1 %v4626_v18  ;;  %3486 = vmatprep.mubr.f32.mxu0 %v4616_v7 }
 0x175   : > { %1665 = vmatprep.mubr.f32.mxu1 %v4303_v0 }
 0x177   : > { %3487 = vmatmul.mubr.f32.gmra.mrb[90].mxu0 %v4623_v16  ;;  %v3839_v16 = vpack.c.bf16 %v2359_v59, %v2358_v57  ;;  %v2357_v57 = vld [vmem:[#allocation8 + $0xf8] sm:$0xff] }
 0x178   : > { %1666 = vmatmul.mubr.f32.gmra.mrb[90].mxu1 %v4633_v29  ;;  %3489 = vmatprep.mubr.f32.mxu0 %v4626_v18  ;;  %v2345_v18 = vld [vmem:[#allocation8 + $0x98] sm:$0xff] }
 0x179   : > { %1671 = vmatprep.mubr.f32.mxu1 %v4303_v0  ;;  %v3811_v43 = vpack.c.bf16 %v2345_v18, %v2344_v5  ;;  %3840 = vmatprep.subr.bf16.mxu1 %v3839_v16  ;;  %v3835_v5 = vpack.c.bf16 %v2357_v57, %v2356_v47  ;;  %v2341_v18 = vld [vmem:[#allocation8 + $0x78] sm:$0xff] }
 0x17a   : > { %3842 = vmatpush3.bf16.msra.mxu1 %v3839_v16  ;;  %v2340_v16 = vld [vmem:[#allocation8 + $0x70] sm:$0xff] }
 0x17b   : > { %3490 = vmatmul.mubr.f32.gmra.mrb[92].mxu0 %v4633_v29  ;;  %v2329_v29 = vld [vmem:[#allocation8 + $0x18] sm:$0xff]  ;;  %3812 = vmatprep.subr.bf16.mxu0 %v3811_v43  ;;  %v3837_v43 = vpack.c.bf16 %v2341_v18, %v2340_v16 }
 0x17c   : > { %1672 = vmatmul.mubr.f32.gmra.mrb[92].mxu1 %v4636_v31  ;;  %3492 = vmatprep.mubr.f32.mxu0 %v4636_v31 }
 0x17d   : > { %1677 = vmatprep.mubr.f32.mxu1 %v4303_v0  ;;  %v2328_v0 = vld [vmem:[#allocation8 + $0x10] sm:$0xff]  ;;  %3844 = vmatprep.subr.bf16.mxu1 %v3843_v53 }
 0x17e   : > { %v3813_v44 = vpack.c.bf16 %v2329_v29, %v2328_v0  ;;  %3846 = vmatpush3.bf16.msra.mxu1 %v3843_v53 }
 0x17f   : > { %3493 = vmatmul.mubr.f32.gmra.mrb[94].mxu0 %v4643_v42 }
 0x180   : > { %1678 = vmatmul.mubr.f32.gmra.mrb[94].mxu1 %v4643_v42  ;;  %3814 = vmatpush3.bf16.msra.mxu0 %v3813_v44 }
 0x181   : > { %3816 = vmatprep.subr.bf16.mxu0 %v3815_v52  ;;  %v2362_v52 = vld [vmem:[#allocation8 + $0x120] sm:$0xff] }
 0x182   : > { %v3847_v61 = vpack.c.bf16 %v2363_v54, %v2362_v52 }
 0x184   : > { %3818 = vmatpush3.bf16.msra.mxu0 %v3817_v58  ;;  %3848 = vmatprep.subr.bf16.mxu1 %v3847_v61 }
 0x185   : > { %3820 = vmatprep.subr.bf16.mxu0 %v3819_v1  ;;  %3850 = vmatpush3.bf16.msra.mxu1 %v3847_v61 }
 0x188   : > { %3822 = vmatpush3.bf16.msra.mxu0 %v3821_v8  ;;  %v2365_v8 = vld [vmem:[#allocation8 + $0x138] sm:$0xff] }
 0x189   : > { %3824 = vmatprep.subr.bf16.mxu0 %v3823_v13  ;;  %v3851_v11 = vpack.c.bf16 %v2365_v8, %v2364_v3 }
 0x18b   : > { %3852 = vmatprep.subr.bf16.mxu1 %v3851_v11 }
 0x18c   : > { %3826 = vmatpush3.bf16.msra.mxu0 %v3825_v20  ;;  %3854 = vmatpush3.bf16.msra.mxu1 %v3851_v11 }
 0x18d   : > { %3828 = vmatprep.subr.bf16.mxu0 %v3827_v27 }
 0x190   : > { %3830 = vmatpush3.bf16.msra.mxu0 %v3829_v35 }
 0x191   : > { %3832 = vmatprep.subr.bf16.mxu0 %v3831_v41  ;;  %v2366_v41 = vld [vmem:[#allocation8 + $0x140] sm:$0xff] }
 0x192   : > { %v3855_v47 = vpack.c.bf16 %v2367_v50, %v2366_v41  ;;  %v2368_v41 = vld [vmem:[#allocation8 + $0x150] sm:$0xff] }
 0x194   : > { %3834 = vmatpush3.bf16.msra.mxu0 %v3833_v36  ;;  %3856 = vmatprep.subr.bf16.mxu1 %v3855_v47 }
 0x195   : > { %3836 = vmatprep.subr.bf16.mxu0 %v3835_v5  ;;  %3858 = vmatpush3.bf16.msra.mxu1 %v3855_v47 }
 0x196   : > { %v4807_v7 = vpop.f32.mrb[0].mxu0  ;;  %v4809_v31 = vpop.f32.mrb[0].mxu1 }
 0x197   : > { %v4811_v42 = vpop.f32.mrb[1].mxu0  ;;  %v4813_v46 = vpop.f32.mrb[1].mxu1 }
 0x198   : > { %3838 = vmatpush3.bf16.msra.mxu0 %v3837_v43 }
 0x19a   : > { %v4815_v51 = vpop.f32.mrb[2].mxu0  ;;  %v4817_v55 = vpop.f32.mrb[2].mxu1 }
 0x19b   : > { %v4819_v56 = vpop.f32.mrb[3].mxu0  ;;  %v4821_v60 = vpop.f32.mrb[3].mxu1 }
 0x19e   : > { %v4823_v63 = vpop.f32.mrb[4].mxu0 }
 0x19f   : > { %v4825_v4 = vpop.f32.mrb[4].mxu1  ;;  %v4827_v6 = vpop.f32.mrb[5].mxu0 }
 0x1a0   : > { %v4829_v9 = vpop.f32.mrb[5].mxu1 }
 0x1a2   : > { %v4831_v12 = vpop.f32.mrb[6].mxu0 }
 0x1a3   : > { %v4833_v17 = vpop.f32.mrb[6].mxu1  ;;  %v4835_v19 = vpop.f32.mrb[7].mxu0 }
 0x1a4   : > { %v4837_v21 = vpop.f32.mrb[7].mxu1 }
 0x1a6   : > { %v4839_v26 = vpop.f32.mrb[8].mxu0 }
 0x1a7   : > { %v4841_v32 = vpop.f32.mrb[8].mxu1  ;;  %v4843_v33 = vpop.f32.mrb[9].mxu0 }
 0x1a8   : > { %6072 = vst [vmem:[#allocation16_spill] sm:$0xff] %v4843_v33  ;;  %v4845_v37 = vpop.f32.mrb[9].mxu1  ;;  %v3859_v33 = vpack.c.bf16 %v2369_v22, %v2368_v41 }
 0x1aa   : > { %v4847_v40 = vpop.f32.mrb[10].mxu0  ;;  %3860 = vmatprep.subr.bf16.mxu1 %v3859_v33 }
 0x1ab   : > { %6073 = vst [vmem:[#allocation17_spill] sm:$0xff] %v4847_v40  ;;  %v4849_v25 = vpop.f32.mrb[10].mxu1  ;;  %v4851_v34 = vpop.f32.mrb[11].mxu0  ;;  %3862 = vmatpush3.bf16.msra.mxu1 %v3859_v33 }
 0x1ac   : > { %6074 = vst [vmem:[#allocation18_spill] sm:$0xff] %v4851_v34  ;;  %v4853_v45 = vpop.f32.mrb[11].mxu1 }
 0x1ae   : > { %v4855_v59 = vpop.f32.mrb[12].mxu0 }
 0x1af   : > { %6075 = vst [vmem:[#allocation19_spill] sm:$0xff] %v4855_v59  ;;  %v4857_v0 = vpop.f32.mrb[12].mxu1  ;;  %v4859_v29 = vpop.f32.mrb[13].mxu0 }
 0x1b0   : > { %6076 = vst [vmem:[#allocation20_spill] sm:$0xff] %v4859_v29  ;;  %v4861_v44 = vpop.f32.mrb[13].mxu1 }
 0x1b2   : > { %v4863_v58 = vpop.f32.mrb[14].mxu0 }
 0x1b3   : > { %6077 = vst [vmem:[#allocation21_spill] sm:$0xff] %v4863_v58  ;;  %v4865_v62 = vpop.f32.mrb[14].mxu1  ;;  %v4867_v1 = vpop.f32.mrb[15].mxu0 }
 0x1b4   : > { %6078 = vst [vmem:[#allocation22_spill] sm:$0xff] %v4867_v1  ;;  %v4869_v2 = vpop.f32.mrb[15].mxu1  ;;  %v2371_v1 = vld [vmem:[#allocation8 + $0x168] sm:$0xff] }
 0x1b6   : > { %v4871_v10 = vpop.f32.mrb[16].mxu0 }
 0x1b7   : > { %v4873_v13 = vpop.f32.mrb[16].mxu1  ;;  %v4875_v14 = vpop.f32.mrb[17].mxu0 }
 0x1b8   : > { %6079 = vst [vmem:[#allocation23_spill] sm:$0xff] %v4875_v14  ;;  %v4879_v20 = vpop.f32.mrb[17].mxu1 }
 0x1ba   : > { %v4883_v24 = vpop.f32.mrb[18].mxu0 }
 0x1bb   : > { %6080 = vst [vmem:[#allocation24_spill] sm:$0xff] %v4883_v24  ;;  %v4885_v27 = vpop.f32.mrb[18].mxu1  ;;  %v4887_v28 = vpop.f32.mrb[19].mxu0 }
 0x1bc   : > { %6081 = vst [vmem:[#allocation25_spill] sm:$0xff] %v4887_v28  ;;  %v4891_v35 = vpop.f32.mrb[19].mxu1 }
 0x1be   : > { %v4895_v39 = vpop.f32.mrb[20].mxu0 }
 0x1bf   : > { %6082 = vst [vmem:[#allocation26_spill] sm:$0xff] %v4895_v39  ;;  %v4897_v23 = vpop.f32.mrb[20].mxu1  ;;  %v4899_v36 = vpop.f32.mrb[21].mxu0 }
 0x1c0   : > { %6083 = vst [vmem:[#allocation27_spill] sm:$0xff] %v4899_v36  ;;  %v4903_v5 = vpop.f32.mrb[21].mxu1 }
 0x1c2   : > { %v4907_v18 = vpop.f32.mrb[22].mxu0 }
 0x1c3   : > { %6084 = vst [vmem:[#allocation28_spill] sm:$0xff] %v4907_v18  ;;  %v4909_v43 = vpop.f32.mrb[22].mxu1  ;;  %v4911_v48 = vpop.f32.mrb[23].mxu0  ;;  %v2373_v18 = vld [vmem:[#allocation8 + $0x178] sm:$0xff] }
 0x1c4   : > { %6085 = vst [vmem:[#allocation29_spill] sm:$0xff] %v4911_v48  ;;  %v4915_v52 = vpop.f32.mrb[23].mxu1  ;;  %v2372_v48 = vld [vmem:[#allocation8 + $0x170] sm:$0xff] }
 0x1c5   : > { %v3867_v33 = vpack.c.bf16 %v2373_v18, %v2372_v48 }
 0x1c6   : > { %v4919_v54 = vpop.f32.mrb[24].mxu0 }
 0x1c7   : > { %6086 = vst [vmem:[#allocation30_spill] sm:$0xff] %v4919_v54  ;;  %v4921_v61 = vpop.f32.mrb[24].mxu1  ;;  %v4923_v3 = vpop.f32.mrb[25].mxu0 }
 0x1c8   : > { %6087 = vst [vmem:[#allocation31_spill] sm:$0xff] %v4923_v3  ;;  %v4927_v11 = vpop.f32.mrb[25].mxu1 }
 0x1c9   : > { %6088 = vst [vmem:[#allocation32_spill] sm:$0xff] %v4927_v11 }
 0x1ca   : > { %v4931_v50 = vpop.f32.mrb[26].mxu0 }
 0x1cb   : > { %6089 = vst [vmem:[#allocation33_spill] sm:$0xff] %v4931_v50  ;;  %v4933_v47 = vpop.f32.mrb[26].mxu1  ;;  %v4935_v49 = vpop.f32.mrb[27].mxu0 }
 0x1cc   : > { %6090 = vst [vmem:[#allocation34_spill] sm:$0xff] %v4933_v47  ;;  %6091 = vst [vmem:[#allocation35_spill] sm:$0xff] %v4935_v49  ;;  %v4939_v16 = vpop.f32.mrb[27].mxu1 }
 0x1cd   : > { %6092 = vst [vmem:[#allocation36_spill] sm:$0xff] %v4939_v16 }
 0x1ce   : > { %v4943_v8 = vpop.f32.mrb[28].mxu0 }
 0x1cf   : > { %6093 = vst [vmem:[#allocation37_spill] sm:$0xff] %v4943_v8  ;;  %v4945_v38 = vpop.f32.mrb[28].mxu1  ;;  %v4947_v30 = vpop.f32.mrb[29].mxu0 }
 0x1d0   : > { %6094 = vst [vmem:[#allocation38_spill] sm:$0xff] %v4945_v38  ;;  %6095 = vst [vmem:[#allocation39_spill] sm:$0xff] %v4947_v30  ;;  %v4951_v11 = vpop.f32.mrb[29].mxu1  ;;  %v6116_v30 = vmax.f32 %v4807_v7, %v4873_v13  ;;  %v6120_v13 = vmax.f32 %v4815_v51, %v4885_v27  ;;  %v6124_v27 = vmax.f32 %v4823_v63, %v4897_v23 }
 0x1d1   : > { %6096 = vst [vmem:[#allocation40_spill] sm:$0xff] %v4951_v11  ;;  %v6128_v23 = vmax.f32 %v4831_v12, %v4909_v43  ;;  %v6132_v43 = vmax.f32 %v4839_v26, %v4921_v61  ;;  %v1879_v61 = vlaneseq }
 0x1d2   : > { %v4955_v47 = vpop.f32.mrb[30].mxu0 }
 0x1d3   : > { %6097 = vst [vmem:[#allocation41_spill] sm:$0xff] %v4955_v47  ;;  %v4957_v57 = vpop.f32.mrb[30].mxu1  ;;  %v4959_v16 = vpop.f32.mrb[31].mxu0 }
 0x1d4   : > { %6098 = vst [vmem:[#allocation42_spill] sm:$0xff] %v4957_v57  ;;  %v4963_v40 = vpop.f32.mrb[31].mxu1 }
 0x1d5   : > { %6099 = vst [vmem:[#allocation43_spill] sm:$0xff] %v4963_v40  ;;  %v2370_v40 = vld [vmem:[#allocation8 + $0x160] sm:$0xff] }
 0x1d6   : > { %v4967_v22 = vpop.f32.mrb[32].mxu0  ;;  %v3863_v58 = vpack.c.bf16 %v2371_v1, %v2370_v40 }
 0x1d7   : > { %v4969_v41 = vpop.f32.mrb[32].mxu1  ;;  %v4973_v11 = vpop.f32.mrb[33].mxu0  ;;  %v6117_v50 = vmax.f32 %v4809_v31, %v4967_v22 }
 0x1d8   : > { %6100 = vst [vmem:[#allocation44_spill] sm:$0xff] %v4969_v41  ;;  %v4977_v29 = vpop.f32.mrb[33].mxu1  ;;  %3864 = vmatprep.subr.bf16.mxu1 %v3863_v58  ;;  %v6119_v15 = vmax.f32 %v4813_v46, %v4973_v11 }
 0x1d9   : > { %6101 = vst [vmem:[#allocation45_spill] sm:$0xff] %v4977_v29  ;;  %3866 = vmatpush3.bf16.msra.mxu1 %v3863_v58 }
 0x1da   : > { %v4983_v57 = vpop.f32.mrb[34].mxu0  ;;  %3868 = vmatprep.subr.bf16.mxu1 %v3867_v33 }
 0x1db   : > { %v4985_v38 = vpop.f32.mrb[34].mxu1  ;;  %v4989_v59 = vpop.f32.mrb[35].mxu0 }
 0x1dc   : > { %6102 = vst [vmem:[#allocation46_spill] sm:$0xff] %v4985_v38  ;;  %v4993_v41 = vpop.f32.mrb[35].mxu1 }
 0x1dd   : > { %6103 = vst [vmem:[#allocation47_spill] sm:$0xff] %v4993_v41  ;;  %3870 = vmatpush3.bf16.msra.mxu1 %v3867_v33 }
 0x1de   : > { %v4999_v40 = vpop.f32.mrb[36].mxu0 }
 0x1df   : > { %v5001_v1 = vpop.f32.mrb[36].mxu1  ;;  %v5005_v29 = vpop.f32.mrb[37].mxu0  ;;  %v6125_v22 = vmax.f32 %v4825_v4, %v4999_v40 }
 0x1e0   : > { %6104 = vst [vmem:[#allocation48_spill] sm:$0xff] %v5001_v1  ;;  %v5009_v38 = vpop.f32.mrb[37].mxu1 }
 0x1e1   : > { %6105 = vst [vmem:[#allocation49_spill] sm:$0xff] %v5009_v38 }
 0x1e2   : > { %v5015_v34 = vpop.f32.mrb[38].mxu0 }
 0x1e3   : > { %v5017_v41 = vpop.f32.mrb[38].mxu1  ;;  %v5021_v28 = vpop.f32.mrb[39].mxu0 }
 0x1e4   : > { %6106 = vst [vmem:[#allocation50_spill] sm:$0xff] %v5017_v41  ;;  %v5025_v1 = vpop.f32.mrb[39].mxu1 }
 0x1e5   : > { %6107 = vst [vmem:[#allocation51_spill] sm:$0xff] %v5025_v1 }
 0x1e6   : > { %v5031_v38 = vpop.f32.mrb[40].mxu0 }
 0x1e7   : > { %v5033_v36 = vpop.f32.mrb[40].mxu1  ;;  %v5037_v39 = vpop.f32.mrb[41].mxu0 }
 0x1e8   : > { %6108 = vst [vmem:[#allocation52_spill] sm:$0xff] %v5033_v36  ;;  %v5041_v41 = vpop.f32.mrb[41].mxu1 }
 0x1e9   : > { %6109 = vst [vmem:[#allocation53_spill] sm:$0xff] %v5041_v41 }
 0x1ea   : > { %v5047_v1 = vpop.f32.mrb[42].mxu0 }
 0x1eb   : > { %v5049_v24 = vpop.f32.mrb[42].mxu1  ;;  %v5053_v14 = vpop.f32.mrb[43].mxu0 }
 0x1ec   : > { %6110 = vst [vmem:[#allocation54_spill] sm:$0xff] %v5049_v24  ;;  %v5057_v54 = vpop.f32.mrb[43].mxu1 }
 0x1ed   : > { %6111 = vst [vmem:[#allocation55_spill] sm:$0xff] %v5057_v54 }
 0x1ee   : > { %v5063_v41 = vpop.f32.mrb[44].mxu0 }
 0x1ef   : > { %v5065_v3 = vpop.f32.mrb[44].mxu1  ;;  %v5069_v48 = vpop.f32.mrb[45].mxu0 }
 0x1f0   : > { %6112 = vst [vmem:[#allocation56_spill] sm:$0xff] %v5065_v3  ;;  %v5073_v53 = vpop.f32.mrb[45].mxu1 }
 0x1f1   : > { %6113 = vst [vmem:[#allocation57_spill] sm:$0xff] %v5073_v53 }
 0x1f2   : > { %v5079_v54 = vpop.f32.mrb[46].mxu0 }
 0x1f3   : > { %v5081_v33 = vpop.f32.mrb[46].mxu1  ;;  %v5085_v49 = vpop.f32.mrb[47].mxu0 }
 0x1f4   : > { %6114 = vst [vmem:[#allocation58_spill] sm:$0xff] %v5081_v33  ;;  %v5089_v3 = vpop.f32.mrb[47].mxu1  ;;  %v6118_v33 = vmax.f32 %v4811_v42, %v4879_v20  ;;  %v6122_v20 = vmax.f32 %v4819_v56, %v4891_v35  ;;  %v6126_v35 = vmax.f32 %v4827_v6, %v4903_v5  ;;  %v6130_v5 = vmax.f32 %v4835_v19, %v4915_v52  ;;  %v6134_v52 = vld [vmem:[#allocation16_spill] sm:$0xff] }
 0x1f5   : > { %6115 = vst [vmem:[#allocation59_spill] sm:$0xff] %v5089_v3 }
 0x1f6   : > { %v1186_v53 = vpop.f32.mrb[48].mxu0 }
 0x1f7   : > { %v5098_v8 = vmax.f32 %v6116_v30, %v1186_v53  ;;  %v3417_v18 = vpop.f32.mrb[48].mxu1  ;;  %v1188_v24 = vpop.f32.mrb[49].mxu0 }
 0x1f8   : > { %v5103_v36 = vmax.f32 %v6117_v50, %v3417_v18  ;;  %v5108_v58 = vmax.f32 %v6118_v33, %v1188_v24  ;;  %v1347_v47 = vpop.f32.mrb[49].mxu1  ;;  %v6121_v50 = vmax.f32 %v4817_v55, %v4983_v57 }
 0x1f9   : > { %v5113_v3 = vmax.f32 %v6119_v15, %v1347_v47  ;;  %v6123_v15 = vmax.f32 %v4821_v60, %v4989_v59  ;;  %v6127_v59 = vmax.f32 %v4829_v9, %v5005_v29  ;;  %v6131_v29 = vmax.f32 %v4837_v21, %v5021_v28 }
 0x1fa   : > { %v1192_v7 = vpop.f32.mrb[50].mxu0  ;;  %v6137_v28 = vmax.f32 %v4845_v37, %v5037_v39 }
 0x1fb   : > { %v5118_v30 = vmax.f32 %v6120_v13, %v1192_v7  ;;  %v3420_v31 = vpop.f32.mrb[50].mxu1  ;;  %v1194_v53 = vpop.f32.mrb[51].mxu0  ;;  %v6129_v13 = vmax.f32 %v4833_v17, %v5015_v34 }
 0x1fc   : > { %v5123_v42 = vmax.f32 %v6121_v50, %v3420_v31  ;;  %v5128_v24 = vmax.f32 %v6122_v20, %v1194_v53  ;;  %v1357_v46 = vpop.f32.mrb[51].mxu1  ;;  %v6133_v20 = vmax.f32 %v4841_v32, %v5031_v38 }
 0x1fd   : > { %v5133_v11 = vmax.f32 %v6123_v15, %v1357_v46  ;;  %v6135_v46 = vld [vmem:[#allocation32_spill] sm:$0xff] }
 0x1fe   : > { %v1198_v51 = vpop.f32.mrb[52].mxu0  ;;  %v6136_v15 = vmax.f32 %v6134_v52, %v6135_v46  ;;  %v6153_v52 = vld [vmem:[#allocation20_spill] sm:$0xff] }
 0x1ff   : > { %v5138_v47 = vmax.f32 %v6124_v27, %v1198_v51  ;;  %v3423_v55 = vpop.f32.mrb[52].mxu1  ;;  %v1200_v57 = vpop.f32.mrb[53].mxu0  ;;  %v6154_v46 = vld [vmem:[#allocation40_spill] sm:$0xff] }
 0x200   : > { %v5143_v56 = vmax.f32 %v6125_v22, %v3423_v55  ;;  %v5148_v18 = vmax.f32 %v6126_v35, %v1200_v57  ;;  %v1367_v60 = vpop.f32.mrb[53].mxu1  ;;  %v6138_v55 = vld [vmem:[#allocation17_spill] sm:$0xff]  ;;  %v6139_v57 = vld [vmem:[#allocation34_spill] sm:$0xff] }
 0x201   : > { %v5153_v33 = vmax.f32 %v6127_v59, %v1367_v60  ;;  %v6140_v22 = vmax.f32 %v6138_v55, %v6139_v57  ;;  %v6141_v60 = vmax.f32 %v4849_v25, %v5047_v1  ;;  %v6158_v55 = vld [vmem:[#allocation21_spill] sm:$0xff]  ;;  %v6159_v57 = vld [vmem:[#allocation42_spill] sm:$0xff] }
 0x202   : > { %v1204_v63 = vpop.f32.mrb[54].mxu0 }
 0x203   : > { %v5158_v7 = vmax.f32 %v6128_v23, %v1204_v63  ;;  %v3426_v4 = vpop.f32.mrb[54].mxu1  ;;  %v1206_v40 = vpop.f32.mrb[55].mxu0  ;;  %v6143_v63 = vld [vmem:[#allocation18_spill] sm:$0xff]  ;;  %v6144_v23 = vld [vmem:[#allocation36_spill] sm:$0xff] }
 0x204   : > { %v5163_v6 = vmax.f32 %v6129_v13, %v3426_v4  ;;  %v5168_v31 = vmax.f32 %v6130_v5, %v1206_v40  ;;  %v1377_v9 = vpop.f32.mrb[55].mxu1  ;;  %v6145_v4 = vmax.f32 %v6143_v63, %v6144_v23  ;;  %v6146_v40 = vmax.f32 %v4853_v45, %v5053_v14  ;;  %v6164_v23 = vld [vmem:[#allocation43_spill] sm:$0xff] }
 0x205   : > { %v5173_v53 = vmax.f32 %v6131_v29, %v1377_v9  ;;  %v5215_v9 = vshrl.u32 %v1879_v61, 7  ;;  %v6148_v29 = vld [vmem:[#allocation19_spill] sm:$0xff]  ;;  %v6155_v45 = vmax.f32 %v6153_v52, %v6154_v46  ;;  %v6161_v63 = vmax.f32 %v4865_v62, %v5079_v54 }
 0x206   : > { %v1210_v12 = vpop.f32.mrb[56].mxu0 }
 0x207   : > { %v5178_v50 = vmax.f32 %v6132_v43, %v1210_v12  ;;  %v3429_v17 = vpop.f32.mrb[56].mxu1  ;;  %v1212_v34 = vpop.f32.mrb[57].mxu0  ;;  %v6149_v12 = vld [vmem:[#allocation38_spill] sm:$0xff]  ;;  %v1881_v61 = vsub.s32 0, %v5215_v9 }
 0x208   : > { %v5183_v19 = vmax.f32 %v6133_v20, %v3429_v17  ;;  %v5188_v51 = vmax.f32 %v6136_v15, %v1212_v34  ;;  %v1387_v21 = vpop.f32.mrb[57].mxu1  ;;  %v6150_v43 = vmax.f32 %v6148_v29, %v6149_v12  ;;  %v6151_v34 = vmax.f32 %v4857_v0, %v5063_v41 }
 0x209   : > { %v5193_v27 = vmax.f32 %v6137_v28, %v1387_v21  ;;  %v6156_v21 = vmax.f32 %v4861_v44, %v5069_v48  ;;  %v6163_v48 = vld [vmem:[#allocation22_spill] sm:$0xff] }
 0x20a   : > { %v1216_v26 = vpop.f32.mrb[58].mxu0 }
 0x20b   : > { %v5198_v35 = vmax.f32 %v6140_v22, %v1216_v26  ;;  %v3432_v32 = vpop.f32.mrb[58].mxu1  ;;  %v1218_v38 = vpop.f32.mrb[59].mxu0  ;;  %v6160_v22 = vmax.f32 %v6158_v55, %v6159_v57  ;;  %v6173_v57 = vld [vmem:[#allocation24_spill] sm:$0xff] }
 0x20c   : > { %v5203_v59 = vmax.f32 %v6141_v60, %v3432_v32  ;;  %v5208_v37 = vmax.f32 %v6145_v4, %v1218_v38  ;;  %v1397_v39 = vpop.f32.mrb[59].mxu1  ;;  %v5243_v38 = vld [vmem:[#allocation7] sm:$0x7]  ;;  %v1885_v60 = vsub.s32 1, %v5215_v9  ;;  %v6165_v4 = vmax.f32 %v6163_v48, %v6164_v23 }
 0x20d   : > { %v5213_v13 = vmax.f32 %v6146_v40, %v1397_v39  ;;  %v6176_v23 = vld [vmem:[#allocation25_spill] sm:$0xff] }
 0x20e   : > { %6142 = vst [vmem:[#allocation16_spill] sm:$0xff] %v5203_v59  ;;  %v1222_v5 = vpop.f32.mrb[60].mxu0  ;;  %v5270_v52 = vrot.slane %v5243_v38, %v1885_v60  ;;  %v6213_v59 = vld [vmem:[#allocation58_spill] sm:$0xff] }
 0x20f   : > { %6147 = vst [vmem:[#allocation32_spill] sm:$0xff] %v5213_v13  ;;  %v5220_v25 = vmax.f32 %v6150_v43, %v1222_v5  ;;  %v3435_v1 = vpop.f32.mrb[60].mxu1  ;;  %v1224_v17 = vpop.f32.mrb[61].mxu0  ;;  %v6166_v5 = vmax.f32 %v4869_v2, %v5085_v49  ;;  %v5262_v43 = vrot.slane %v5243_v38, %v1881_v61  ;;  %v6171_v2 = vld [vmem:[#allocation45_spill] sm:$0xff] }
 0x210   : > { %v5225_v20 = vmax.f32 %v6151_v34, %v3435_v1  ;;  %v5230_v14 = vmax.f32 %v6155_v45, %v1224_v17  ;;  %v1407_v15 = vpop.f32.mrb[61].mxu1  ;;  %v6168_v1 = vld [vmem:[#allocation44_spill] sm:$0xff]  ;;  %v6170_v45 = vld [vmem:[#allocation23_spill] sm:$0xff] }
 0x211   : > { %v5235_v28 = vmax.f32 %v6156_v21, %v1407_v15  ;;  %v6169_v62 = vmax.f32 %v4871_v10, %v6168_v1  ;;  %v6172_v49 = vmax.f32 %v6170_v45, %v6171_v2  ;;  %v6180_v2 = vld [vmem:[#allocation48_spill] sm:$0xff] }
 0x212   : > { %6152 = vst [vmem:[#allocation17_spill] sm:$0xff] %v5225_v20  ;;  %v1228_v26 = vpop.f32.mrb[62].mxu0 }
 0x213   : > { %6157 = vst [vmem:[#allocation34_spill] sm:$0xff] %v5235_v28  ;;  %v5241_v0 = vmax.f32 %v6160_v22, %v1228_v26  ;;  %v3438_v41 = vpop.f32.mrb[62].mxu1  ;;  %v1230_v32 = vpop.f32.mrb[63].mxu0  ;;  %v6174_v22 = vld [vmem:[#allocation46_spill] sm:$0xff] }
 0x214   : > { %v5249_v44 = vmax.f32 %v6161_v63, %v3438_v41  ;;  %v5254_v39 = vmax.f32 %v6165_v4, %v1230_v32  ;;  %v1417_v40 = vpop.f32.mrb[63].mxu1  ;;  %v6175_v41 = vmax.f32 %v6173_v57, %v6174_v22  ;;  %v6182_v22 = vld [vmem:[#allocation27_spill] sm:$0xff] }
 0x215   : > { %v5259_v29 = vmax.f32 %v6166_v5, %v1417_v40 }
 0x216   : > { %6162 = vst [vmem:[#allocation18_spill] sm:$0xff] %v5249_v44  ;;  %v1234_v12 = vpop.f32.mrb[64].mxu0 }
 0x217   : > { %6167 = vst [vmem:[#allocation36_spill] sm:$0xff] %v5259_v29  ;;  %v5267_v54 = vmax.f32 %v6169_v62, %v1234_v12  ;;  %v1589_v17 = vpop.f32.mrb[64].mxu1  ;;  %v1236_v34 = vpop.f32.mrb[65].mxu0 }
 0x218   : > { %v1829_v46 = vmax.f32 %v5098_v8, %v1589_v17  ;;  %v5276_v15 = vmax.f32 %v6172_v49, %v1236_v34  ;;  %v1591_v21 = vpop.f32.mrb[65].mxu1 }
 0x219   : > { %v1830_v26 = vmax.f32 %v5108_v58, %v1591_v21  ;;  %v6177_v58 = vld [vmem:[#allocation47_spill] sm:$0xff] }
 0x21a   : > { %v5280_v61 = vadd.f32 %v5262_v43, %v1829_v46  ;;  %v1240_v10 = vpop.f32.mrb[66].mxu0  ;;  %v6178_v4 = vmax.f32 %v6176_v23, %v6177_v58 }
 0x21b   : > { %v5283_v55 = vadd.f32 %v5270_v52, %v1830_v26  ;;  %v5288_v32 = vmax.f32 %v6175_v41, %v1240_v10  ;;  %v1595_v8 = vpop.f32.mrb[66].mxu1  ;;  %v1242_v60 = vpop.f32.mrb[67].mxu0  ;;  %v6183_v41 = vld [vmem:[#allocation49_spill] sm:$0xff] }
 0x21c   : > { %v1990_v63 = vmin.f32 %v5280_v61, 0.0  ;;  %v1832_v48 = vmax.f32 %v5118_v30, %v1595_v8  ;;  %v5295_v40 = vmax.f32 %v6178_v4, %v1242_v60  ;;  %v1597_v5 = vpop.f32.mrb[67].mxu1  ;;  %v6179_v30 = vld [vmem:[#allocation26_spill] sm:$0xff]  ;;  %v6184_v8 = vmax.f32 %v6182_v22, %v6183_v41 }
 0x21d   : > { %v1991_v12 = vmin.f32 %v5283_v55, 0.0  ;;  %v1833_v1 = vmax.f32 %v5128_v24, %v1597_v5  ;;  %v6181_v49 = vmax.f32 %v6179_v30, %v6180_v2  ;;  %vm1942_vm0 = vcmp.gt.f32.partialorder %v5280_v61, 0.0 }
 0x21e   : > { %v2038_v62 = vmul.f32 1.442695, %v1990_v63  ;;  %v5300_v17 = vadd.f32 %v5262_v43, %v1832_v48  ;;  %v1246_v34 = vpop.f32.mrb[68].mxu0  ;;  %vm1943_vm1 = vcmp.gt.f32.partialorder %v5283_v55, 0.0 }
 0x21f   : > { %v2040_v46 = vmul.f32 1.442695, %v1991_v12  ;;  %v5303_v45 = vadd.f32 %v5270_v52, %v1833_v1  ;;  %v5308_v21 = vmax.f32 %v6181_v49, %v1246_v34  ;;  %v1601_v26 = vpop.f32.mrb[68].mxu1  ;;  %v1248_v10 = vpop.f32.mrb[69].mxu0 }
 0x220   : > { %3963 = vpow2.f32 %v2038_v62  ;;  %v1993_v57 = vmin.f32 %v5300_v17, 0.0  ;;  %v1835_v24 = vmax.f32 %v5138_v47, %v1601_v26  ;;  %v5315_v60 = vmax.f32 %v6184_v8, %v1248_v10  ;;  %v1603_v63 = vpop.f32.mrb[69].mxu1  ;;  %v6185_v47 = vld [vmem:[#allocation28_spill] sm:$0xff]  ;;  %v6186_v62 = vld [vmem:[#allocation50_spill] sm:$0xff]  ;;  %v6188_v26 = vld [vmem:[#allocation29_spill] sm:$0xff] }
 0x221   : > { %3965 = vpow2.f32 %v2040_v46  ;;  %v1994_v48 = vmin.f32 %v5303_v45, 0.0  ;;  %v1836_v23 = vmax.f32 %v5148_v18, %v1603_v63  ;;  %v6187_v34 = vmax.f32 %v6185_v47, %v6186_v62  ;;  %v6189_v10 = vld [vmem:[#allocation51_spill] sm:$0xff]  ;;  %v6191_v47 = vld [vmem:[#allocation30_spill] sm:$0xff]  ;;  %v6192_v62 = vld [vmem:[#allocation52_spill] sm:$0xff] }
 0x222   : > { %v5320_v58 = vadd.f32 %v5262_v43, %v1835_v24  ;;  %v1252_v4 = vpop.f32.mrb[70].mxu0  ;;  %v2044_v5 = vmul.f32 1.442695, %v1993_v57  ;;  %v6190_v24 = vmax.f32 %v6188_v26, %v6189_v10  ;;  %v6194_v26 = vld [vmem:[#allocation31_spill] sm:$0xff]  ;;  %v6195_v10 = vld [vmem:[#allocation53_spill] sm:$0xff]  ;;  %vm1946_vm2 = vcmp.gt.f32.partialorder %v5303_v45, 0.0 }
 0x223   : > { %v2046_v12 = vmul.f32 1.442695, %v1994_v48  ;;  %v5323_v1 = vadd.f32 %v5270_v52, %v1836_v23  ;;  %v5328_v30 = vmax.f32 %v6187_v34, %v1252_v4  ;;  %v1607_v2 = vpop.f32.mrb[70].mxu1  ;;  %v1254_v46 = vpop.f32.mrb[71].mxu0  ;;  %v1889_v23 = vsub.s32 2, %v5215_v9 }
 0x224   : > { %v1996_v49 = vmin.f32 %v5320_v58, 0.0  ;;  %v1838_v18 = vmax.f32 %v5158_v7, %v1607_v2  ;;  %v5335_v22 = vmax.f32 %v6190_v24, %v1254_v46  ;;  %v1609_v57 = vpop.f32.mrb[71].mxu1  ;;  %v6193_v34 = vmax.f32 %v6191_v47, %v6192_v62 }
 0x225   : > { %3967 = vpow2.f32 %v2046_v12  ;;  %v1997_v41 = vmin.f32 %v5323_v1, 0.0  ;;  %v1839_v8 = vmax.f32 %v5168_v31, %v1609_v57  ;;  %v6196_v24 = vmax.f32 %v6194_v26, %v6195_v10  ;;  %v6197_v26 = vld [vmem:[#allocation33_spill] sm:$0xff]  ;;  %v6198_v10 = vld [vmem:[#allocation54_spill] sm:$0xff] }
 0x226   : > { %v5340_v63 = vadd.f32 %v5262_v43, %v1838_v18  ;;  %v1258_v48 = vpop.f32.mrb[72].mxu0  ;;  %3969 = vpow2.f32 %v2044_v5  ;;  %v2050_v4 = vmul.f32 1.442695, %v1996_v49  ;;  %vm1945_vm3 = vcmp.gt.f32.partialorder %v5300_v17, 0.0 }
 0x227   : > { %v5344_v7 = vadd.f32 %v5270_v52, %v1839_v8  ;;  %v5349_v2 = vmax.f32 %v6193_v34, %v1258_v48  ;;  %v1613_v12 = vpop.f32.mrb[72].mxu1  ;;  %v1260_v46 = vpop.f32.mrb[73].mxu0  ;;  %v2052_v49 = vmul.f32 1.442695, %v1997_v41  ;;  %vm1949_vm4 = vcmp.gt.f32.partialorder %v5323_v1, 0.0 }
 0x228   : > { %v1999_v31 = vmin.f32 %v5340_v63, 0.0  ;;  %v1841_v18 = vmax.f32 %v5178_v50, %v1613_v12  ;;  %v5356_v9 = vmax.f32 %v6196_v24, %v1260_v46  ;;  %v1615_v5 = vpop.f32.mrb[73].mxu1  ;;  %v5365_v50 = vrot.slane %v5243_v38, %v1889_v23  ;;  %v6201_v38 = vld [vmem:[#allocation35_spill] sm:$0xff] }
 0x229   : > { %v2000_v57 = vmin.f32 %v5344_v7, 0.0  ;;  %v1842_v8 = vmax.f32 %v5188_v51, %v1615_v5  ;;  %3971 = vpow2.f32 %v2050_v4  ;;  %v6199_v51 = vmax.f32 %v6197_v26, %v6198_v10  ;;  %v6202_v23 = vld [vmem:[#allocation55_spill] sm:$0xff] }
 0x22a   : > { %v3964_v47 = vpop.eup %3963  ;;  %v2056_v48 = vmul.f32 1.442695, %v1999_v31  ;;  %v5362_v62 = vadd.f32 %v5262_v43, %v1841_v18  ;;  %v1264_v34 = vpop.f32.mrb[74].mxu0  ;;  %v6203_v28 = vmax.f32 %v6201_v38, %v6202_v23  ;;  %3973 = vpow2.f32 %v2052_v49 }
 0x22b   : > { %v3966_v12 = vpop.eup %3965  ;;  %v2969_v46 = vadd.f32 -1.0, %v3964_v47  ;;  %v5368_v41 = vadd.f32 %v5270_v52, %v1842_v8  ;;  %v5373_v24 = vmax.f32 %v6199_v51, %v1264_v34  ;;  %v1619_v5 = vpop.f32.mrb[74].mxu1  ;;  %v2058_v29 = vmul.f32 1.442695, %v2000_v57 }
 0x22c   : > { %v1266_v31 = vpop.f32.mrb[75].mxu0  ;;  %v2002_v18 = vmin.f32 %v5362_v62, 0.0  ;;  %v1844_v44 = vmax.f32 %v5198_v35, %v1619_v5  ;;  %v1621_v4 = vpop.f32.mrb[75].mxu1  ;;  %3975 = vpow2.f32 %v2056_v48  ;;  %v2970_v35 = vadd.f32 -1.0, %v3966_v12  ;;  %v6206_v5 = vld [vmem:[#allocation56_spill] sm:$0xff] }
 0x22d   : > { %6200 = vst [vmem:[#allocation19_spill] sm:$0xff] %v5373_v24  ;;  %v5380_v47 = vmax.f32 %v6203_v28, %v1266_v31  ;;  %v2182_v8 = vmul.f32 1.6732632, %v2969_v46  ;;  %v2003_v20 = vmin.f32 %v5368_v41, 0.0  ;;  %v1845_v34 = vmax.f32 %v5208_v37, %v1621_v4  ;;  %v6205_v46 = vld [vmem:[#allocation37_spill] sm:$0xff] }
 0x22e   : > { %v5385_v26 = vadd.f32 %v5262_v43, %v1844_v44  ;;  %v1270_v57 = vpop.f32.mrb[76].mxu0  ;;  %v2062_v51 = vmul.f32 1.442695, %v2002_v18  ;;  %v6207_v37 = vmax.f32 %v6205_v46, %v6206_v5  ;;  %3977 = vpow2.f32 %v2058_v29 }
 0x22f   : > { %6204 = vst [vmem:[#allocation38_spill] sm:$0xff] %v5380_v47  ;;  %v3968_v10 = vpop.eup %3967  ;;  %v2230_v28 = vsel %vm1942_vm0, %v5280_v61, %v2182_v8  ;;  %v5392_v49 = vadd.f32 %v5270_v52, %v1845_v34  ;;  %v1625_v44 = vpop.f32.mrb[76].mxu1  ;;  %v2064_v18 = vmul.f32 1.442695, %v2003_v20  ;;  %v6209_v8 = vld [vmem:[#allocation39_spill] sm:$0xff]  ;;  %v6210_v34 = vld [vmem:[#allocation57_spill] sm:$0xff] }
 0x230   : > { %v5397_v48 = vmax.f32 %v6207_v37, %v1270_v57  ;;  %v1272_v31 = vpop.f32.mrb[77].mxu0  ;;  %v2005_v38 = vmin.f32 %v5385_v26, 0.0  ;;  %v1847_v12 = vmax.f32 %v5220_v25, %v1625_v44  ;;  %v1627_v23 = vpop.f32.mrb[77].mxu1  ;;  %v6211_v13 = vmax.f32 %v6209_v8, %v6210_v34  ;;  %v6212_v47 = vld [vmem:[#allocation41_spill] sm:$0xff] }
 0x231   : > { %v3970_v61 = vpop.eup %3969  ;;  %v2006_v4 = vmin.f32 %v5392_v49, 0.0  ;;  %v1848_v57 = vmax.f32 %v5230_v14, %v1627_v23  ;;  %v2278_v5 = vmul.f32 1.050701, %v2230_v28  ;;  %v2183_v25 = vmul.f32 1.6732632, %v2970_v35 }
 0x232   : > { %6208 = vst [vmem:[#allocation20_spill] sm:$0xff] %v5397_v48  ;;  %v5406_v46 = vmax.f32 %v6211_v13, %v1272_v31  ;;  %v5410_v29 = vadd.f32 %v5262_v43, %v1847_v12  ;;  %v1276_v37 = vpop.f32.mrb[78].mxu0  ;;  %v2973_v44 = vadd.f32 -1.0, %v3968_v10  ;;  %3979 = vpow2.f32 %v2062_v51 }
 0x233   : > { %v2068_v48 = vmul.f32 1.442695, %v2005_v38  ;;  %v5413_v20 = vadd.f32 %v5270_v52, %v1848_v57  ;;  %v6214_v24 = vmax.f32 %v6212_v47, %v6213_v59  ;;  %v1631_v13 = vpop.f32.mrb[78].mxu1  ;;  %v1278_v31 = vpop.f32.mrb[79].mxu0  ;;  %v2231_v35 = vsel %vm1943_vm1, %v5283_v55, %v2183_v25  ;;  %v6216_v47 = vld [vmem:[#allocation59_spill] sm:$0xff] }
 0x234   : > { %v2008_v14 = vmin.f32 %v5410_v29, 0.0  ;;  %v1850_v28 = vmax.f32 %v5241_v0, %v1631_v13  ;;  %v1633_v10 = vpop.f32.mrb[79].mxu1  ;;  %v2972_v51 = vadd.f32 -1.0, %v3970_v61  ;;  %v5426_v38 = vpop.eup %3971  ;;  %v2070_v12 = vmul.f32 1.442695, %v2006_v4 }
 0x235   : > { %v5418_v8 = vmax.f32 %v6214_v24, %v1276_v37  ;;  %v2009_v59 = vmin.f32 %v5413_v20, 0.0  ;;  %v2279_v24 = vmul.f32 1.050701, %v2231_v35  ;;  %v6217_v23 = vmax.f32 %v4959_v16, %v6216_v47  ;;  %v3974_v61 = vpop.eup %3973 }
 0x236   : > { %3981 = vpow2.f32 %v2064_v18  ;;  %v5435_v0 = vadd.f32 %v5262_v43, %v1850_v28  ;;  %v1851_v57 = vmax.f32 %v5254_v39, %v1633_v10  ;;  %v3473_v55 = vpop.f32.mrb[80].mxu0  ;;  %v2186_v37 = vmul.f32 1.6732632, %v2973_v44  ;;  %v5439_v16 = vpop.eup %3975 }
 0x237   : > { %6215 = vst [vmem:[#allocation40_spill] sm:$0xff] %v5418_v8  ;;  %v5432_v34 = vmax.f32 %v6217_v23, %v1278_v31  ;;  %3983 = vpow2.f32 %v2068_v48  ;;  %v2074_v25 = vmul.f32 1.442695, %v2008_v14  ;;  %v2076_v4 = vmul.f32 1.442695, %v2009_v59  ;;  %2438 = vmatprep.mubr.f32.mxu0 %v2279_v24  ;;  %v1637_v13 = vpop.f32.mrb[80].mxu1 }
 0x238   : > { %v1834_v35 = vmax.f32 %v5103_v36, %v3473_v55  ;;  %v1750_v8 = vpop.f32.mrb[81].mxu0  ;;  %v2011_v18 = vmin.f32 %v5435_v0, 0.0  ;;  %v5443_v31 = vadd.f32 %v5270_v52, %v1851_v57  ;;  %2439 = vmatmul.mubr.f32.vlgmr.msra.gmra.mrb[96].mxu0 %v2278_v5  ;;  %v1853_v39 = vmax.f32 %v5267_v54, %v1637_v13  ;;  %v1639_v44 = vpop.f32.mrb[81].mxu1 }
 0x239   : > { %v2185_v28 = vmul.f32 1.6732632, %v2972_v51  ;;  %3985 = vpow2.f32 %v2070_v12  ;;  %v2234_v36 = vsel %vm1946_vm2, %v5303_v45, %v2186_v37  ;;  %v1854_v14 = vmax.f32 %v5276_v15, %v1639_v44  ;;  %v5453_v10 = vpop.eup %3977 }
 0x23a   : > { %v5447_v48 = vadd.f32 %v5365_v50, %v1834_v35  ;;  %v2080_v59 = vmul.f32 1.442695, %v2011_v18  ;;  %v2012_v24 = vmin.f32 %v5443_v31, 0.0  ;;  %v5457_v5 = vadd.f32 %v5262_v43, %v1853_v39  ;;  %v3476_v51 = vpop.f32.mrb[82].mxu0 }
 0x23b   : > { %v2282_v54 = vmul.f32 1.050701, %v2234_v36  ;;  %3987 = vpow2.f32 %v2074_v25  ;;  %v5462_v47 = vadd.f32 %v5270_v52, %v1854_v14  ;;  %v1831_v15 = vmax.f32 %v5113_v3, %v1750_v8  ;;  %v1643_v45 = vpop.f32.mrb[82].mxu1  ;;  %v1760_v23 = vpop.f32.mrb[83].mxu0 }
 0x23c   : > { %v1995_v12 = vmin.f32 %v5447_v48, 0.0  ;;  %3989 = vpow2.f32 %v2076_v4  ;;  %v2082_v57 = vmul.f32 1.442695, %v2012_v24  ;;  %v2014_v55 = vmin.f32 %v5457_v5, 0.0  ;;  %v1645_v13 = vpop.f32.mrb[83].mxu1  ;;  %v5469_v25 = vpop.eup %3979 }
 0x23d   : > { %2443 = vmatprep.mubr.f32.mxu0 %v2282_v54  ;;  %v2233_v37 = vsel %vm1945_vm3, %v5300_v17, %v2185_v28  ;;  %v2015_v18 = vmin.f32 %v5462_v47, 0.0  ;;  %v5473_v39 = vadd.f32 %v5365_v50, %v1831_v15  ;;  %3991 = vpow2.f32 %v2080_v59 }
 0x23e   : > { %v2048_v35 = vmul.f32 1.442695, %v1995_v12  ;;  %v2281_v3 = vmul.f32 1.050701, %v2233_v37  ;;  %v2086_v8 = vmul.f32 1.442695, %v2014_v55  ;;  %v1856_v4 = vmax.f32 %v5288_v32, %v1643_v45 }
 0x23f   : > { %v1840_v44 = vmax.f32 %v5123_v42, %v3476_v51  ;;  %vm1948_vm5 = vcmp.gt.f32.partialorder %v5320_v58, 0.0  ;;  %v3479_v36 = vpop.f32.mrb[84].mxu0  ;;  %3993 = vpow2.f32 %v2082_v57  ;;  %v2088_v17 = vmul.f32 1.442695, %v2015_v18  ;;  %v1649_v24 = vpop.f32.mrb[84].mxu1 }
 0x240   : > { %v1992_v28 = vmin.f32 %v5473_v39, 0.0  ;;  %2444 = vmatmul.mubr.f32.gmra.mrb[98].mxu0 %v2281_v3  ;;  %v2976_v14 = vadd.f32 -1.0, %v3974_v61  ;;  %v5479_v54 = vpop.f32.mrb[85].mxu0  ;;  %v5481_v12 = vpop.eup %3981  ;;  %3995 = vpow2.f32 %v2048_v35  ;;  %v5484_v59 = vadd.f32 %v5262_v43, %v1856_v4 }
 0x241   : > { %v5487_v42 = vadd.f32 %v5365_v50, %v1840_v44  ;;  %v1857_v32 = vmax.f32 %v5295_v40, %v1645_v13  ;;  %v1651_v51 = vpop.f32.mrb[85].mxu1  ;;  %v5490_v15 = vpop.eup %3983  ;;  %3997 = vpow2.f32 %v2086_v8  ;;  %v1837_v57 = vmax.f32 %v5133_v11, %v1760_v23 }
 0x242   : > { %6218 = vst [vmem:[#allocation21_spill] sm:$0xff] %v5484_v59  ;;  %v2042_v45 = vmul.f32 1.442695, %v1992_v28  ;;  %v2189_v61 = vmul.f32 1.6732632, %v2976_v14  ;;  %v2017_v55 = vmin.f32 %v5484_v59, 0.0  ;;  %3999 = vpow2.f32 %v2088_v17 }
 0x243   : > { %6219 = vst [vmem:[#allocation42_spill] sm:$0xff] %v5487_v42  ;;  %v2001_v37 = vmin.f32 %v5487_v42, 0.0  ;;  %v5496_v35 = vadd.f32 %v5270_v52, %v1857_v32  ;;  %v2975_v18 = vadd.f32 -1.0, %v5426_v38  ;;  %vm1952_vm6 = vcmp.gt.f32.partialorder %v5344_v7, 0.0  ;;  %v5500_v40 = vpop.f32.mrb[86].mxu0  ;;  %v5502_v13 = vpop.eup %3985 }
 0x244   : > { %v2237_v11 = vsel %vm1949_vm4, %v5323_v1, %v2189_v61  ;;  %v5508_v23 = vadd.f32 %v5365_v50, %v1837_v57  ;;  %v1859_v3 = vmax.f32 %v5308_v21, %v1649_v24  ;;  %v5511_v8 = vpop.f32.mrb[86].mxu1  ;;  %v5513_v4 = vpop.f32.mrb[87].mxu0  ;;  %v2092_v38 = vmul.f32 1.442695, %v2017_v55 }
 0x245   : > { %v2060_v44 = vmul.f32 1.442695, %v2001_v37  ;;  %v2285_v28 = vmul.f32 1.050701, %v2237_v11  ;;  %v1846_v14 = vmax.f32 %v5143_v56, %v3479_v36  ;;  %v5516_v32 = vpop.eup %3987  ;;  %v2018_v17 = vmin.f32 %v5496_v35, 0.0  ;;  %v5523_v21 = vpop.f32.mrb[87].mxu1 }
 0x246   : > { %6220 = vst [vmem:[#allocation22_spill] sm:$0xff] %v5508_v23  ;;  %v1998_v1 = vmin.f32 %v5508_v23, 0.0  ;;  %v2188_v61 = vmul.f32 1.6732632, %v2975_v18  ;;  %v5521_v57 = vadd.f32 %v5262_v43, %v1859_v3  ;;  %v5525_v24 = vpop.eup %3989  ;;  %4001 = vpow2.f32 %v2042_v45  ;;  %v5532_v37 = vpop.f32.mrb[88].mxu0 }
 0x247   : > { %2448 = vmatprep.mubr.f32.mxu0 %v2285_v28  ;;  %v5528_v55 = vadd.f32 %v5365_v50, %v1846_v14  ;;  %v2979_v56 = vadd.f32 -1.0, %v5453_v10  ;;  %v1860_v36 = vmax.f32 %v5315_v60, %v1651_v51  ;;  %4003 = vpow2.f32 %v2092_v38  ;;  %v5537_v42 = vpop.f32.mrb[88].mxu1  ;;  %v5539_v45 = vpop.f32.mrb[89].mxu0 }
 0x248   : > { %6221 = vst [vmem:[#allocation43_spill] sm:$0xff] %v5521_v57  ;;  %v2094_v18 = vmul.f32 1.442695, %v2018_v17  ;;  %v2054_v11 = vmul.f32 1.442695, %v1998_v1  ;;  %v2236_v3 = vsel %vm1948_vm5, %v5320_v58, %v2188_v61  ;;  %v5541_v28 = vpop.eup %3991  ;;  %v2020_v10 = vmin.f32 %v5521_v57, 0.0 }
 0x249   : > { %6222 = vst [vmem:[#allocation44_spill] sm:$0xff] %v5528_v55  ;;  %v2284_v14 = vmul.f32 1.050701, %v2236_v3  ;;  %v2007_v60 = vmin.f32 %v5528_v55, 0.0  ;;  %v2192_v51 = vmul.f32 1.6732632, %v2979_v56  ;;  %v5545_v59 = vpop.eup %3993  ;;  %4005 = vpow2.f32 %v2060_v44 }
 0x24a   : > { %v5548_v38 = vadd.f32 %v5270_v52, %v1860_v36  ;;  %v1843_v58 = vmax.f32 %v5153_v33, %v5479_v54  ;;  %v2978_v17 = vadd.f32 -1.0, %v5439_v16  ;;  %v5553_v1 = vpop.f32.mrb[89].mxu1  ;;  %v3996_v61 = vpop.eup %3995  ;;  %4007 = vpow2.f32 %v2094_v18 }
 0x24b   : > { %2449 = vmatmul.mubr.f32.gmra.mrb[100].mxu0 %v2284_v14  ;;  %v2098_v3 = vmul.f32 1.442695, %v2020_v10  ;;  %v2072_v57 = vmul.f32 1.442695, %v2007_v60  ;;  %vm1951_vm7 = vcmp.gt.f32.partialorder %v5340_v63, 0.0  ;;  %v5556_v56 = vpop.f32.mrb[90].mxu0  ;;  %v5558_v44 = vpop.eup %3997  ;;  %v2240_v36 = vsel %vm1952_vm6, %v5344_v7, %v2192_v51 }
 0x24c   : > { %6223 = vst [vmem:[#allocation23_spill] sm:$0xff] %v5548_v38  ;;  %v2021_v33 = vmin.f32 %v5548_v38, 0.0  ;;  %v5565_v16 = vadd.f32 %v5365_v50, %v1843_v58  ;;  %v2191_v54 = vmul.f32 1.6732632, %v2978_v17  ;;  %v5567_v18 = vpop.f32.mrb[90].mxu1  ;;  %v5569_v14 = vpop.f32.mrb[91].mxu0  ;;  %4009 = vpow2.f32 %v2054_v11 }
 0x24d   : > { %v2288_v10 = vmul.f32 1.050701, %v2240_v36  ;;  %v1862_v60 = vmax.f32 %v5328_v30, %v5511_v8  ;;  %vm1955_vm8 = vcmp.gt.f32.partialorder %v5368_v41, 0.0  ;;  %v5574_v55 = vpop.f32.mrb[91].mxu1  ;;  %v5576_v7 = vpop.eup %3999  ;;  %4011 = vpow2.f32 %v2098_v3 }
 0x24e   : > { %6224 = vst [vmem:[#allocation45_spill] sm:$0xff] %v5565_v16  ;;  %v2100_v51 = vmul.f32 1.442695, %v2021_v33  ;;  %v2004_v58 = vmin.f32 %v5565_v16, 0.0  ;;  %v2239_v17 = vsel %vm1951_vm7, %v5340_v63, %v2191_v54  ;;  %4013 = vpow2.f32 %v2072_v57  ;;  %v5587_v8 = vpop.f32.mrb[92].mxu0 }
 0x24f   : > { %2453 = vmatprep.mubr.f32.mxu0 %v2288_v10  ;;  %v2287_v11 = vmul.f32 1.050701, %v2239_v17  ;;  %v5583_v36 = vadd.f32 %v5262_v43, %v1862_v60  ;;  %v1852_v30 = vmax.f32 %v5163_v6, %v5500_v40  ;;  %v2974_v38 = vadd.f32 -1.0, %v3996_v61  ;;  %v5590_v16 = vpop.f32.mrb[92].mxu1  ;;  %v5604_v54 = vpop.f32.mrb[93].mxu0 }
 0x250   : > { %4015 = vpow2.f32 %v2100_v51  ;;  %v2066_v3 = vmul.f32 1.442695, %v2004_v58  ;;  %v2982_v33 = vadd.f32 -1.0, %v5481_v12  ;;  %v5592_v23 = vpop.eup %4001  ;;  %v1863_v6 = vmax.f32 %v5335_v22, %v5523_v21  ;;  %v5602_v61 = vpop.f32.mrb[93].mxu1 }
 0x251   : > { %6225 = vst [vmem:[#allocation24_spill] sm:$0xff] %v5583_v36  ;;  %2454 = vmatmul.mubr.f32.gmra.mrb[102].mxu0 %v2287_v11  ;;  %v2023_v63 = vmin.f32 %v5583_v36, 0.0  ;;  %v5596_v57 = vadd.f32 %v5365_v50, %v1852_v30  ;;  %v1849_v40 = vmax.f32 %v5173_v53, %v5513_v4  ;;  %v5606_v12 = vpop.eup %4003  ;;  %vm1954_vm9 = vcmp.gt.f32.partialorder %v5362_v62, 0.0 }
 0x252   : > { %4017 = vpow2.f32 %v2066_v3  ;;  %v2195_v10 = vmul.f32 1.6732632, %v2982_v33  ;;  %v2981_v60 = vadd.f32 -1.0, %v5469_v25  ;;  %v5612_v22 = vadd.f32 %v5270_v52, %v1863_v6  ;;  %v5617_v4 = vpop.f32.mrb[94].mxu0 }
 0x253   : > { %6226 = vst [vmem:[#allocation46_spill] sm:$0xff] %v5596_v57  ;;  %v2104_v51 = vmul.f32 1.442695, %v2023_v63  ;;  %v2013_v58 = vmin.f32 %v5596_v57, 0.0  ;;  %v5615_v53 = vadd.f32 %v5365_v50, %v1849_v40  ;;  %v5619_v21 = vpop.eup %4005  ;;  %v1865_v25 = vmax.f32 %v5349_v2, %v5537_v42  ;;  %v5628_v3 = vpop.f32.mrb[94].mxu1 }
 0x254   : > { %v2243_v17 = vsel %vm1955_vm8, %v5368_v41, %v2195_v10  ;;  %v2194_v11 = vmul.f32 1.6732632, %v2981_v60  ;;  %v1858_v30 = vmax.f32 %v5183_v19, %v5532_v37  ;;  %v5630_v33 = vpop.f32.mrb[95].mxu0  ;;  %v5632_v63 = vpop.eup %4007  ;;  %v2024_v57 = vmin.f32 %v5612_v22, 0.0 }
 0x255   : > { %6227 = vst [vmem:[#allocation25_spill] sm:$0xff] %v5615_v53  ;;  %4019 = vpow2.f32 %v2104_v51  ;;  %v2084_v6 = vmul.f32 1.442695, %v2013_v58  ;;  %v2291_v40 = vmul.f32 1.050701, %v2243_v17  ;;  %v5635_v36 = vpop.f32.mrb[95].mxu1  ;;  %v5642_v19 = vadd.f32 %v5262_v43, %v1865_v25 }
 0x256   : > { %v2010_v41 = vmin.f32 %v5615_v53, 0.0  ;;  %v2242_v2 = vsel %vm1954_vm9, %v5362_v62, %v2194_v11  ;;  %v5645_v42 = vadd.f32 %v5365_v50, %v1858_v30  ;;  %v5647_v37 = vpop.eup %4009  ;;  %v5649_v10 = vmul.f32 1.6732632, %v2974_v38 }
 0x257   : > { %4021 = vpow2.f32 %v2084_v6  ;;  %2458 = vmatprep.mubr.f32.mxu0 %v2291_v40  ;;  %v2106_v60 = vmul.f32 1.442695, %v2024_v57  ;;  %v2290_v51 = vmul.f32 1.050701, %v2242_v2  ;;  %v5651_v58 = vpop.eup %4011  ;;  %v2026_v53 = vmin.f32 %v5642_v19, 0.0 }
 0x258   : > { %6228 = vst [vmem:[#allocation47_spill] sm:$0xff] %v5645_v42  ;;  %v2078_v17 = vmul.f32 1.442695, %v2010_v41  ;;  %v2019_v62 = vmin.f32 %v5645_v42, 0.0  ;;  %v2985_v11 = vadd.f32 -1.0, %v5502_v13  ;;  %v5656_v25 = vpop.eup %4013  ;;  %vm1958_vm10 = vcmp.gt.f32.partialorder %v5392_v49, 0.0 }
 0x259   : > { %4023 = vpow2.f32 %v2106_v60  ;;  %2459 = vmatmul.mubr.f32.gmra.mrb[104].mxu0 %v2290_v51  ;;  %v1866_v38 = vmax.f32 %v5356_v9, %v5553_v1  ;;  %v1855_v57 = vmax.f32 %v5193_v27, %v5539_v45  ;;  %v2110_v6 = vmul.f32 1.442695, %v2026_v53  ;;  %v6229_v9 = vld [vmem:[#allocation19_spill] sm:$0xff]  ;;  %v6230_v53 = vld [vmem:[#allocation16_spill] sm:$0xff] }
 0x25a   : > { %v5663_v30 = vpop.eup %4015  ;;  %4025 = vpow2.f32 %v2078_v17  ;;  %v2198_v40 = vmul.f32 1.6732632, %v2985_v11  ;;  %vm1957_vm11 = vcmp.gt.f32.partialorder %v5385_v26, 0.0  ;;  %v2984_v2 = vadd.f32 -1.0, %v5490_v15 }
 0x25b   : > { %v5667_v13 = vadd.f32 %v5270_v52, %v1866_v38  ;;  %v5670_v41 = vadd.f32 %v5365_v50, %v1855_v57  ;;  %v1868_v1 = vmax.f32 %v6229_v9, %v5567_v18  ;;  %4027 = vpow2.f32 %v2110_v6 }
 0x25c   : > { %v5675_v60 = vpop.eup %4017  ;;  %v2096_v27 = vmul.f32 1.442695, %v2019_v62  ;;  %v2246_v45 = vsel %vm1958_vm10, %v5392_v49, %v2198_v40  ;;  %v1864_v51 = vmax.f32 %v6230_v53, %v5556_v56  ;;  %vm1961_vm12 = vcmp.gt.f32.partialorder %v5413_v20, 0.0  ;;  %v6231_v40 = vld [vmem:[#allocation38_spill] sm:$0xff] }
 0x25d   : > { %v2294_v17 = vmul.f32 1.050701, %v2246_v45  ;;  %v2027_v11 = vmin.f32 %v5667_v13, 0.0  ;;  %v2016_v38 = vmin.f32 %v5670_v41, 0.0  ;;  %v2197_v15 = vmul.f32 1.6732632, %v2984_v2 }
 0x25e   : > { %v5684_v57 = vadd.f32 %v5262_v43, %v1868_v1  ;;  %v5687_v18 = vadd.f32 %v5365_v50, %v1864_v51  ;;  %v2988_v62 = vadd.f32 -1.0, %v5525_v24  ;;  %v1869_v9 = vmax.f32 %v6231_v40, %v5574_v55  ;;  %v6232_v45 = vld [vmem:[#allocation32_spill] sm:$0xff] }
 0x25f   : > { %v5690_v49 = vpop.eup %4019  ;;  %2463 = vmatprep.mubr.f32.mxu0 %v2294_v17  ;;  %v2112_v56 = vmul.f32 1.442695, %v2027_v11  ;;  %v2090_v6 = vmul.f32 1.442695, %v2016_v38  ;;  %v1861_v53 = vmax.f32 %v6232_v45, %v5569_v14  ;;  %v2245_v2 = vsel %vm1957_vm11, %v5385_v26, %v2197_v15 }
 0x260   : > { %v2029_v1 = vmin.f32 %v5684_v57, 0.0  ;;  %v2025_v51 = vmin.f32 %v5687_v18, 0.0  ;;  %v2201_v24 = vmul.f32 1.6732632, %v2988_v62  ;;  %4029 = vpow2.f32 %v2096_v27 }
 0x261   : > { %v5701_v42 = vpop.eup %4021  ;;  %v2293_v17 = vmul.f32 1.050701, %v2245_v2  ;;  %v5704_v11 = vadd.f32 %v5270_v52, %v1869_v9  ;;  %v5707_v55 = vadd.f32 %v5365_v50, %v1861_v53  ;;  %vm1947_vm13 = vcmp.gt.f32.partialorder %v5447_v48, 0.0  ;;  %v6234_v2 = vld [vmem:[#allocation17_spill] sm:$0xff] }
 0x262   : > { %4031 = vpow2.f32 %v2112_v56  ;;  %v2116_v14 = vmul.f32 1.442695, %v2029_v1  ;;  %v2249_v26 = vsel %vm1961_vm12, %v5413_v20, %v2201_v24  ;;  %v2108_v15 = vmul.f32 1.442695, %v2025_v51  ;;  %v6233_v56 = vld [vmem:[#allocation20_spill] sm:$0xff] }
 0x263   : > { %v5713_v38 = vpop.eup %4023  ;;  %2464 = vmatmul.mubr.f32.gmra.mrb[106].mxu0 %v2293_v17  ;;  %v2297_v27 = vmul.f32 1.050701, %v2249_v26  ;;  %v2030_v62 = vmin.f32 %v5704_v11, 0.0  ;;  %v2022_v40 = vmin.f32 %v5707_v55, 0.0  ;;  %4033 = vpow2.f32 %v2090_v6 }
 0x264   : > { %v5717_v9 = vpop.eup %4025  ;;  %v2987_v45 = vadd.f32 -1.0, %v5516_v32  ;;  %v1871_v53 = vmax.f32 %v6233_v56, %v5590_v16  ;;  %v1870_v20 = vmax.f32 %v6234_v2, %v5587_v8  ;;  %v2235_v1 = vsel %vm1947_vm13, %v5447_v48, %v5649_v10  ;;  %v6235_v10 = vld [vmem:[#allocation34_spill] sm:$0xff] }
 0x265   : > { %4035 = vpow2.f32 %v2116_v14  ;;  %2468 = vmatprep.mubr.f32.mxu0 %v2297_v27  ;;  %v2118_v51 = vmul.f32 1.442695, %v2030_v62  ;;  %vm1960_vm14 = vcmp.gt.f32.partialorder %v5410_v29, 0.0  ;;  %v5727_v24 = vpop.eup %4027  ;;  %v2991_v16 = vadd.f32 -1.0, %v5545_v59 }
 0x266   : > { %v2200_v17 = vmul.f32 1.6732632, %v2987_v45  ;;  %v5730_v6 = vadd.f32 %v5262_v43, %v1871_v53  ;;  %v5733_v32 = vadd.f32 %v5365_v50, %v1870_v20  ;;  %4037 = vpow2.f32 %v2108_v15 }
 0x267   : > { %v2102_v8 = vmul.f32 1.442695, %v2022_v40  ;;  %v1872_v48 = vmax.f32 %v5406_v46, %v5602_v61  ;;  %v1867_v14 = vmax.f32 %v6235_v10, %v5604_v54  ;;  %vm1964_vm15 = vcmp.gt.f32.partialorder %v5443_v31, 0.0 }
 0x268   : > { %v2248_v26 = vsel %vm1960_vm14, %v5410_v29, %v2200_v17  ;;  %v2032_v27 = vmin.f32 %v5730_v6, 0.0  ;;  %v2031_v62 = vmin.f32 %v5733_v32, 0.0  ;;  %v2204_v56 = vmul.f32 1.6732632, %v2991_v16  ;;  %v6236_v29 = vld [vmem:[#allocation40_spill] sm:$0xff]  ;;  %v6237_v17 = vld [vmem:[#allocation18_spill] sm:$0xff] }
 0x269   : > { %v2296_v45 = vmul.f32 1.050701, %v2248_v26  ;;  %v5745_v59 = vadd.f32 %v5270_v52, %v1872_v48  ;;  %v5748_v15 = vadd.f32 %v5365_v50, %v1867_v14  ;;  %4039 = vpow2.f32 %v2118_v51 }
 0x26a   : > { %v2122_v46 = vmul.f32 1.442695, %v2032_v27  ;;  %v2990_v61 = vadd.f32 -1.0, %v5541_v28  ;;  %v1874_v54 = vmax.f32 %v6236_v29, %v5628_v3  ;;  %v5753_v40 = vpop.eup %4029  ;;  %v2120_v53 = vmul.f32 1.442695, %v2031_v62 }
 0x26b   : > { %2469 = vmatmul.mubr.f32.gmra.mrb[108].mxu0 %v2296_v45  ;;  %v2252_v2 = vsel %vm1964_vm15, %v5443_v31, %v2204_v56  ;;  %v2033_v20 = vmin.f32 %v5745_v59, 0.0  ;;  %v1876_v16 = vmax.f32 %v6237_v17, %v5617_v4  ;;  %v2028_v10 = vmin.f32 %v5748_v15, 0.0 }
 0x26c   : > { %v5759_v48 = vpop.eup %4031  ;;  %v2300_v51 = vmul.f32 1.050701, %v2252_v2  ;;  %v2203_v28 = vmul.f32 1.6732632, %v2990_v61  ;;  %v5763_v14 = vadd.f32 %v5262_v43, %v1874_v54  ;;  %4041 = vpow2.f32 %v2102_v8 }
 0x26d   : > { %v2124_v3 = vmul.f32 1.442695, %v2033_v20  ;;  %vm1963_vm0 = vcmp.gt.f32.partialorder %v5435_v0, 0.0  ;;  %v5767_v31 = vadd.f32 %v5365_v50, %v1876_v16  ;;  %v5769_v26 = vpop.eup %4033  ;;  %4043 = vpow2.f32 %v2122_v46 }
 0x26e   : > { %2473 = vmatprep.mubr.f32.mxu0 %v2300_v51  ;;  %v2251_v4 = vsel %vm1963_vm0, %v5435_v0, %v2203_v28  ;;  %v2035_v27 = vmin.f32 %v5763_v14, 0.0  ;;  %v2994_v62 = vadd.f32 -1.0, %v5576_v7  ;;  %v2283_v43 = vmul.f32 1.050701, %v2235_v1  ;;  %v6238_v1 = vld [vmem:[#allocation36_spill] sm:$0xff] }
 0x26f   : > { %v5774_v45 = vpop.eup %4035  ;;  %4045 = vpow2.f32 %v2120_v53  ;;  %v2299_v8 = vmul.f32 1.050701, %v2251_v4  ;;  %v2037_v56 = vmin.f32 %v5767_v31, 0.0  ;;  %v2114_v61 = vmul.f32 1.442695, %v2028_v10 }
 0x270   : > { %vm1967_vm1 = vcmp.gt.f32.partialorder %v5462_v47, 0.0  ;;  %v2207_v29 = vmul.f32 1.6732632, %v2994_v62  ;;  %v2971_v46 = vadd.f32 -1.0, %v5592_v23  ;;  %v5779_v54 = vpop.eup %4037  ;;  %4047 = vpow2.f32 %v2124_v3 }
 0x271   : > { %2474 = vmatmul.mubr.f32.gmra.mrb[110].mxu0 %v2299_v8  ;;  %v2128_v0 = vmul.f32 1.442695, %v2035_v27  ;;  %v1875_v7 = vmax.f32 %v5432_v34, %v5635_v36  ;;  %v1873_v53 = vmax.f32 %v6238_v1, %v5630_v33  ;;  %vm1944_vm2 = vcmp.gt.f32.partialorder %v5473_v39, 0.0  ;;  %v6239_v8 = vld [vmem:[#allocation22_spill] sm:$0xff] }
 0x272   : > { %v2255_v2 = vsel %vm1967_vm1, %v5462_v47, %v2207_v29  ;;  %v2184_v20 = vmul.f32 1.6732632, %v2971_v46  ;;  %v2993_v17 = vadd.f32 -1.0, %v5558_v44  ;;  %v2132_v16 = vmul.f32 1.442695, %v2037_v56  ;;  %v6240_v46 = vld [vmem:[#allocation21_spill] sm:$0xff] }
 0x273   : > { %v2303_v23 = vmul.f32 1.050701, %v2255_v2  ;;  %v5789_v51 = vadd.f32 %v5270_v52, %v1875_v7  ;;  %v5792_v10 = vadd.f32 %v5365_v50, %v1873_v53  ;;  %v5794_v28 = vpop.eup %4039  ;;  %4049 = vpow2.f32 %v2114_v61  ;;  %v6241_v2 = vld [vmem:[#allocation42_spill] sm:$0xff] }
 0x274   : > { %v2232_v34 = vsel %vm1944_vm2, %v5473_v39, %v2184_v20  ;;  %v2206_v36 = vmul.f32 1.6732632, %v2993_v17  ;;  %v2997_v47 = vadd.f32 -1.0, %v5632_v63  ;;  %4051 = vpow2.f32 %v2128_v0 }
 0x275   : > { %2478 = vmatprep.mubr.f32.mxu0 %v2303_v23  ;;  %v2280_v33 = vmul.f32 1.050701, %v2232_v34  ;;  %v2036_v44 = vmin.f32 %v5789_v51, 0.0  ;;  %vm1966_vm3 = vcmp.gt.f32.partialorder %v5457_v5, 0.0  ;;  %v2034_v52 = vmin.f32 %v5792_v10, 0.0  ;;  %v6242_v23 = vld [vmem:[#allocation23_spill] sm:$0xff] }
 0x276   : > { %v2254_v50 = vsel %vm1966_vm3, %v5457_v5, %v2206_v36  ;;  %v2210_v3 = vmul.f32 1.6732632, %v2997_v47  ;;  %v2977_v4 = vadd.f32 -1.0, %v5647_v37  ;;  %v5803_v27 = vpop.eup %4041  ;;  %4053 = vpow2.f32 %v2132_v16  ;;  %v6243_v47 = vld [vmem:[#allocation45_spill] sm:$0xff] }
 0x277   : > { %3527 = vmatprep.mubr.f32.mxu1 %v2280_v33  ;;  %v2302_v39 = vmul.f32 1.050701, %v2254_v50  ;;  %vm1970_vm4 = vcmp.gt.f32.partialorder %v5496_v35, 0.0  ;;  %v5806_v63 = vpop.eup %4043  ;;  %vm1950_vm5 = vcmp.gt.f32.partialorder %v6239_v8, 0.0  ;;  %v2996_v5 = vadd.f32 -1.0, %v5606_v12 }
 0x278   : > { %3528 = vmatmul.mubr.f32.vlgmr.msra.gmra.mrb[96].mxu1 %v2283_v43  ;;  %v2258_v62 = vsel %vm1970_vm4, %v5496_v35, %v2210_v3  ;;  %v2190_v56 = vmul.f32 1.6732632, %v2977_v4  ;;  %v2130_v37 = vmul.f32 1.442695, %v2036_v44  ;;  %vm1969_vm6 = vcmp.gt.f32.partialorder %v6240_v46, 0.0 }
 0x279   : > { %v5811_v61 = vpop.eup %4045  ;;  %2479 = vmatmul.mubr.f32.gmra.mrb[112].mxu0 %v2302_v39  ;;  %v2306_v29 = vmul.f32 1.050701, %v2258_v62  ;;  %v2980_v0 = vadd.f32 -1.0, %v5619_v21  ;;  %v5815_v7 = vmul.f32 1.442695, %v2034_v52  ;;  %v3000_v35 = vadd.f32 -1.0, %v5663_v30 }
 0x27a   : > { %v2238_v43 = vsel %vm1950_vm5, %v6239_v8, %v2190_v56  ;;  %v2209_v1 = vmul.f32 1.6732632, %v2996_v5  ;;  %v5819_v53 = vpop.eup %4047  ;;  %vm1953_vm7 = vcmp.gt.f32.partialorder %v6241_v2, 0.0  ;;  %v2983_v17 = vadd.f32 -1.0, %v5675_v60  ;;  %v6244_v62 = vld [vmem:[#allocation43_spill] sm:$0xff] }
 0x27b   : > { %2483 = vmatprep.mubr.f32.mxu0 %v2306_v29  ;;  %v2286_v12 = vmul.f32 1.050701, %v2238_v43  ;;  %v2193_v20 = vmul.f32 1.6732632, %v2980_v0  ;;  %vm1973_vm8 = vcmp.gt.f32.partialorder %v6242_v23, 0.0  ;;  %v2999_v34 = vadd.f32 -1.0, %v5651_v58 }
 0x27c   : > { %v2257_v16 = vsel %vm1969_vm6, %v6240_v46, %v2209_v1  ;;  %v2213_v21 = vmul.f32 1.6732632, %v3000_v35  ;;  %vm1956_vm9 = vcmp.gt.f32.partialorder %v6243_v47, 0.0  ;;  %v2196_v33 = vmul.f32 1.6732632, %v2983_v17  ;;  %v6245_v29 = vld [vmem:[#allocation44_spill] sm:$0xff] }
 0x27d   : > { %3530 = vmatprep.mubr.f32.mxu1 %v2286_v12  ;;  %v2305_v36 = vmul.f32 1.050701, %v2257_v16  ;;  %v2241_v30 = vsel %vm1953_vm7, %v6241_v2, %v2193_v20  ;;  %v5828_v44 = vpop.eup %4049  ;;  %v2212_v60 = vmul.f32 1.6732632, %v2999_v34  ;;  %v2986_v3 = vadd.f32 -1.0, %v5656_v25 }
 0x27e   : > { %v2289_v52 = vmul.f32 1.050701, %v2241_v30  ;;  %v2261_v50 = vsel %vm1973_vm8, %v6242_v23, %v2213_v21  ;;  %v5832_v4 = vpop.eup %4051  ;;  %v2244_v58 = vsel %vm1956_vm9, %v6243_v47, %v2196_v33  ;;  %vm1972_vm10 = vcmp.gt.f32.partialorder %v6244_v62, 0.0  ;;  %v6247_v23 = vld [vmem:[#allocation24_spill] sm:$0xff]  ;;  %v6248_v30 = vld [vmem:[#allocation46_spill] sm:$0xff] }
 0x27f   : > { %2484 = vmatmul.mubr.f32.gmra.mrb[114].mxu0 %v2305_v36  ;;  %v2309_v39 = vmul.f32 1.050701, %v2261_v50  ;;  %v3003_v8 = vadd.f32 -1.0, %v5713_v38  ;;  %v2292_v56 = vmul.f32 1.050701, %v2244_v58  ;;  %v2260_v5 = vsel %vm1972_vm10, %v6244_v62, %v2212_v60  ;;  %v6246_v38 = vld [vmem:[#allocation25_spill] sm:$0xff] }
 0x280   : > { %3531 = vmatmul.mubr.f32.gmra.mrb[98].mxu1 %v2289_v52  ;;  %vm1959_vm11 = vcmp.gt.f32.partialorder %v6245_v29, 0.0  ;;  %v2199_v46 = vmul.f32 1.6732632, %v2986_v3  ;;  %v5839_v0 = vpop.eup %4053  ;;  %v2308_v25 = vmul.f32 1.050701, %v2260_v5  ;;  %vm1976_vm12 = vcmp.gt.f32.partialorder %v5612_v22, 0.0 }
 0x281   : > { %2488 = vmatprep.mubr.f32.mxu0 %v2309_v39  ;;  %v2216_v43 = vmul.f32 1.6732632, %v3003_v8  ;;  %v2989_v1 = vadd.f32 -1.0, %v5717_v9  ;;  %3533 = vmatprep.mubr.f32.mxu1 %v2292_v56  ;;  %vm1962_vm13 = vcmp.gt.f32.partialorder %v6246_v38, 0.0  ;;  %v3002_v12 = vadd.f32 -1.0, %v5690_v49  ;;  %v6249_v39 = vld [vmem:[#allocation47_spill] sm:$0xff] }
 0x282   : > { %v2247_v35 = vsel %vm1959_vm11, %v6245_v29, %v2199_v46  ;;  %v2992_v2 = vadd.f32 -1.0, %v5701_v42  ;;  %vm1975_vm14 = vcmp.gt.f32.partialorder %v6247_v23, 0.0  ;;  %4055 = vpow2.f32 %v2130_v37 }
 0x283   : > { %2489 = vmatmul.mubr.f32.gmra.mrb[116].mxu0 %v2308_v25  ;;  %v2295_v20 = vmul.f32 1.050701, %v2247_v35  ;;  %v2264_v17 = vsel %vm1976_vm12, %v5612_v22, %v2216_v43  ;;  %v2202_v16 = vmul.f32 1.6732632, %v2989_v1  ;;  %v2215_v34 = vmul.f32 1.6732632, %v3002_v12 }
 0x284   : > { %v2312_v21 = vmul.f32 1.050701, %v2264_v17  ;;  %v2205_v9 = vmul.f32 1.6732632, %v2992_v2  ;;  %vm1965_vm15 = vcmp.gt.f32.partialorder %v6248_v30, 0.0  ;;  %v3006_v49 = vadd.f32 -1.0, %v5759_v48 }
 0x285   : > { %3534 = vmatmul.mubr.f32.gmra.mrb[100].mxu1 %v2295_v20  ;;  %v2250_v36 = vsel %vm1962_vm13, %v6246_v38, %v2202_v16  ;;  %v2995_v42 = vadd.f32 -1.0, %v5769_v26  ;;  %v2263_v22 = vsel %vm1975_vm14, %v6247_v23, %v2215_v34  ;;  %vm1979_vm0 = vcmp.gt.f32.partialorder %v5667_v13, 0.0 }
 0x286   : > { %2493 = vmatprep.mubr.f32.mxu0 %v2312_v21  ;;  %v2298_v47 = vmul.f32 1.050701, %v2250_v36  ;;  %v2253_v33 = vsel %vm1965_vm15, %v6248_v30, %v2205_v9  ;;  %4057 = vpow2.f32 %v5815_v7  ;;  %v2311_v37 = vmul.f32 1.050701, %v2263_v22 }
 0x287   : > { %v2301_v52 = vmul.f32 1.050701, %v2253_v33  ;;  %v2219_v50 = vmul.f32 1.6732632, %v3006_v49  ;;  %vm1968_vm1 = vcmp.gt.f32.partialorder %v5670_v41, 0.0  ;;  %v3005_v48 = vadd.f32 -1.0, %v5727_v24 }
 0x288   : > { %3536 = vmatprep.mubr.f32.mxu1 %v2298_v47  ;;  %v2208_v60 = vmul.f32 1.6732632, %v2995_v42  ;;  %v2998_v26 = vadd.f32 -1.0, %v5753_v40  ;;  %2494 = vmatmul.mubr.f32.gmra.mrb[118].mxu0 %v2311_v37  ;;  %vm1978_vm2 = vcmp.gt.f32.partialorder %v5642_v19, 0.0  ;;  %vm1971_vm3 = vcmp.gt.f32.partialorder %v6249_v39, 0.0 }
 0x289   : > { %3537 = vmatmul.mubr.f32.gmra.mrb[102].mxu1 %v2301_v52  ;;  %v2267_v3 = vsel %vm1979_vm0, %v5667_v13, %v2219_v50  ;;  %v3009_v7 = vadd.f32 -1.0, %v5794_v28  ;;  %v2218_v8 = vmul.f32 1.6732632, %v3005_v48  ;;  %vm1982_vm4 = vcmp.gt.f32.partialorder %v5704_v11, 0.0 }
 0x28a   : > { %v2315_v58 = vmul.f32 1.050701, %v2267_v3  ;;  %v2256_v62 = vsel %vm1968_vm1, %v5670_v41, %v2208_v60  ;;  %v2211_v56 = vmul.f32 1.6732632, %v2998_v26  ;;  %v3001_v40 = vadd.f32 -1.0, %v5803_v27 }
 0x28b   : > { %v2304_v5 = vmul.f32 1.050701, %v2256_v62  ;;  %v2222_v24 = vmul.f32 1.6732632, %v3009_v7  ;;  %v2266_v13 = vsel %vm1978_vm2, %v5642_v19, %v2218_v8  ;;  %vm1974_vm5 = vcmp.gt.f32.partialorder %v5707_v55, 0.0 }
 0x28c   : > { %2498 = vmatprep.mubr.f32.mxu0 %v2315_v58  ;;  %v2259_v29 = vsel %vm1971_vm3, %v6249_v39, %v2211_v56  ;;  %v3008_v28 = vadd.f32 -1.0, %v5774_v45  ;;  %v2314_v46 = vmul.f32 1.050701, %v2266_v13  ;;  %v2214_v43 = vmul.f32 1.6732632, %v3001_v40  ;;  %v4056_v1 = vpop.eup %4055 }
 0x28d   : > { %3539 = vmatprep.mubr.f32.mxu1 %v2304_v5  ;;  %v2307_v41 = vmul.f32 1.050701, %v2259_v29  ;;  %v2270_v25 = vsel %vm1982_vm4, %v5704_v11, %v2222_v24  ;;  %vm1981_vm6 = vcmp.gt.f32.partialorder %v5684_v57, 0.0  ;;  %v3004_v38 = vadd.f32 -1.0, %v5779_v54 }
 0x28e   : > { %v2318_v35 = vmul.f32 1.050701, %v2270_v25  ;;  %v2221_v27 = vmul.f32 1.6732632, %v3008_v28  ;;  %2499 = vmatmul.mubr.f32.gmra.mrb[120].mxu0 %v2314_v46  ;;  %v2262_v19 = vsel %vm1974_vm5, %v5707_v55, %v2214_v43  ;;  %vm1977_vm7 = vcmp.gt.f32.partialorder %v5687_v18, 0.0 }
 0x28f   : > { %3540 = vmatmul.mubr.f32.gmra.mrb[104].mxu1 %v2307_v41  ;;  %v3012_v45 = vadd.f32 -1.0, %v5819_v53  ;;  %v3007_v12 = vadd.f32 -1.0, %v5828_v44  ;;  %v2310_v11 = vmul.f32 1.050701, %v2262_v19  ;;  %v2217_v20 = vmul.f32 1.6732632, %v3004_v38 }
 0x290   : > { %2503 = vmatprep.mubr.f32.mxu0 %v2318_v35  ;;  %v2269_v2 = vsel %vm1981_vm6, %v5684_v57, %v2221_v27  ;;  %vm1985_vm8 = vcmp.gt.f32.partialorder %v5745_v59, 0.0  ;;  %v4058_v17 = vpop.eup %4057  ;;  %vm1980_vm9 = vcmp.gt.f32.partialorder %v5748_v15, 0.0  ;;  %v3011_v53 = vadd.f32 -1.0, %v5806_v63 }
 0x291   : > { %v2317_v16 = vmul.f32 1.050701, %v2269_v2  ;;  %v2225_v54 = vmul.f32 1.6732632, %v3012_v45  ;;  %v2220_v23 = vmul.f32 1.6732632, %v3007_v12  ;;  %3542 = vmatprep.mubr.f32.mxu1 %v2310_v11  ;;  %v2265_v55 = vsel %vm1977_vm7, %v5687_v18, %v2217_v20 }
 0x292   : > { %v3010_v44 = vadd.f32 -1.0, %v5811_v61  ;;  %v2313_v21 = vmul.f32 1.050701, %v2265_v55  ;;  %v2224_v30 = vmul.f32 1.6732632, %v3011_v53  ;;  %vm1984_vm10 = vcmp.gt.f32.partialorder %v5730_v6, 0.0 }
 0x293   : > { %2504 = vmatmul.mubr.f32.gmra.mrb[122].mxu0 %v2317_v16  ;;  %v2273_v57 = vsel %vm1985_vm8, %v5745_v59, %v2225_v54  ;;  %v2268_v34 = vsel %vm1980_vm9, %v5748_v15, %v2220_v23  ;;  %v3015_v18 = vadd.f32 -1.0, %v4056_v1  ;;  %v3013_v42 = vadd.f32 -1.0, %v4058_v17 }
 0x294   : > { %v2321_v9 = vmul.f32 1.050701, %v2273_v57  ;;  %v2316_v36 = vmul.f32 1.050701, %v2268_v34  ;;  %3543 = vmatmul.mubr.f32.gmra.mrb[106].mxu1 %v2313_v21  ;;  %v2223_v49 = vmul.f32 1.6732632, %v3010_v44  ;;  %v2272_v63 = vsel %vm1984_vm10, %v5730_v6, %v2224_v30 }
 0x295   : > { %vm1983_vm11 = vcmp.gt.f32.partialorder %v5733_v32, 0.0  ;;  %vm1988_vm12 = vcmp.gt.f32.partialorder %v5789_v51, 0.0  ;;  %v3014_v59 = vadd.f32 -1.0, %v5832_v4  ;;  %v2320_v15 = vmul.f32 1.050701, %v2272_v63 }
 0x296   : > { %2508 = vmatprep.mubr.f32.mxu0 %v2321_v9  ;;  %3545 = vmatprep.mubr.f32.mxu1 %v2316_v36  ;;  %v2271_v61 = vsel %vm1983_vm11, %v5733_v32, %v2223_v49  ;;  %v2228_v47 = vmul.f32 1.6732632, %v3015_v18  ;;  %v2226_v22 = vmul.f32 1.6732632, %v3013_v42  ;;  %vm1986_vm13 = vcmp.gt.f32.partialorder %v5792_v10, 0.0 }
 0x297   : > { %v2319_v33 = vmul.f32 1.050701, %v2271_v61  ;;  %v2227_v37 = vmul.f32 1.6732632, %v3014_v59  ;;  %v3016_v52 = vadd.f32 -1.0, %v5839_v0  ;;  %2509 = vmatmul.mubr.f32.gmra.mrb[124].mxu0 %v2320_v15  ;;  %vm1987_vm14 = vcmp.gt.f32.partialorder %v5763_v14, 0.0 }
 0x298   : > { %v2276_v6 = vsel %vm1988_vm12, %v5789_v51, %v2228_v47  ;;  %v2274_v50 = vsel %vm1986_vm13, %v5792_v10, %v2226_v22  ;;  %vm1989_vm15 = vcmp.gt.f32.partialorder %v5767_v31, 0.0  ;;  %vm2808_vm2 = vcmask 1041409  }
 0x299   : > { %3546 = vmatmul.mubr.f32.gmra.mrb[108].mxu1 %v2319_v33  ;;  %v2324_v4 = vmul.f32 1.050701, %v2276_v6  ;;  %v2322_v60 = vmul.f32 1.050701, %v2274_v50  ;;  %v2275_v32 = vsel %vm1987_vm14, %v5763_v14, %v2227_v37  ;;  %v2229_v48 = vmul.f32 1.6732632, %v3016_v52 }
 0x29a   : > { %v2323_v26 = vmul.f32 1.050701, %v2275_v32  ;;  %v5900_v33 = vld [vmem:[#allocation10] ss:$0 sm:$0xff]  ;;  %vm2811_vm4 = vcmask 1042434   ;;  %vm2814_vm6 = vcmask 1043459  }
 0x29b   : > { %2513 = vmatprep.mubr.f32.mxu0 %v2324_v4  ;;  %3548 = vmatprep.mubr.f32.mxu1 %v2322_v60  ;;  %v2277_v0 = vsel %vm1989_vm15, %v5767_v31, %v2229_v48  ;;  %vm2817_vm8 = vcmask 1044484   ;;  %vm2820_vm10 = vcmask 1045509   ;;  %vm2823_vm12 = vcmask 1046534  }
 0x29c   : > { %2514 = vmatmul.mubr.f32.gmra.mrb[126].mxu0 %v2323_v26  ;;  %v2325_v3 = vmul.f32 1.050701, %v2277_v0  ;;  %vm2826_vm14 = vcmask 1047559  }
 0x29e   : > { %3549 = vmatmul.mubr.f32.gmra.mrb[110].mxu1 %v2325_v3 }
 0x30b   : > { %v3191_v51 = vpop.f32.mrb[96].mxu0 }
 0x30c   : > { %v3192_v10 = vpop.f32.mrb[97].mxu0 }
 0x30d   : > { %v3193_v39 = vadd.f32 %v3192_v10, %v3191_v51 }
 0x313   : > { %v3194_v7 = vpop.f32.mrb[98].mxu0 }
 0x314   : > { %v3195_v58 = vpop.f32.mrb[99].mxu0 }
 0x315   : > { %v3196_v62 = vadd.f32 %v3195_v58, %v3194_v7 }
 0x31e   : > { %v3197_v8 = vpop.f32.mrb[100].mxu0 }
 0x31f   : > { %v3198_v56 = vpop.f32.mrb[101].mxu0 }
 0x320   : > { %v3199_v14 = vadd.f32 %v3198_v56, %v3197_v8 }
 0x324   : > { %v3200_v5 = vpop.f32.mrb[102].mxu0 }
 0x325   : > { %v3201_v24 = vpop.f32.mrb[103].mxu0 }
 0x326   : > { %v3202_v40 = vadd.f32 %v3201_v24, %v3200_v5 }
 0x32c   : > { %v3203_v13 = vpop.f32.mrb[104].mxu0 }
 0x32d   : > { %v3204_v29 = vpop.f32.mrb[105].mxu0 }
 0x32e   : > { %v3205_v28 = vadd.f32 %v3204_v29, %v3203_v13 }
 0x336   : > { %v3206_v46 = vpop.f32.mrb[106].mxu0 }
 0x337   : > { %v3207_v31 = vpop.f32.mrb[107].mxu0 }
 0x338   : > { %v3208_v41 = vadd.f32 %v3207_v31, %v3206_v46 }
 0x33e   : > { %v3209_v25 = vpop.f32.mrb[108].mxu0 }
 0x33f   : > { %v3210_v43 = vpop.f32.mrb[109].mxu0 }
 0x340   : > { %v3211_v1 = vadd.f32 %v3210_v43, %v3209_v25 }
 0x344   : > { %v3212_v35 = vpop.f32.mrb[110].mxu0 }
 0x345   : > { %v3213_v27 = vpop.f32.mrb[111].mxu0 }
 0x346   : > { %v3214_v38 = vadd.f32 %v3213_v27, %v3212_v35 }
 0x34b   : > { %v3529_v19 = vpop.f32.mrb[96].mxu1 }
 0x34c   : > { %v3215_v45 = vpop.f32.mrb[112].mxu0  ;;  %v2591_v12 = vadd.f32 %v3529_v19, %v3196_v62  ;;  %v2585_v11 = vpop.f32.mrb[97].mxu1 }
 0x34d   : > { %v3216_v2 = vpop.f32.mrb[113].mxu0  ;;  %v2586_v20 = vadd.f32 %v3193_v39, %v2585_v11 }
 0x34e   : > { %v3217_v17 = vadd.f32 %v3216_v2, %v3215_v45 }
 0x34f   : > { %v2664_v16 = vmax.f32 %v2586_v20, %v2591_v12 }
 0x351   : > { %v2665_v54 = vrot.slane %v2664_v16, 4 }
 0x352   : > { %v3218_v23 = vpop.f32.mrb[114].mxu0 }
 0x353   : > { %v2666_v55 = vmax.f32 %v2664_v16, %v2665_v54  ;;  %v3532_v53 = vpop.f32.mrb[98].mxu1  ;;  %v3219_v44 = vpop.f32.mrb[115].mxu0 }
 0x354   : > { %v2601_v21 = vadd.f32 %v3532_v53, %v3202_v40  ;;  %v3220_v57 = vadd.f32 %v3219_v44, %v3218_v23  ;;  %v2595_v34 = vpop.f32.mrb[99].mxu1 }
 0x355   : > { %v2667_v9 = vrot.slane %v2666_v55, 2  ;;  %v2596_v36 = vadd.f32 %v3199_v14, %v2595_v34 }
 0x356   : > { %v3221_v30 = vpop.f32.mrb[116].mxu0 }
 0x357   : > { %v2668_v49 = vmax.f32 %v2666_v55, %v2667_v9  ;;  %v2671_v18 = vmax.f32 %v2596_v36, %v2601_v21  ;;  %v3222_v42 = vpop.f32.mrb[117].mxu0 }
 0x358   : > { %v3535_v63 = vpop.f32.mrb[100].mxu1  ;;  %v3223_v59 = vadd.f32 %v3222_v42, %v3221_v30 }
 0x359   : > { %v2669_v15 = vrot.slane %v2668_v49, 1  ;;  %v2672_v61 = vrot.slane %v2671_v18, 4  ;;  %v2611_v47 = vadd.f32 %v3535_v63, %v3208_v41  ;;  %v2605_v22 = vpop.f32.mrb[101].mxu1 }
 0x35a   : > { %v2606_v37 = vadd.f32 %v3205_v28, %v2605_v22 }
 0x35b   : > { %v2670_v52 = vmax.f32 %v2668_v49, %v2669_v15  ;;  %v2673_v6 = vmax.f32 %v2671_v18, %v2672_v61  ;;  %v3224_v4 = vpop.f32.mrb[118].mxu0 }
 0x35c   : > { %v2678_v50 = vmax.f32 %v2606_v37, %v2611_v47  ;;  %v3538_v60 = vpop.f32.mrb[102].mxu1  ;;  %v3225_v0 = vpop.f32.mrb[119].mxu0 }
 0x35d   : > { %v5903_v32 = vadd.f32 %v5900_v33, %v2670_v52  ;;  %v2674_v48 = vrot.slane %v2673_v6, 2  ;;  %v2621_v26 = vadd.f32 %v3538_v60, %v3214_v38  ;;  %v2615_v3 = vpop.f32.mrb[103].mxu1  ;;  %v3226_v10 = vadd.f32 %v3225_v0, %v3224_v4 }
 0x35e   : > { %v2679_v51 = vrot.slane %v2678_v50, 4  ;;  %v2616_v39 = vadd.f32 %v3211_v1, %v2615_v3 }
 0x35f   : > { %v2743_v7 = vmin.f32 %v5903_v32, 0.0  ;;  %v2675_v58 = vmax.f32 %v2673_v6, %v2674_v48  ;;  %vm2735_vm0 = vcmp.gt.f32.partialorder %v5903_v32, 0.0 }
 0x360   : > { %v2680_v62 = vmax.f32 %v2678_v50, %v2679_v51  ;;  %v2685_v8 = vmax.f32 %v2616_v39, %v2621_v26 }
 0x361   : > { %v2751_v56 = vmul.f32 1.442695, %v2743_v7  ;;  %v2676_v14 = vrot.slane %v2675_v58, 1  ;;  %v3227_v40 = vpop.f32.mrb[120].mxu0 }
 0x362   : > { %v2681_v5 = vrot.slane %v2680_v62, 2  ;;  %v2686_v24 = vrot.slane %v2685_v8, 4  ;;  %v3541_v13 = vpop.f32.mrb[104].mxu1  ;;  %v3228_v46 = vpop.f32.mrb[121].mxu0 }
 0x363   : > { %v2677_v29 = vmax.f32 %v2675_v58, %v2676_v14  ;;  %v2631_v28 = vadd.f32 %v3541_v13, %v3220_v57  ;;  %v2625_v31 = vpop.f32.mrb[105].mxu1  ;;  %v3229_v43 = vadd.f32 %v3228_v46, %v3227_v40  ;;  %4059 = vpow2.f32 %v2751_v56 }
 0x364   : > { %v2682_v41 = vmax.f32 %v2680_v62, %v2681_v5  ;;  %v2687_v25 = vmax.f32 %v2685_v8, %v2686_v24  ;;  %v2626_v35 = vadd.f32 %v3217_v17, %v2625_v31 }
 0x365   : > { %v5907_v1 = vadd.f32 %v5900_v33, %v2677_v29 }
 0x366   : > { %v2683_v27 = vrot.slane %v2682_v41, 1  ;;  %v2688_v38 = vrot.slane %v2687_v25, 2  ;;  %v2692_v19 = vmax.f32 %v2626_v35, %v2631_v28  ;;  %v3230_v45 = vpop.f32.mrb[122].mxu0 }
 0x367   : > { %v2744_v12 = vmin.f32 %v5907_v1, 0.0  ;;  %v3231_v11 = vpop.f32.mrb[123].mxu0  ;;  %v3544_v54 = vpop.f32.mrb[106].mxu1  ;;  %vm2736_vm1 = vcmp.gt.f32.partialorder %v5907_v1, 0.0 }
 0x368   : > { %v2684_v2 = vmax.f32 %v2682_v41, %v2683_v27  ;;  %v2689_v20 = vmax.f32 %v2687_v25, %v2688_v38  ;;  %v2693_v16 = vrot.slane %v2692_v19, 4  ;;  %v3232_v23 = vadd.f32 %v3231_v11, %v3230_v45  ;;  %v2635_v44 = vpop.f32.mrb[107].mxu1 }
 0x369   : > { %v2753_v55 = vmul.f32 1.442695, %v2744_v12  ;;  %v2641_v53 = vadd.f32 %v3544_v54, %v3226_v10  ;;  %v2636_v34 = vadd.f32 %v3223_v59, %v2635_v44 }
 0x36a   : > { %v5911_v17 = vadd.f32 %v5900_v33, %v2684_v2  ;;  %v2690_v21 = vrot.slane %v2689_v20, 1  ;;  %v2694_v57 = vmax.f32 %v2692_v19, %v2693_v16  ;;  %v3233_v49 = vpop.f32.mrb[124].mxu0 }
 0x36b   : > { %4061 = vpow2.f32 %v2753_v55  ;;  %v2699_v18 = vmax.f32 %v2636_v34, %v2641_v53  ;;  %v3234_v63 = vpop.f32.mrb[125].mxu0 }
 0x36c   : > { %v2745_v9 = vmin.f32 %v5911_v17, 0.0  ;;  %v2691_v36 = vmax.f32 %v2689_v20, %v2690_v21  ;;  %v2695_v30 = vrot.slane %v2694_v57, 2  ;;  %v3547_v42 = vpop.f32.mrb[108].mxu1  ;;  %v3235_v50 = vadd.f32 %v3234_v63, %v3233_v49 }
 0x36d   : > { %v2645_v22 = vpop.f32.mrb[109].mxu1  ;;  %v4060_v37 = vpop.eup %4059  ;;  %v2700_v52 = vrot.slane %v2699_v18, 4  ;;  %v2651_v6 = vadd.f32 %v3547_v42, %v3232_v23  ;;  %vm2737_vm3 = vcmp.gt.f32.partialorder %v5911_v17, 0.0 }
 0x36e   : > { %v2755_v15 = vmul.f32 1.442695, %v2745_v9  ;;  %v5915_v61 = vadd.f32 %v5900_v33, %v2691_v36  ;;  %v2696_v47 = vmax.f32 %v2694_v57, %v2695_v30  ;;  %v2646_v59 = vadd.f32 %v3229_v43, %v2645_v22 }
 0x36f   : > { %v3236_v60 = vpop.f32.mrb[126].mxu0  ;;  %v2701_v26 = vmax.f32 %v2699_v18, %v2700_v52  ;;  %v3018_v51 = vadd.f32 -1.0, %v4060_v37 }
 0x370   : > { %4063 = vpow2.f32 %v2755_v15  ;;  %v2746_v4 = vmin.f32 %v5915_v61, 0.0  ;;  %v2697_v48 = vrot.slane %v2696_v47, 1  ;;  %v2706_v0 = vmax.f32 %v2646_v59, %v2651_v6  ;;  %v3237_v3 = vpop.f32.mrb[127].mxu0 }
 0x371   : > { %v3550_v39 = vpop.f32.mrb[110].mxu1  ;;  %v3238_v7 = vadd.f32 %v3237_v3, %v3236_v60  ;;  %v2702_v62 = vrot.slane %v2701_v26, 2  ;;  %v2775_v28 = vmul.f32 1.6732632, %v3018_v51  ;;  %vm2738_vm5 = vcmp.gt.f32.partialorder %v5915_v61, 0.0 }
 0x372   : > { %v2757_v10 = vmul.f32 1.442695, %v2746_v4  ;;  %v2698_v58 = vmax.f32 %v2696_v47, %v2697_v48  ;;  %v2707_v8 = vrot.slane %v2706_v0, 4  ;;  %v2655_v56 = vpop.f32.mrb[111].mxu1 }
 0x373   : > { %v2661_v14 = vadd.f32 %v3550_v39, %v3238_v7  ;;  %v2656_v5 = vadd.f32 %v3235_v50, %v2655_v56  ;;  %v2703_v13 = vmax.f32 %v2701_v26, %v2702_v62  ;;  %v2783_v11 = vsel %vm2735_vm0, %v5903_v32, %v2775_v28 }
 0x374   : > { %4065 = vpow2.f32 %v2757_v10  ;;  %v5919_v40 = vadd.f32 %v5900_v33, %v2698_v58  ;;  %v2708_v29 = vmax.f32 %v2706_v0, %v2707_v8  ;;  %v2791_v44 = vmul.f32 1.050701, %v2783_v11 }
 0x375   : > { %v4062_v24 = vpop.eup %4061  ;;  %v2713_v31 = vmax.f32 %v2656_v5, %v2661_v14  ;;  %v2704_v25 = vrot.slane %v2703_v13, 1 }
 0x376   : > { %v3019_v46 = vadd.f32 -1.0, %v4062_v24  ;;  %v2747_v41 = vmin.f32 %v5919_v40, 0.0  ;;  %v2709_v43 = vrot.slane %v2708_v29, 2  ;;  %vm2739_vm7 = vcmp.gt.f32.partialorder %v5919_v40, 0.0 }
 0x377   : > { %v2714_v27 = vrot.slane %v2713_v31, 4  ;;  %v2705_v19 = vmax.f32 %v2703_v13, %v2704_v25 }
 0x378   : > { %v2776_v35 = vmul.f32 1.6732632, %v3019_v46  ;;  %v2759_v38 = vmul.f32 1.442695, %v2747_v41  ;;  %v2710_v45 = vmax.f32 %v2708_v29, %v2709_v43 }
 0x379   : > { %v2715_v20 = vmax.f32 %v2713_v31, %v2714_v27  ;;  %v2732_v23 = vadd.f32 %v5900_v33, %v2705_v19 }
 0x37a   : > { %v4064_v12 = vpop.eup %4063  ;;  %v2784_v2 = vsel %vm2736_vm1, %v5907_v1, %v2776_v35  ;;  %4067 = vpow2.f32 %v2759_v38  ;;  %v2711_v55 = vrot.slane %v2710_v45, 1 }
 0x37b   : > { %v2792_v16 = vmul.f32 1.050701, %v2784_v2  ;;  %v3020_v54 = vadd.f32 -1.0, %v4064_v12  ;;  %v2716_v53 = vrot.slane %v2715_v20, 2  ;;  %v2748_v34 = vmin.f32 %v2732_v23, 0.0 }
 0x37c   : > { %v2712_v36 = vmax.f32 %v2710_v45, %v2711_v55  ;;  %vm2740_vm9 = vcmp.gt.f32.partialorder %v2732_v23, 0.0 }
 0x37d   : > { %v2807_v21 = vrot.slane %v2792_v16, 7  ;;  %v2777_v57 = vmul.f32 1.6732632, %v3020_v54  ;;  %v2717_v32 = vmax.f32 %v2715_v20, %v2716_v53  ;;  %v2761_v18 = vmul.f32 1.442695, %v2748_v34 }
 0x37e   : > { %v4066_v9 = vpop.eup %4065  ;;  %v2733_v63 = vadd.f32 %v5900_v33, %v2712_v36 }
 0x37f   : > { %v2809_v30 = vsel %vm2808_vm2, %v2807_v21, %v2791_v44  ;;  %v2785_v1 = vsel %vm2737_vm3, %v5911_v17, %v2777_v57  ;;  %v3021_v49 = vadd.f32 -1.0, %v4066_v9  ;;  %v2718_v15 = vrot.slane %v2717_v32, 1 }
 0x380   : > { %v2793_v42 = vmul.f32 1.050701, %v2785_v1  ;;  %4069 = vpow2.f32 %v2761_v18  ;;  %v2749_v37 = vmin.f32 %v2733_v63, 0.0  ;;  %vm2741_vm11 = vcmp.gt.f32.partialorder %v2733_v63, 0.0 }
 0x381   : > { %v2778_v47 = vmul.f32 1.6732632, %v3021_v49  ;;  %v2719_v52 = vmax.f32 %v2717_v32, %v2718_v15 }
 0x382   : > { %v2810_v22 = vrot.slane %v2793_v42, 6  ;;  %v2763_v59 = vmul.f32 1.442695, %v2749_v37 }
 0x383   : > { %v2786_v6 = vsel %vm2738_vm5, %v5915_v61, %v2778_v47  ;;  %v2734_v17 = vadd.f32 %v5900_v33, %v2719_v52 }
 0x384   : > { %v2794_v50 = vmul.f32 1.050701, %v2786_v6  ;;  %v2812_v4 = vsel %vm2811_vm4, %v2810_v22, %v2809_v30  ;;  %v4068_v60 = vpop.eup %4067  ;;  %4071 = vpow2.f32 %v2763_v59 }
 0x385   : > { %v3022_v26 = vadd.f32 -1.0, %v4068_v60  ;;  %v2750_v0 = vmin.f32 %v2734_v17, 0.0  ;;  %vm2742_vm13 = vcmp.gt.f32.partialorder %v2734_v17, 0.0 }
 0x386   : > { %v2813_v48 = vrot.slane %v2794_v50, 5 }
 0x387   : > { %v2779_v3 = vmul.f32 1.6732632, %v3022_v26  ;;  %v2765_v10 = vmul.f32 1.442695, %v2750_v0 }
 0x388   : > { %v2815_v51 = vsel %vm2814_vm6, %v2813_v48, %v2812_v4 }
 0x389   : > { %v2787_v39 = vsel %vm2739_vm7, %v5919_v40, %v2779_v3  ;;  %4073 = vpow2.f32 %v2765_v10 }
 0x38a   : > { %v4070_v7 = vpop.eup %4069  ;;  %v2795_v61 = vmul.f32 1.050701, %v2787_v39 }
 0x38b   : > { %v3023_v58 = vadd.f32 -1.0, %v4070_v7 }
 0x38c   : > { %v2816_v33 = vrot.slane %v2795_v61, 4 }
 0x38d   : > { %v2780_v62 = vmul.f32 1.6732632, %v3023_v58 }
 0x38e   : > { %v2818_v8 = vsel %vm2817_vm8, %v2816_v33, %v2815_v51  ;;  %v4072_v56 = vpop.eup %4071 }
 0x38f   : > { %v2788_v14 = vsel %vm2740_vm9, %v2732_v23, %v2780_v62  ;;  %v3024_v24 = vadd.f32 -1.0, %v4072_v56 }
 0x390   : > { %v2796_v5 = vmul.f32 1.050701, %v2788_v14 }
 0x391   : > { %v2781_v29 = vmul.f32 1.6732632, %v3024_v24 }
 0x392   : > { %v2819_v13 = vrot.slane %v2796_v5, 3 }
 0x393   : > { %v4074_v40 = vpop.eup %4073  ;;  %v2789_v28 = vsel %vm2741_vm11, %v2733_v63, %v2781_v29 }
 0x394   : > { %v2821_v46 = vsel %vm2820_vm10, %v2819_v13, %v2818_v8  ;;  %v3025_v31 = vadd.f32 -1.0, %v4074_v40  ;;  %v2797_v41 = vmul.f32 1.050701, %v2789_v28 }
 0x396   : > { %v2782_v25 = vmul.f32 1.6732632, %v3025_v31  ;;  %v2822_v43 = vrot.slane %v2797_v41, 2 }
 0x398   : > { %v2790_v35 = vsel %vm2742_vm13, %v2734_v17, %v2782_v25  ;;  %v2824_v27 = vsel %vm2823_vm12, %v2822_v43, %v2821_v46 }
 0x399   : > { %v2798_v38 = vmul.f32 1.050701, %v2790_v35 }
 0x39b   : > { %v2825_v19 = vrot.slane %v2798_v38, 1 }
 0x39d   : > { %v2827_v45 = vsel %vm2826_vm14, %v2825_v19, %v2824_v27 }
 0x39e   : > { %2829 = vst [vmem:[%s296_s14] sm:$0xff] %v2827_v45 }
 0x39f   : > { %4231 = shalt.err (!%p4228_p12)
}
 0x3a0   : > { %s4232_s11 = scalar_lea.hbm %s5940_s17, 128  ;;  %s4236_s13 = scalar_lea.hbm %s5988_s5, 384 }
 0x3a1   : > { %p4233_p0 = scmp.ne.s32.totalorder %s5940_s17, %s4232_s11  ;;  %p4237_p11 = scmp.lt.u32.totalorder %s5940_s17, %s5988_s5 }
 0x3a2   : > { %p4238_p1 = scmp.lt.u32.totalorder %s4236_s13, %s4232_s11  ;;  %p4240_p4 = scmp.lt.u32.totalorder %s4232_s11, %s5940_s17 }
 0x3a3   : > { %p4234_p5 = pnand %p4233_p0, %p4497_p6 }
 0x3a4   : > { %p4239_p2 = por %p4238_p1, %p4237_p11 }
 0x3a5   : > { %p4235_p10 = pneg %p4234_p5 }
 0x3a6   : > { %p4241_p8 = por %p4240_p4, %p4239_p2 }
 0x3a8   : > { %p4242_p13 = pnand %p4241_p8, %p4235_p10 }
 0x3aa   : > { %4245 = shalt.err (!%p4242_p13)
}
 0x3ab   : > { %3889 = dma.vmem_to_hbm [thread:$0]  (%p4497_p6), %s5942_s15, 128, %s5940_s17, %s2831_s23  }
 0x3ac PF: > { %p3921_p3 = scmp.ge.s32.totalorder %s4292_s21, 2  ;;  %s2856_s26 = sand.u32 1, %s4280_s18  }
 0x3ad   : > { %p6250_p7 = scmp.ne.s32.totalorder %s6059_s25, 0  ;;  %s2857_s14 = scalar_lea.sflag [#allocation4], %s2856_s26 }
 0x3af   : > { %p3909_p9 = pnand %p3921_p3, %p6250_p7 }
 0x3b1   : > { %4275 = dma.done.wait (!%p3909_p9), %s2857_s14, 128  }
 0x3b2   : > { %4277 = vsyncadd (!%p3909_p9), %s2857_s14, 4294967168  ;;  %p20_p12 = scmp.ge.s32.totalorder %s4484_s12, 5   ;;  %s6251_s18 = smov %s4284_s19 }
 0x3b3   : > { %s6252_s19 = smov %s4288_s20  ;;  %s6253_s20 = smov %s4493_s8 }
 0x3b4   : > { %s6254_s21 = smov %s4484_s12  ;;  %22 = sbr.rel (!%p20_p12) target bundleno = 7 (0x7), region = 104 }
 0x3bb   :  { %2862 = vsyncpa [#allocation3], 1 }
 0x3bc   :  { %2864 = vsyncpa [#allocation3 + $0x1], 1 }
 0x3bd   :  { %2865 = vsyncpa [#allocation6], 1 }
 0x3be   :  { %2866 = vsyncpa [#allocation9], 1 }
 0x3bf   :  { %2867 = vsyncpa [#allocation4], 1 }
 0x3c0   :  { %2869 = vsyncpa [#allocation4 + $0x1], 1 }

</bundles_post_ra>
